<compile_context>
chip_gen: v7x
topology: tpu7x:2x2x1
jax: 0.10.0
libtpu: 0.0.40
codegen_flags: <defaults>
</compile_context>

<pallas_src>
import functools
import math

import jax
import jax.numpy as jnp
from jax.experimental import pallas as pl
from jax.experimental.pallas import tpu as pltpu

# ----------------------------- small config -----------------------------
IMG = 16          # img_size
PATCH = 4         # patch_size
C_IN = 3          # in_channels
EMBED = 32        # embed_dim
DEPTH = 2         # number of transformer blocks
N_HEADS = 4
HEAD_DIM = EMBED // N_HEADS
MLP_RATIO = 4.0
HIDDEN = int(EMBED * MLP_RATIO)
N_CLASSES = 10
N_PATCHES = (IMG // PATCH) ** 2      # 16
N_TOKENS = N_PATCHES + 1             # 17 (cls token + patches)
TOKENS_PAD = 24                      # padded to a sublane multiple of 8
PATCH_DIM = C_IN * PATCH * PATCH     # 48
BATCH = 2


# ----------------------------- in-kernel math helpers -----------------------------
def _layernorm(v, w, b, eps=1e-6):
    mu = jnp.mean(v, axis=-1, keepdims=True)
    var = jnp.mean((v - mu) ** 2, axis=-1, keepdims=True)
    return (v - mu) * jax.lax.rsqrt(var + eps) * w + b


def _gelu_tanh(x):
    # tanh-approximate GELU (lowers to the EUP tanh slot); matches exact erf GELU
    # to ~1e-3 abs at these magnitudes.
    c = math.sqrt(2.0 / math.pi)
    return 0.5 * x * (1.0 + jnp.tanh(c * (x + 0.044715 * (x * x * x))))


# ----------------------------- fused kernel -----------------------------
def vit_kernel(patches_ref, tok_init_ref, patch_w_ref,
               ln1w_ref, ln1b_ref,
               wq_ref, bq_ref, wk_ref, bk_ref, wv_ref, bv_ref,
               wp_ref, bp_ref,
               ln2w_ref, ln2b_ref,
               wfc1_ref, bfc1_ref, wfc2_ref, bfc2_ref,
               normw_ref, normb_ref, headw_ref, headb_ref,
               o_ref, *, depth, n_heads, n_tokens, tokens_pad):
    f32 = jnp.float32

    # ---- fused patch embedding + cls/pos-embed init ----
    # patches_ref[0]: (TP, PD). Row 0 (cls) and pad rows are zero, so the matmul only
    # contributes to real patch rows; tok_init carries cls_token+pos / conv_bias+pos.
    x = jnp.dot(patches_ref[0], patch_w_ref[...], preferred_element_type=f32)
    x = x + tok_init_ref[...]                                   # (TP, D)

    # Additive softmax bias masking padded key columns (tokens >= n_tokens).
    key_ids = jax.lax.broadcasted_iota(jnp.int32, (1, tokens_pad), 1)
    key_bias = jnp.where(key_ids < n_tokens, 0.0, -1e30).astype(f32)

    for blk in range(depth):                                    # static unroll (DEPTH=2)
        # ---- pre-norm multi-head self-attention ----
        xn = _layernorm(x, ln1w_ref[blk], ln1b_ref[blk])
        attn_acc = bp_ref[blk]                                  # (1, D) proj bias
        for h in range(n_heads):                                # static unroll (4 heads)
            qh = jnp.dot(xn, wq_ref[blk, h], preferred_element_type=f32) + bq_ref[blk, h]
            kh = jnp.dot(xn, wk_ref[blk, h], preferred_element_type=f32) + bk_ref[blk, h]
            vh = jnp.dot(xn, wv_ref[blk, h], preferred_element_type=f32) + bv_ref[blk, h]
            # scores = q @ k^T without an explicit transpose (contract head_dim)
            s = jax.lax.dot_general(qh, kh, (((1,), (1,)), ((), ())),
                                    preferred_element_type=f32)             # (TP, TP)
            s = s + key_bias
            s = s - jnp.max(s, axis=-1, keepdims=True)
            e = jnp.exp(s)
            p = e * pl.reciprocal(jnp.sum(e, axis=-1, keepdims=True), approx=True)
            ctx = jnp.dot(p, vh, preferred_element_type=f32)                 # (TP, HD)
            attn_acc = attn_acc + jnp.dot(ctx, wp_ref[blk, h],
                                          preferred_element_type=f32)        # (TP, D)
        x = x + attn_acc

        # ---- pre-norm MLP ----
        xn2 = _layernorm(x, ln2w_ref[blk], ln2b_ref[blk])
        h1 = jnp.dot(xn2, wfc1_ref[blk], preferred_element_type=f32) + bfc1_ref[blk]
        h1 = _gelu_tanh(h1)
        x = x + jnp.dot(h1, wfc2_ref[blk], preferred_element_type=f32) + bfc2_ref[blk]

    # ---- final LayerNorm + classifier head on the cls token (row 0) ----
    cls = x[0:1, :]                                             # (1, D)
    clsn = _layernorm(cls, normw_ref[...], normb_ref[...])
    o_ref[0] = (jnp.dot(clsn, headw_ref[...], preferred_element_type=f32)
                + headb_ref[...])


# ----------------------------- host-side glue -----------------------------
def extract_patches(x, patch):
    # NCHW -> (B, n_patches, C*patch*patch), patch vector ordered (c, dh, dw)
    # matching the flattened Conv2d weight layout (out, in, kh, kw).
    b, c, h, w = x.shape
    hp, wp = h // patch, w // patch
    x = x.reshape(b, c, hp, patch, wp, patch)
    x = x.transpose(0, 2, 4, 1, 3, 5)
    return x.reshape(b, hp * wp, c * patch * patch)


def _prepare_weights(params):
    """Pre-split per-head weights, fold the attention scale, stack per-block tensors."""
    d, h, hd = EMBED, N_HEADS, HEAD_DIM
    scale = HEAD_DIM ** (-0.5)

    # Token init: row 0 = cls + pos[0]; rows 1..16 = conv bias + pos[1..16]; pad rows = 0.
    tok_init = jnp.zeros((TOKENS_PAD, d), jnp.float32)
    tok_init = tok_init.at[0].set(params['cls_token'][0, 0] + params['pos_embed'][0, 0])
    tok_init = tok_init.at[1:N_TOKENS].set(params['patch_b'][0]
                                           + params['pos_embed'][0, 1:N_TOKENS])

    blocks = params['blocks']
    ln1w = jnp.stack([b['ln1_w'] for b in blocks])          # (DEPTH, 1, D)
    ln1b = jnp.stack([b['ln1_b'] for b in blocks])
    ln2w = jnp.stack([b['ln2_w'] for b in blocks])
    ln2b = jnp.stack([b['ln2_b'] for b in blocks])
    wfc1 = jnp.stack([b['wfc1'] for b in blocks])            # (DEPTH, D, HIDDEN)
    bfc1 = jnp.stack([b['bfc1'] for b in blocks])            # (DEPTH, 1, HIDDEN)
    wfc2 = jnp.stack([b['wfc2'] for b in blocks])            # (DEPTH, HIDDEN, D)
    bfc2 = jnp.stack([b['bfc2'] for b in blocks])            # (DEPTH, 1, D)
    bp = jnp.stack([b['bproj'] for b in blocks])             # (DEPTH, 1, D)

    wq_l, wk_l, wv_l, bq_l, bk_l, bv_l, wp_l = ([] for _ in range(7))
    for b in blocks:
        wqkv, bqkv = b['wqkv'], b['bqkv'][0]                  # (D, 3D), (3D,)
        wq_l.append((wqkv[:, 0 * d:1 * d] * scale).reshape(d, h, hd).transpose(1, 0, 2))
        wk_l.append(wqkv[:, 1 * d:2 * d].reshape(d, h, hd).transpose(1, 0, 2))
        wv_l.append(wqkv[:, 2 * d:3 * d].reshape(d, h, hd).transpose(1, 0, 2))
        bq_l.append((bqkv[0 * d:1 * d] * scale).reshape(h, 1, hd))
        bk_l.append(bqkv[1 * d:2 * d].reshape(h, 1, hd))
        bv_l.append(bqkv[2 * d:3 * d].reshape(h, 1, hd))
        wp_l.append(b['wproj'].reshape(h, hd, d))             # rows h*hd:(h+1)*hd <-> head h

    return (tok_init, params['patch_w'],
            ln1w, ln1b,
            jnp.stack(wq_l), jnp.stack(bq_l),                 # (DEPTH, H, D, HD), (DEPTH, H, 1, HD)
            jnp.stack(wk_l), jnp.stack(bk_l),
            jnp.stack(wv_l), jnp.stack(bv_l),
            jnp.stack(wp_l), bp,                              # (DEPTH, H, HD, D)
            ln2w, ln2b, wfc1, bfc1, wfc2, bfc2,
            params['norm_w'], params['norm_b'],
            params['head_w'], params['head_b'])


def _wspec(shape):
    rank = len(shape)
    return pl.BlockSpec(shape, lambda i, _r=rank: (0,) * _r)  # resident full-array block


def vit_forward(x, params):
    bsz = x.shape[0]
    patches = extract_patches(x, PATCH)                        # (B, 16, 48)
    patches_aug = jnp.zeros((bsz, TOKENS_PAD, PATCH_DIM), jnp.float32)
    patches_aug = patches_aug.at[:, 1:1 + N_PATCHES, :].set(patches)

    weights = _prepare_weights(params)

    kernel = functools.partial(vit_kernel, depth=DEPTH, n_heads=N_HEADS,
                               n_tokens=N_TOKENS, tokens_pad=TOKENS_PAD)

    in_specs = [pl.BlockSpec((1, TOKENS_PAD, PATCH_DIM), lambda i: (i, 0, 0))]
    in_specs += [_wspec(w.shape) for w in weights]

    logits3 = pl.pallas_call(
        kernel,
        grid=(bsz,),
        in_specs=in_specs,
        out_specs=pl.BlockSpec((1, 1, N_CLASSES), lambda i: (i, 0, 0)),
        out_shape=jax.ShapeDtypeStruct((bsz, 1, N_CLASSES), jnp.float32),
        compiler_params=pltpu.CompilerParams(dimension_semantics=("parallel",)),
    )(patches_aug, *weights)
    return logits3[:, 0, :]


# ----------------------------- params -----------------------------
def _nrm(key, shape, scale=0.02):
    return (scale * jax.random.normal(key, shape)).astype(jnp.float32)


def init_params(key):
    ks = jax.random.split(key, 8 + DEPTH)
    params = {
        'patch_w': _nrm(ks[0], (PATCH_DIM, EMBED)),   # flattened/transposed Conv2d weight
        'patch_b': _nrm(ks[1], (1, EMBED)),
        'cls_token': _nrm(ks[2], (1, 1, EMBED)),
        'pos_embed': _nrm(ks[3], (1, N_TOKENS, EMBED)),
        'norm_w': jnp.ones((1, EMBED), jnp.float32),
        'norm_b': jnp.zeros((1, EMBED), jnp.float32),
        'head_w': _nrm(ks[4], (EMBED, N_CLASSES)),
        'head_b': _nrm(ks[5], (1, N_CLASSES)),
        'blocks': [],
    }
    for i in range(DEPTH):
        bk = jax.random.split(ks[8 + i], 8)
        params['blocks'].append({
            'ln1_w': jnp.ones((1, EMBED), jnp.float32),
            'ln1_b': jnp.zeros((1, EMBED), jnp.float32),
            'wqkv': _nrm(bk[0], (EMBED, 3 * EMBED)),
            'bqkv': _nrm(bk[1], (1, 3 * EMBED)),
            'wproj': _nrm(bk[2], (EMBED, EMBED)),
            'bproj': _nrm(bk[3], (1, EMBED)),
            'ln2_w': jnp.ones((1, EMBED), jnp.float32),
            'ln2_b': jnp.zeros((1, EMBED), jnp.float32),
            'wfc1': _nrm(bk[4], (EMBED, HIDDEN)),
            'bfc1': _nrm(bk[5], (1, HIDDEN)),
            'wfc2': _nrm(bk[6], (HIDDEN, EMBED)),
            'bfc2': _nrm(bk[7], (1, EMBED)),
        })
    return params


# ----------------------------- main -----------------------------
if __name__ == "__main__":
    x = jax.random.normal(jax.random.PRNGKey(0), (BATCH, C_IN, IMG, IMG),
                          dtype=jnp.float32)
    params = init_params(jax.random.PRNGKey(1))

    logits = jax.jit(vit_forward)(x, params)
    jax.block_until_ready(logits)

    assert logits.shape == (BATCH, N_CLASSES)
    assert bool(jnp.all(jnp.isfinite(logits)))
    print("KERNEL_OK")
</pallas_src>

<mosaic_0001>
module attributes {stable_mosaic.version = 11 : i64} {
  func.func @vit_kernel(%arg0: i32, %arg1: memref<1x24x48xf32, #tpu.memory_space<vmem>>, %arg2: memref<24x32xf32, #tpu.memory_space<vmem>>, %arg3: memref<48x32xf32, #tpu.memory_space<vmem>>, %arg4: memref<2x1x32xf32, #tpu.memory_space<vmem>>, %arg5: memref<2x1x32xf32, #tpu.memory_space<vmem>>, %arg6: memref<2x4x32x8xf32, #tpu.memory_space<vmem>>, %arg7: memref<2x4x1x8xf32, #tpu.memory_space<vmem>>, %arg8: memref<2x4x32x8xf32, #tpu.memory_space<vmem>>, %arg9: memref<2x4x1x8xf32, #tpu.memory_space<vmem>>, %arg10: memref<2x4x32x8xf32, #tpu.memory_space<vmem>>, %arg11: memref<2x4x1x8xf32, #tpu.memory_space<vmem>>, %arg12: memref<2x4x8x32xf32, #tpu.memory_space<vmem>>, %arg13: memref<2x1x32xf32, #tpu.memory_space<vmem>>, %arg14: memref<2x1x32xf32, #tpu.memory_space<vmem>>, %arg15: memref<2x1x32xf32, #tpu.memory_space<vmem>>, %arg16: memref<2x32x128xf32, #tpu.memory_space<vmem>>, %arg17: memref<2x1x128xf32, #tpu.memory_space<vmem>>, %arg18: memref<2x128x32xf32, #tpu.memory_space<vmem>>, %arg19: memref<2x1x32xf32, #tpu.memory_space<vmem>>, %arg20: memref<1x32xf32, #tpu.memory_space<vmem>>, %arg21: memref<1x32xf32, #tpu.memory_space<vmem>>, %arg22: memref<32x10xf32, #tpu.memory_space<vmem>>, %arg23: memref<1x10xf32, #tpu.memory_space<vmem>>, %arg24: memref<1x1x10xf32, #tpu.memory_space<vmem>>) attributes {dimension_semantics = [#tpu.dimension_semantics<parallel>], iteration_bounds = array<i64: 2>, scalar_prefetch = 0 : i64, scratch_operands = 0 : i64, tpu.core_type = #tpu.core_type<tc>, window_params = [{transform_indices = @transform_0, window_bounds = array<i64: 1, 24, 48>}, {pipeline_mode = #tpu.pipeline_mode<synchronous>, transform_indices = @transform_1, window_bounds = array<i64: 24, 32>}, {pipeline_mode = #tpu.pipeline_mode<synchronous>, transform_indices = @transform_2, window_bounds = array<i64: 48, 32>}, {pipeline_mode = #tpu.pipeline_mode<synchronous>, transform_indices = @transform_3, window_bounds = array<i64: 2, 1, 32>}, {pipeline_mode = #tpu.pipeline_mode<synchronous>, transform_indices = @transform_4, window_bounds = array<i64: 2, 1, 32>}, {pipeline_mode = #tpu.pipeline_mode<synchronous>, transform_indices = @transform_5, window_bounds = array<i64: 2, 4, 32, 8>}, {pipeline_mode = #tpu.pipeline_mode<synchronous>, transform_indices = @transform_6, window_bounds = array<i64: 2, 4, 1, 8>}, {pipeline_mode = #tpu.pipeline_mode<synchronous>, transform_indices = @transform_7, window_bounds = array<i64: 2, 4, 32, 8>}, {pipeline_mode = #tpu.pipeline_mode<synchronous>, transform_indices = @transform_8, window_bounds = array<i64: 2, 4, 1, 8>}, {pipeline_mode = #tpu.pipeline_mode<synchronous>, transform_indices = @transform_9, window_bounds = array<i64: 2, 4, 32, 8>}, {pipeline_mode = #tpu.pipeline_mode<synchronous>, transform_indices = @transform_10, window_bounds = array<i64: 2, 4, 1, 8>}, {pipeline_mode = #tpu.pipeline_mode<synchronous>, transform_indices = @transform_11, window_bounds = array<i64: 2, 4, 8, 32>}, {pipeline_mode = #tpu.pipeline_mode<synchronous>, transform_indices = @transform_12, window_bounds = array<i64: 2, 1, 32>}, {pipeline_mode = #tpu.pipeline_mode<synchronous>, transform_indices = @transform_13, window_bounds = array<i64: 2, 1, 32>}, {pipeline_mode = #tpu.pipeline_mode<synchronous>, transform_indices = @transform_14, window_bounds = array<i64: 2, 1, 32>}, {pipeline_mode = #tpu.pipeline_mode<synchronous>, transform_indices = @transform_15, window_bounds = array<i64: 2, 32, 128>}, {pipeline_mode = #tpu.pipeline_mode<synchronous>, transform_indices = @transform_16, window_bounds = array<i64: 2, 1, 128>}, {pipeline_mode = #tpu.pipeline_mode<synchronous>, transform_indices = @transform_17, window_bounds = array<i64: 2, 128, 32>}, {pipeline_mode = #tpu.pipeline_mode<synchronous>, transform_indices = @transform_18, window_bounds = array<i64: 2, 1, 32>}, {pipeline_mode = #tpu.pipeline_mode<synchronous>, transform_indices = @transform_19, window_bounds = array<i64: 1, 32>}, {pipeline_mode = #tpu.pipeline_mode<synchronous>, transform_indices = @transform_20, window_bounds = array<i64: 1, 32>}, {pipeline_mode = #tpu.pipeline_mode<synchronous>, transform_indices = @transform_21, window_bounds = array<i64: 32, 10>}, {pipeline_mode = #tpu.pipeline_mode<synchronous>, transform_indices = @transform_22, window_bounds = array<i64: 1, 10>}, {transform_indices = @transform_23, window_bounds = array<i64: 1, 1, 10>}]} {
    %c0 = arith.constant 0 : index
    %c0_0 = arith.constant 0 : index
    %c0_1 = arith.constant 0 : index
    %0 = vector.load %arg1[%c0, %c0_0, %c0_1] : memref<1x24x48xf32, #tpu.memory_space<vmem>>, vector<1x24x48xf32>
    %1 = vector.shape_cast %0 : vector<1x24x48xf32> to vector<24x48xf32>
    %c0_2 = arith.constant 0 : index
    %c0_3 = arith.constant 0 : index
    %2 = vector.load %arg3[%c0_2, %c0_3] : memref<48x32xf32, #tpu.memory_space<vmem>>, vector<48x32xf32>
    %cst = arith.constant dense<0.000000e+00> : vector<24x32xf32>
    %3 = tpu.matmul %1, %2, %cst {dimension_numbers = #tpu.dot_dimension_numbers<[1], [0], [0], [1], [0, 0, 1, 1], [], []>} : vector<24x48xf32>, vector<48x32xf32>, vector<24x32xf32> -> vector<24x32xf32>
    %c0_4 = arith.constant 0 : index
    %c0_5 = arith.constant 0 : index
    %4 = vector.load %arg2[%c0_4, %c0_5] : memref<24x32xf32, #tpu.memory_space<vmem>>, vector<24x32xf32>
    %5 = arith.addf %3, %4 : vector<24x32xf32>
    %6 = tpu.iota {dimensions = array<i32: 1>} : vector<1x24xi32>
    %c17_i32 = arith.constant 17 : i32
    %7 = vector.broadcast %c17_i32 : i32 to vector<1x24xi32>
    %8 = arith.cmpi slt, %6, %7 : vector<1x24xi32>
    %cst_6 = arith.constant 0.000000e+00 : f32
    %cst_7 = arith.constant -1.000000e+30 : f32
    %9 = vector.broadcast %cst_6 : f32 to vector<1x24xf32>
    %10 = vector.broadcast %cst_7 : f32 to vector<1x24xf32>
    %11 = arith.select %8, %9, %10 : vector<1x24xi1>, vector<1x24xf32>
    %c0_8 = arith.constant 0 : index
    %c0_9 = arith.constant 0 : index
    %c0_10 = arith.constant 0 : index
    %12 = vector.load %arg4[%c0_8, %c0_9, %c0_10] : memref<2x1x32xf32, #tpu.memory_space<vmem>>, vector<1x1x32xf32>
    %13 = vector.shape_cast %12 : vector<1x1x32xf32> to vector<1x32xf32>
    %c0_11 = arith.constant 0 : index
    %c0_12 = arith.constant 0 : index
    %c0_13 = arith.constant 0 : index
    %14 = vector.load %arg5[%c0_11, %c0_12, %c0_13] : memref<2x1x32xf32, #tpu.memory_space<vmem>>, vector<1x1x32xf32>
    %15 = vector.shape_cast %14 : vector<1x1x32xf32> to vector<1x32xf32>
    %cst_14 = arith.constant dense<0.000000e+00> : vector<24xf32>
    %16 = vector.multi_reduction <add>, %5, %cst_14 [1] : vector<24x32xf32> to vector<24xf32>
    %17 = vector.shape_cast %16 : vector<24xf32> to vector<24x1xf32>
    %cst_15 = arith.constant 3.200000e+01 : f32
    %18 = vector.broadcast %cst_15 : f32 to vector<24x1xf32>
    %19 = arith.divf %17, %18 : vector<24x1xf32>
    %20 = vector.broadcast %19 : vector<24x1xf32> to vector<24x32xf32>
    %21 = arith.subf %5, %20 : vector<24x32xf32>
    %22 = arith.mulf %21, %21 : vector<24x32xf32>
    %cst_16 = arith.constant dense<0.000000e+00> : vector<24xf32>
    %23 = vector.multi_reduction <add>, %22, %cst_16 [1] : vector<24x32xf32> to vector<24xf32>
    %24 = vector.shape_cast %23 : vector<24xf32> to vector<24x1xf32>
    %cst_17 = arith.constant 3.200000e+01 : f32
    %25 = vector.broadcast %cst_17 : f32 to vector<24x1xf32>
    %26 = arith.divf %24, %25 : vector<24x1xf32>
    %27 = vector.broadcast %19 : vector<24x1xf32> to vector<24x32xf32>
    %28 = arith.subf %5, %27 : vector<24x32xf32>
    %cst_18 = arith.constant 9.99999997E-7 : f32
    %29 = vector.broadcast %cst_18 : f32 to vector<24x1xf32>
    %30 = arith.addf %26, %29 : vector<24x1xf32>
    %31 = math.rsqrt %30 : vector<24x1xf32>
    %32 = vector.broadcast %31 : vector<24x1xf32> to vector<24x32xf32>
    %33 = arith.mulf %28, %32 : vector<24x32xf32>
    %34 = vector.broadcast %13 : vector<1x32xf32> to vector<24x32xf32>
    %35 = arith.mulf %33, %34 : vector<24x32xf32>
    %36 = vector.broadcast %15 : vector<1x32xf32> to vector<24x32xf32>
    %37 = arith.addf %35, %36 : vector<24x32xf32>
    %c0_19 = arith.constant 0 : index
    %c0_20 = arith.constant 0 : index
    %c0_21 = arith.constant 0 : index
    %38 = vector.load %arg13[%c0_19, %c0_20, %c0_21] : memref<2x1x32xf32, #tpu.memory_space<vmem>>, vector<1x1x32xf32>
    %39 = vector.shape_cast %38 : vector<1x1x32xf32> to vector<1x32xf32>
    %c0_22 = arith.constant 0 : index
    %c0_23 = arith.constant 0 : index
    %c0_24 = arith.constant 0 : index
    %c0_25 = arith.constant 0 : index
    %40 = vector.load %arg6[%c0_22, %c0_23, %c0_24, %c0_25] : memref<2x4x32x8xf32, #tpu.memory_space<vmem>>, vector<1x1x32x8xf32>
    %41 = vector.shape_cast %40 : vector<1x1x32x8xf32> to vector<32x8xf32>
    %cst_26 = arith.constant dense<0.000000e+00> : vector<24x8xf32>
    %42 = tpu.matmul %37, %41, %cst_26 {dimension_numbers = #tpu.dot_dimension_numbers<[1], [0], [0], [1], [0, 0, 1, 1], [], []>} : vector<24x32xf32>, vector<32x8xf32>, vector<24x8xf32> -> vector<24x8xf32>
    %c0_27 = arith.constant 0 : index
    %c0_28 = arith.constant 0 : index
    %c0_29 = arith.constant 0 : index
    %c0_30 = arith.constant 0 : index
    %43 = vector.load %arg7[%c0_27, %c0_28, %c0_29, %c0_30] : memref<2x4x1x8xf32, #tpu.memory_space<vmem>>, vector<1x1x1x8xf32>
    %44 = vector.shape_cast %43 : vector<1x1x1x8xf32> to vector<1x8xf32>
    %45 = vector.broadcast %44 : vector<1x8xf32> to vector<24x8xf32>
    %46 = arith.addf %42, %45 : vector<24x8xf32>
    %c0_31 = arith.constant 0 : index
    %c0_32 = arith.constant 0 : index
    %c0_33 = arith.constant 0 : index
    %c0_34 = arith.constant 0 : index
    %47 = vector.load %arg8[%c0_31, %c0_32, %c0_33, %c0_34] : memref<2x4x32x8xf32, #tpu.memory_space<vmem>>, vector<1x1x32x8xf32>
    %48 = vector.shape_cast %47 : vector<1x1x32x8xf32> to vector<32x8xf32>
    %cst_35 = arith.constant dense<0.000000e+00> : vector<24x8xf32>
    %49 = tpu.matmul %37, %48, %cst_35 {dimension_numbers = #tpu.dot_dimension_numbers<[1], [0], [0], [1], [0, 0, 1, 1], [], []>} : vector<24x32xf32>, vector<32x8xf32>, vector<24x8xf32> -> vector<24x8xf32>
    %c0_36 = arith.constant 0 : index
    %c0_37 = arith.constant 0 : index
    %c0_38 = arith.constant 0 : index
    %c0_39 = arith.constant 0 : index
    %50 = vector.load %arg9[%c0_36, %c0_37, %c0_38, %c0_39] : memref<2x4x1x8xf32, #tpu.memory_space<vmem>>, vector<1x1x1x8xf32>
    %51 = vector.shape_cast %50 : vector<1x1x1x8xf32> to vector<1x8xf32>
    %52 = vector.broadcast %51 : vector<1x8xf32> to vector<24x8xf32>
    %53 = arith.addf %49, %52 : vector<24x8xf32>
    %c0_40 = arith.constant 0 : index
    %c0_41 = arith.constant 0 : index
    %c0_42 = arith.constant 0 : index
    %c0_43 = arith.constant 0 : index
    %54 = vector.load %arg10[%c0_40, %c0_41, %c0_42, %c0_43] : memref<2x4x32x8xf32, #tpu.memory_space<vmem>>, vector<1x1x32x8xf32>
    %55 = vector.shape_cast %54 : vector<1x1x32x8xf32> to vector<32x8xf32>
    %cst_44 = arith.constant dense<0.000000e+00> : vector<24x8xf32>
    %56 = tpu.matmul %37, %55, %cst_44 {dimension_numbers = #tpu.dot_dimension_numbers<[1], [0], [0], [1], [0, 0, 1, 1], [], []>} : vector<24x32xf32>, vector<32x8xf32>, vector<24x8xf32> -> vector<24x8xf32>
    %c0_45 = arith.constant 0 : index
    %c0_46 = arith.constant 0 : index
    %c0_47 = arith.constant 0 : index
    %c0_48 = arith.constant 0 : index
    %57 = vector.load %arg11[%c0_45, %c0_46, %c0_47, %c0_48] : memref<2x4x1x8xf32, #tpu.memory_space<vmem>>, vector<1x1x1x8xf32>
    %58 = vector.shape_cast %57 : vector<1x1x1x8xf32> to vector<1x8xf32>
    %59 = vector.broadcast %58 : vector<1x8xf32> to vector<24x8xf32>
    %60 = arith.addf %56, %59 : vector<24x8xf32>
    %cst_49 = arith.constant dense<0.000000e+00> : vector<24x24xf32>
    %61 = tpu.matmul %46, %53, %cst_49 {dimension_numbers = #tpu.dot_dimension_numbers<[1], [1], [0], [0], [0, 0, 1, 0], [], []>} : vector<24x8xf32>, vector<24x8xf32>, vector<24x24xf32> -> vector<24x24xf32>
    %62 = vector.broadcast %11 : vector<1x24xf32> to vector<24x24xf32>
    %63 = arith.addf %61, %62 : vector<24x24xf32>
    %cst_50 = arith.constant dense<0xFF800000> : vector<24xf32>
    %64 = vector.multi_reduction <maximumf>, %63, %cst_50 [1] : vector<24x24xf32> to vector<24xf32>
    %65 = vector.shape_cast %64 : vector<24xf32> to vector<24x1xf32>
    %66 = vector.broadcast %65 : vector<24x1xf32> to vector<24x24xf32>
    %67 = arith.subf %63, %66 : vector<24x24xf32>
    %68 = math.exp %67 : vector<24x24xf32>
    %cst_51 = arith.constant dense<0.000000e+00> : vector<24xf32>
    %69 = vector.multi_reduction <add>, %68, %cst_51 [1] : vector<24x24xf32> to vector<24xf32>
    %70 = vector.shape_cast %69 : vector<24xf32> to vector<24x1xf32>
    %71 = tpu.reciprocal %70 {approx = true} : vector<24x1xf32> -> vector<24x1xf32>
    %72 = vector.broadcast %71 : vector<24x1xf32> to vector<24x24xf32>
    %73 = arith.mulf %68, %72 : vector<24x24xf32>
    %cst_52 = arith.constant dense<0.000000e+00> : vector<24x8xf32>
    %74 = tpu.matmul %73, %60, %cst_52 {dimension_numbers = #tpu.dot_dimension_numbers<[1], [0], [0], [1], [0, 0, 1, 1], [], []>} : vector<24x24xf32>, vector<24x8xf32>, vector<24x8xf32> -> vector<24x8xf32>
    %c0_53 = arith.constant 0 : index
    %c0_54 = arith.constant 0 : index
    %c0_55 = arith.constant 0 : index
    %c0_56 = arith.constant 0 : index
    %75 = vector.load %arg12[%c0_53, %c0_54, %c0_55, %c0_56] : memref<2x4x8x32xf32, #tpu.memory_space<vmem>>, vector<1x1x8x32xf32>
    %76 = vector.shape_cast %75 : vector<1x1x8x32xf32> to vector<8x32xf32>
    %cst_57 = arith.constant dense<0.000000e+00> : vector<24x32xf32>
    %77 = tpu.matmul %74, %76, %cst_57 {dimension_numbers = #tpu.dot_dimension_numbers<[1], [0], [0], [1], [0, 0, 1, 1], [], []>} : vector<24x8xf32>, vector<8x32xf32>, vector<24x32xf32> -> vector<24x32xf32>
    %78 = vector.broadcast %39 : vector<1x32xf32> to vector<24x32xf32>
    %79 = arith.addf %78, %77 : vector<24x32xf32>
    %c0_58 = arith.constant 0 : index
    %c1 = arith.constant 1 : index
    %c0_59 = arith.constant 0 : index
    %c0_60 = arith.constant 0 : index
    %80 = vector.load %arg6[%c0_58, %c1, %c0_59, %c0_60] : memref<2x4x32x8xf32, #tpu.memory_space<vmem>>, vector<1x1x32x8xf32>
    %81 = vector.shape_cast %80 : vector<1x1x32x8xf32> to vector<32x8xf32>
    %cst_61 = arith.constant dense<0.000000e+00> : vector<24x8xf32>
    %82 = tpu.matmul %37, %81, %cst_61 {dimension_numbers = #tpu.dot_dimension_numbers<[1], [0], [0], [1], [0, 0, 1, 1], [], []>} : vector<24x32xf32>, vector<32x8xf32>, vector<24x8xf32> -> vector<24x8xf32>
    %c0_62 = arith.constant 0 : index
    %c1_63 = arith.constant 1 : index
    %c0_64 = arith.constant 0 : index
    %c0_65 = arith.constant 0 : index
    %83 = vector.load %arg7[%c0_62, %c1_63, %c0_64, %c0_65] : memref<2x4x1x8xf32, #tpu.memory_space<vmem>>, vector<1x1x1x8xf32>
    %84 = vector.shape_cast %83 : vector<1x1x1x8xf32> to vector<1x8xf32>
    %85 = vector.broadcast %84 : vector<1x8xf32> to vector<24x8xf32>
    %86 = arith.addf %82, %85 : vector<24x8xf32>
    %c0_66 = arith.constant 0 : index
    %c1_67 = arith.constant 1 : index
    %c0_68 = arith.constant 0 : index
    %c0_69 = arith.constant 0 : index
    %87 = vector.load %arg8[%c0_66, %c1_67, %c0_68, %c0_69] : memref<2x4x32x8xf32, #tpu.memory_space<vmem>>, vector<1x1x32x8xf32>
    %88 = vector.shape_cast %87 : vector<1x1x32x8xf32> to vector<32x8xf32>
    %cst_70 = arith.constant dense<0.000000e+00> : vector<24x8xf32>
    %89 = tpu.matmul %37, %88, %cst_70 {dimension_numbers = #tpu.dot_dimension_numbers<[1], [0], [0], [1], [0, 0, 1, 1], [], []>} : vector<24x32xf32>, vector<32x8xf32>, vector<24x8xf32> -> vector<24x8xf32>
    %c0_71 = arith.constant 0 : index
    %c1_72 = arith.constant 1 : index
    %c0_73 = arith.constant 0 : index
    %c0_74 = arith.constant 0 : index
    %90 = vector.load %arg9[%c0_71, %c1_72, %c0_73, %c0_74] : memref<2x4x1x8xf32, #tpu.memory_space<vmem>>, vector<1x1x1x8xf32>
    %91 = vector.shape_cast %90 : vector<1x1x1x8xf32> to vector<1x8xf32>
    %92 = vector.broadcast %91 : vector<1x8xf32> to vector<24x8xf32>
    %93 = arith.addf %89, %92 : vector<24x8xf32>
    %c0_75 = arith.constant 0 : index
    %c1_76 = arith.constant 1 : index
    %c0_77 = arith.constant 0 : index
    %c0_78 = arith.constant 0 : index
    %94 = vector.load %arg10[%c0_75, %c1_76, %c0_77, %c0_78] : memref<2x4x32x8xf32, #tpu.memory_space<vmem>>, vector<1x1x32x8xf32>
    %95 = vector.shape_cast %94 : vector<1x1x32x8xf32> to vector<32x8xf32>
    %cst_79 = arith.constant dense<0.000000e+00> : vector<24x8xf32>
    %96 = tpu.matmul %37, %95, %cst_79 {dimension_numbers = #tpu.dot_dimension_numbers<[1], [0], [0], [1], [0, 0, 1, 1], [], []>} : vector<24x32xf32>, vector<32x8xf32>, vector<24x8xf32> -> vector<24x8xf32>
    %c0_80 = arith.constant 0 : index
    %c1_81 = arith.constant 1 : index
    %c0_82 = arith.constant 0 : index
    %c0_83 = arith.constant 0 : index
    %97 = vector.load %arg11[%c0_80, %c1_81, %c0_82, %c0_83] : memref<2x4x1x8xf32, #tpu.memory_space<vmem>>, vector<1x1x1x8xf32>
    %98 = vector.shape_cast %97 : vector<1x1x1x8xf32> to vector<1x8xf32>
    %99 = vector.broadcast %98 : vector<1x8xf32> to vector<24x8xf32>
    %100 = arith.addf %96, %99 : vector<24x8xf32>
    %cst_84 = arith.constant dense<0.000000e+00> : vector<24x24xf32>
    %101 = tpu.matmul %86, %93, %cst_84 {dimension_numbers = #tpu.dot_dimension_numbers<[1], [1], [0], [0], [0, 0, 1, 0], [], []>} : vector<24x8xf32>, vector<24x8xf32>, vector<24x24xf32> -> vector<24x24xf32>
    %102 = vector.broadcast %11 : vector<1x24xf32> to vector<24x24xf32>
    %103 = arith.addf %101, %102 : vector<24x24xf32>
    %cst_85 = arith.constant dense<0xFF800000> : vector<24xf32>
    %104 = vector.multi_reduction <maximumf>, %103, %cst_85 [1] : vector<24x24xf32> to vector<24xf32>
    %105 = vector.shape_cast %104 : vector<24xf32> to vector<24x1xf32>
    %106 = vector.broadcast %105 : vector<24x1xf32> to vector<24x24xf32>
    %107 = arith.subf %103, %106 : vector<24x24xf32>
    %108 = math.exp %107 : vector<24x24xf32>
    %cst_86 = arith.constant dense<0.000000e+00> : vector<24xf32>
    %109 = vector.multi_reduction <add>, %108, %cst_86 [1] : vector<24x24xf32> to vector<24xf32>
    %110 = vector.shape_cast %109 : vector<24xf32> to vector<24x1xf32>
    %111 = tpu.reciprocal %110 {approx = true} : vector<24x1xf32> -> vector<24x1xf32>
    %112 = vector.broadcast %111 : vector<24x1xf32> to vector<24x24xf32>
    %113 = arith.mulf %108, %112 : vector<24x24xf32>
    %cst_87 = arith.constant dense<0.000000e+00> : vector<24x8xf32>
    %114 = tpu.matmul %113, %100, %cst_87 {dimension_numbers = #tpu.dot_dimension_numbers<[1], [0], [0], [1], [0, 0, 1, 1], [], []>} : vector<24x24xf32>, vector<24x8xf32>, vector<24x8xf32> -> vector<24x8xf32>
    %c0_88 = arith.constant 0 : index
    %c1_89 = arith.constant 1 : index
    %c0_90 = arith.constant 0 : index
    %c0_91 = arith.constant 0 : index
    %115 = vector.load %arg12[%c0_88, %c1_89, %c0_90, %c0_91] : memref<2x4x8x32xf32, #tpu.memory_space<vmem>>, vector<1x1x8x32xf32>
    %116 = vector.shape_cast %115 : vector<1x1x8x32xf32> to vector<8x32xf32>
    %cst_92 = arith.constant dense<0.000000e+00> : vector<24x32xf32>
    %117 = tpu.matmul %114, %116, %cst_92 {dimension_numbers = #tpu.dot_dimension_numbers<[1], [0], [0], [1], [0, 0, 1, 1], [], []>} : vector<24x8xf32>, vector<8x32xf32>, vector<24x32xf32> -> vector<24x32xf32>
    %118 = arith.addf %79, %117 : vector<24x32xf32>
    %c0_93 = arith.constant 0 : index
    %c2 = arith.constant 2 : index
    %c0_94 = arith.constant 0 : index
    %c0_95 = arith.constant 0 : index
    %119 = vector.load %arg6[%c0_93, %c2, %c0_94, %c0_95] : memref<2x4x32x8xf32, #tpu.memory_space<vmem>>, vector<1x1x32x8xf32>
    %120 = vector.shape_cast %119 : vector<1x1x32x8xf32> to vector<32x8xf32>
    %cst_96 = arith.constant dense<0.000000e+00> : vector<24x8xf32>
    %121 = tpu.matmul %37, %120, %cst_96 {dimension_numbers = #tpu.dot_dimension_numbers<[1], [0], [0], [1], [0, 0, 1, 1], [], []>} : vector<24x32xf32>, vector<32x8xf32>, vector<24x8xf32> -> vector<24x8xf32>
    %c0_97 = arith.constant 0 : index
    %c2_98 = arith.constant 2 : index
    %c0_99 = arith.constant 0 : index
    %c0_100 = arith.constant 0 : index
    %122 = vector.load %arg7[%c0_97, %c2_98, %c0_99, %c0_100] : memref<2x4x1x8xf32, #tpu.memory_space<vmem>>, vector<1x1x1x8xf32>
    %123 = vector.shape_cast %122 : vector<1x1x1x8xf32> to vector<1x8xf32>
    %124 = vector.broadcast %123 : vector<1x8xf32> to vector<24x8xf32>
    %125 = arith.addf %121, %124 : vector<24x8xf32>
    %c0_101 = arith.constant 0 : index
    %c2_102 = arith.constant 2 : index
    %c0_103 = arith.constant 0 : index
    %c0_104 = arith.constant 0 : index
    %126 = vector.load %arg8[%c0_101, %c2_102, %c0_103, %c0_104] : memref<2x4x32x8xf32, #tpu.memory_space<vmem>>, vector<1x1x32x8xf32>
    %127 = vector.shape_cast %126 : vector<1x1x32x8xf32> to vector<32x8xf32>
    %cst_105 = arith.constant dense<0.000000e+00> : vector<24x8xf32>
    %128 = tpu.matmul %37, %127, %cst_105 {dimension_numbers = #tpu.dot_dimension_numbers<[1], [0], [0], [1], [0, 0, 1, 1], [], []>} : vector<24x32xf32>, vector<32x8xf32>, vector<24x8xf32> -> vector<24x8xf32>
    %c0_106 = arith.constant 0 : index
    %c2_107 = arith.constant 2 : index
    %c0_108 = arith.constant 0 : index
    %c0_109 = arith.constant 0 : index
    %129 = vector.load %arg9[%c0_106, %c2_107, %c0_108, %c0_109] : memref<2x4x1x8xf32, #tpu.memory_space<vmem>>, vector<1x1x1x8xf32>
    %130 = vector.shape_cast %129 : vector<1x1x1x8xf32> to vector<1x8xf32>
    %131 = vector.broadcast %130 : vector<1x8xf32> to vector<24x8xf32>
    %132 = arith.addf %128, %131 : vector<24x8xf32>
    %c0_110 = arith.constant 0 : index
    %c2_111 = arith.constant 2 : index
    %c0_112 = arith.constant 0 : index
    %c0_113 = arith.constant 0 : index
    %133 = vector.load %arg10[%c0_110, %c2_111, %c0_112, %c0_113] : memref<2x4x32x8xf32, #tpu.memory_space<vmem>>, vector<1x1x32x8xf32>
    %134 = vector.shape_cast %133 : vector<1x1x32x8xf32> to vector<32x8xf32>
    %cst_114 = arith.constant dense<0.000000e+00> : vector<24x8xf32>
    %135 = tpu.matmul %37, %134, %cst_114 {dimension_numbers = #tpu.dot_dimension_numbers<[1], [0], [0], [1], [0, 0, 1, 1], [], []>} : vector<24x32xf32>, vector<32x8xf32>, vector<24x8xf32> -> vector<24x8xf32>
    %c0_115 = arith.constant 0 : index
    %c2_116 = arith.constant 2 : index
    %c0_117 = arith.constant 0 : index
    %c0_118 = arith.constant 0 : index
    %136 = vector.load %arg11[%c0_115, %c2_116, %c0_117, %c0_118] : memref<2x4x1x8xf32, #tpu.memory_space<vmem>>, vector<1x1x1x8xf32>
    %137 = vector.shape_cast %136 : vector<1x1x1x8xf32> to vector<1x8xf32>
    %138 = vector.broadcast %137 : vector<1x8xf32> to vector<24x8xf32>
    %139 = arith.addf %135, %138 : vector<24x8xf32>
    %cst_119 = arith.constant dense<0.000000e+00> : vector<24x24xf32>
    %140 = tpu.matmul %125, %132, %cst_119 {dimension_numbers = #tpu.dot_dimension_numbers<[1], [1], [0], [0], [0, 0, 1, 0], [], []>} : vector<24x8xf32>, vector<24x8xf32>, vector<24x24xf32> -> vector<24x24xf32>
    %141 = vector.broadcast %11 : vector<1x24xf32> to vector<24x24xf32>
    %142 = arith.addf %140, %141 : vector<24x24xf32>
    %cst_120 = arith.constant dense<0xFF800000> : vector<24xf32>
    %143 = vector.multi_reduction <maximumf>, %142, %cst_120 [1] : vector<24x24xf32> to vector<24xf32>
    %144 = vector.shape_cast %143 : vector<24xf32> to vector<24x1xf32>
    %145 = vector.broadcast %144 : vector<24x1xf32> to vector<24x24xf32>
    %146 = arith.subf %142, %145 : vector<24x24xf32>
    %147 = math.exp %146 : vector<24x24xf32>
    %cst_121 = arith.constant dense<0.000000e+00> : vector<24xf32>
    %148 = vector.multi_reduction <add>, %147, %cst_121 [1] : vector<24x24xf32> to vector<24xf32>
    %149 = vector.shape_cast %148 : vector<24xf32> to vector<24x1xf32>
    %150 = tpu.reciprocal %149 {approx = true} : vector<24x1xf32> -> vector<24x1xf32>
    %151 = vector.broadcast %150 : vector<24x1xf32> to vector<24x24xf32>
    %152 = arith.mulf %147, %151 : vector<24x24xf32>
    %cst_122 = arith.constant dense<0.000000e+00> : vector<24x8xf32>
    %153 = tpu.matmul %152, %139, %cst_122 {dimension_numbers = #tpu.dot_dimension_numbers<[1], [0], [0], [1], [0, 0, 1, 1], [], []>} : vector<24x24xf32>, vector<24x8xf32>, vector<24x8xf32> -> vector<24x8xf32>
    %c0_123 = arith.constant 0 : index
    %c2_124 = arith.constant 2 : index
    %c0_125 = arith.constant 0 : index
    %c0_126 = arith.constant 0 : index
    %154 = vector.load %arg12[%c0_123, %c2_124, %c0_125, %c0_126] : memref<2x4x8x32xf32, #tpu.memory_space<vmem>>, vector<1x1x8x32xf32>
    %155 = vector.shape_cast %154 : vector<1x1x8x32xf32> to vector<8x32xf32>
    %cst_127 = arith.constant dense<0.000000e+00> : vector<24x32xf32>
    %156 = tpu.matmul %153, %155, %cst_127 {dimension_numbers = #tpu.dot_dimension_numbers<[1], [0], [0], [1], [0, 0, 1, 1], [], []>} : vector<24x8xf32>, vector<8x32xf32>, vector<24x32xf32> -> vector<24x32xf32>
    %157 = arith.addf %118, %156 : vector<24x32xf32>
    %c0_128 = arith.constant 0 : index
    %c3 = arith.constant 3 : index
    %c0_129 = arith.constant 0 : index
    %c0_130 = arith.constant 0 : index
    %158 = vector.load %arg6[%c0_128, %c3, %c0_129, %c0_130] : memref<2x4x32x8xf32, #tpu.memory_space<vmem>>, vector<1x1x32x8xf32>
    %159 = vector.shape_cast %158 : vector<1x1x32x8xf32> to vector<32x8xf32>
    %cst_131 = arith.constant dense<0.000000e+00> : vector<24x8xf32>
    %160 = tpu.matmul %37, %159, %cst_131 {dimension_numbers = #tpu.dot_dimension_numbers<[1], [0], [0], [1], [0, 0, 1, 1], [], []>} : vector<24x32xf32>, vector<32x8xf32>, vector<24x8xf32> -> vector<24x8xf32>
    %c0_132 = arith.constant 0 : index
    %c3_133 = arith.constant 3 : index
    %c0_134 = arith.constant 0 : index
    %c0_135 = arith.constant 0 : index
    %161 = vector.load %arg7[%c0_132, %c3_133, %c0_134, %c0_135] : memref<2x4x1x8xf32, #tpu.memory_space<vmem>>, vector<1x1x1x8xf32>
    %162 = vector.shape_cast %161 : vector<1x1x1x8xf32> to vector<1x8xf32>
    %163 = vector.broadcast %162 : vector<1x8xf32> to vector<24x8xf32>
    %164 = arith.addf %160, %163 : vector<24x8xf32>
    %c0_136 = arith.constant 0 : index
    %c3_137 = arith.constant 3 : index
    %c0_138 = arith.constant 0 : index
    %c0_139 = arith.constant 0 : index
    %165 = vector.load %arg8[%c0_136, %c3_137, %c0_138, %c0_139] : memref<2x4x32x8xf32, #tpu.memory_space<vmem>>, vector<1x1x32x8xf32>
    %166 = vector.shape_cast %165 : vector<1x1x32x8xf32> to vector<32x8xf32>
    %cst_140 = arith.constant dense<0.000000e+00> : vector<24x8xf32>
    %167 = tpu.matmul %37, %166, %cst_140 {dimension_numbers = #tpu.dot_dimension_numbers<[1], [0], [0], [1], [0, 0, 1, 1], [], []>} : vector<24x32xf32>, vector<32x8xf32>, vector<24x8xf32> -> vector<24x8xf32>
    %c0_141 = arith.constant 0 : index
    %c3_142 = arith.constant 3 : index
    %c0_143 = arith.constant 0 : index
    %c0_144 = arith.constant 0 : index
    %168 = vector.load %arg9[%c0_141, %c3_142, %c0_143, %c0_144] : memref<2x4x1x8xf32, #tpu.memory_space<vmem>>, vector<1x1x1x8xf32>
    %169 = vector.shape_cast %168 : vector<1x1x1x8xf32> to vector<1x8xf32>
    %170 = vector.broadcast %169 : vector<1x8xf32> to vector<24x8xf32>
    %171 = arith.addf %167, %170 : vector<24x8xf32>
    %c0_145 = arith.constant 0 : index
    %c3_146 = arith.constant 3 : index
    %c0_147 = arith.constant 0 : index
    %c0_148 = arith.constant 0 : index
    %172 = vector.load %arg10[%c0_145, %c3_146, %c0_147, %c0_148] : memref<2x4x32x8xf32, #tpu.memory_space<vmem>>, vector<1x1x32x8xf32>
    %173 = vector.shape_cast %172 : vector<1x1x32x8xf32> to vector<32x8xf32>
    %cst_149 = arith.constant dense<0.000000e+00> : vector<24x8xf32>
    %174 = tpu.matmul %37, %173, %cst_149 {dimension_numbers = #tpu.dot_dimension_numbers<[1], [0], [0], [1], [0, 0, 1, 1], [], []>} : vector<24x32xf32>, vector<32x8xf32>, vector<24x8xf32> -> vector<24x8xf32>
    %c0_150 = arith.constant 0 : index
    %c3_151 = arith.constant 3 : index
    %c0_152 = arith.constant 0 : index
    %c0_153 = arith.constant 0 : index
    %175 = vector.load %arg11[%c0_150, %c3_151, %c0_152, %c0_153] : memref<2x4x1x8xf32, #tpu.memory_space<vmem>>, vector<1x1x1x8xf32>
    %176 = vector.shape_cast %175 : vector<1x1x1x8xf32> to vector<1x8xf32>
    %177 = vector.broadcast %176 : vector<1x8xf32> to vector<24x8xf32>
    %178 = arith.addf %174, %177 : vector<24x8xf32>
    %cst_154 = arith.constant dense<0.000000e+00> : vector<24x24xf32>
    %179 = tpu.matmul %164, %171, %cst_154 {dimension_numbers = #tpu.dot_dimension_numbers<[1], [1], [0], [0], [0, 0, 1, 0], [], []>} : vector<24x8xf32>, vector<24x8xf32>, vector<24x24xf32> -> vector<24x24xf32>
    %180 = vector.broadcast %11 : vector<1x24xf32> to vector<24x24xf32>
    %181 = arith.addf %179, %180 : vector<24x24xf32>
    %cst_155 = arith.constant dense<0xFF800000> : vector<24xf32>
    %182 = vector.multi_reduction <maximumf>, %181, %cst_155 [1] : vector<24x24xf32> to vector<24xf32>
    %183 = vector.shape_cast %182 : vector<24xf32> to vector<24x1xf32>
    %184 = vector.broadcast %183 : vector<24x1xf32> to vector<24x24xf32>
    %185 = arith.subf %181, %184 : vector<24x24xf32>
    %186 = math.exp %185 : vector<24x24xf32>
    %cst_156 = arith.constant dense<0.000000e+00> : vector<24xf32>
    %187 = vector.multi_reduction <add>, %186, %cst_156 [1] : vector<24x24xf32> to vector<24xf32>
    %188 = vector.shape_cast %187 : vector<24xf32> to vector<24x1xf32>
    %189 = tpu.reciprocal %188 {approx = true} : vector<24x1xf32> -> vector<24x1xf32>
    %190 = vector.broadcast %189 : vector<24x1xf32> to vector<24x24xf32>
    %191 = arith.mulf %186, %190 : vector<24x24xf32>
    %cst_157 = arith.constant dense<0.000000e+00> : vector<24x8xf32>
    %192 = tpu.matmul %191, %178, %cst_157 {dimension_numbers = #tpu.dot_dimension_numbers<[1], [0], [0], [1], [0, 0, 1, 1], [], []>} : vector<24x24xf32>, vector<24x8xf32>, vector<24x8xf32> -> vector<24x8xf32>
    %c0_158 = arith.constant 0 : index
    %c3_159 = arith.constant 3 : index
    %c0_160 = arith.constant 0 : index
    %c0_161 = arith.constant 0 : index
    %193 = vector.load %arg12[%c0_158, %c3_159, %c0_160, %c0_161] : memref<2x4x8x32xf32, #tpu.memory_space<vmem>>, vector<1x1x8x32xf32>
    %194 = vector.shape_cast %193 : vector<1x1x8x32xf32> to vector<8x32xf32>
    %cst_162 = arith.constant dense<0.000000e+00> : vector<24x32xf32>
    %195 = tpu.matmul %192, %194, %cst_162 {dimension_numbers = #tpu.dot_dimension_numbers<[1], [0], [0], [1], [0, 0, 1, 1], [], []>} : vector<24x8xf32>, vector<8x32xf32>, vector<24x32xf32> -> vector<24x32xf32>
    %196 = arith.addf %157, %195 : vector<24x32xf32>
    %197 = arith.addf %5, %196 : vector<24x32xf32>
    %c0_163 = arith.constant 0 : index
    %c0_164 = arith.constant 0 : index
    %c0_165 = arith.constant 0 : index
    %198 = vector.load %arg14[%c0_163, %c0_164, %c0_165] : memref<2x1x32xf32, #tpu.memory_space<vmem>>, vector<1x1x32xf32>
    %199 = vector.shape_cast %198 : vector<1x1x32xf32> to vector<1x32xf32>
    %c0_166 = arith.constant 0 : index
    %c0_167 = arith.constant 0 : index
    %c0_168 = arith.constant 0 : index
    %200 = vector.load %arg15[%c0_166, %c0_167, %c0_168] : memref<2x1x32xf32, #tpu.memory_space<vmem>>, vector<1x1x32xf32>
    %201 = vector.shape_cast %200 : vector<1x1x32xf32> to vector<1x32xf32>
    %cst_169 = arith.constant dense<0.000000e+00> : vector<24xf32>
    %202 = vector.multi_reduction <add>, %197, %cst_169 [1] : vector<24x32xf32> to vector<24xf32>
    %203 = vector.shape_cast %202 : vector<24xf32> to vector<24x1xf32>
    %cst_170 = arith.constant 3.200000e+01 : f32
    %204 = vector.broadcast %cst_170 : f32 to vector<24x1xf32>
    %205 = arith.divf %203, %204 : vector<24x1xf32>
    %206 = vector.broadcast %205 : vector<24x1xf32> to vector<24x32xf32>
    %207 = arith.subf %197, %206 : vector<24x32xf32>
    %208 = arith.mulf %207, %207 : vector<24x32xf32>
    %cst_171 = arith.constant dense<0.000000e+00> : vector<24xf32>
    %209 = vector.multi_reduction <add>, %208, %cst_171 [1] : vector<24x32xf32> to vector<24xf32>
    %210 = vector.shape_cast %209 : vector<24xf32> to vector<24x1xf32>
    %cst_172 = arith.constant 3.200000e+01 : f32
    %211 = vector.broadcast %cst_172 : f32 to vector<24x1xf32>
    %212 = arith.divf %210, %211 : vector<24x1xf32>
    %213 = vector.broadcast %205 : vector<24x1xf32> to vector<24x32xf32>
    %214 = arith.subf %197, %213 : vector<24x32xf32>
    %cst_173 = arith.constant 9.99999997E-7 : f32
    %215 = vector.broadcast %cst_173 : f32 to vector<24x1xf32>
    %216 = arith.addf %212, %215 : vector<24x1xf32>
    %217 = math.rsqrt %216 : vector<24x1xf32>
    %218 = vector.broadcast %217 : vector<24x1xf32> to vector<24x32xf32>
    %219 = arith.mulf %214, %218 : vector<24x32xf32>
    %220 = vector.broadcast %199 : vector<1x32xf32> to vector<24x32xf32>
    %221 = arith.mulf %219, %220 : vector<24x32xf32>
    %222 = vector.broadcast %201 : vector<1x32xf32> to vector<24x32xf32>
    %223 = arith.addf %221, %222 : vector<24x32xf32>
    %c0_174 = arith.constant 0 : index
    %c0_175 = arith.constant 0 : index
    %c0_176 = arith.constant 0 : index
    %224 = vector.load %arg16[%c0_174, %c0_175, %c0_176] : memref<2x32x128xf32, #tpu.memory_space<vmem>>, vector<1x32x128xf32>
    %225 = vector.shape_cast %224 : vector<1x32x128xf32> to vector<32x128xf32>
    %cst_177 = arith.constant dense<0.000000e+00> : vector<24x128xf32>
    %226 = tpu.matmul %223, %225, %cst_177 {dimension_numbers = #tpu.dot_dimension_numbers<[1], [0], [0], [1], [0, 0, 1, 1], [], []>} : vector<24x32xf32>, vector<32x128xf32>, vector<24x128xf32> -> vector<24x128xf32>
    %c0_178 = arith.constant 0 : index
    %c0_179 = arith.constant 0 : index
    %c0_180 = arith.constant 0 : index
    %227 = vector.load %arg17[%c0_178, %c0_179, %c0_180] : memref<2x1x128xf32, #tpu.memory_space<vmem>>, vector<1x1x128xf32>
    %228 = vector.shape_cast %227 : vector<1x1x128xf32> to vector<1x128xf32>
    %229 = vector.broadcast %228 : vector<1x128xf32> to vector<24x128xf32>
    %230 = arith.addf %226, %229 : vector<24x128xf32>
    %cst_181 = arith.constant 5.000000e-01 : f32
    %231 = vector.broadcast %cst_181 : f32 to vector<24x128xf32>
    %232 = arith.mulf %231, %230 : vector<24x128xf32>
    %233 = arith.mulf %230, %230 : vector<24x128xf32>
    %234 = arith.mulf %233, %230 : vector<24x128xf32>
    %cst_182 = arith.constant 4.471500e-02 : f32
    %235 = vector.broadcast %cst_182 : f32 to vector<24x128xf32>
    %236 = arith.mulf %235, %234 : vector<24x128xf32>
    %237 = arith.addf %230, %236 : vector<24x128xf32>
    %cst_183 = arith.constant 0.797884583 : f32
    %238 = vector.broadcast %cst_183 : f32 to vector<24x128xf32>
    %239 = arith.mulf %238, %237 : vector<24x128xf32>
    %240 = math.tanh %239 : vector<24x128xf32>
    %cst_184 = arith.constant 1.000000e+00 : f32
    %241 = vector.broadcast %cst_184 : f32 to vector<24x128xf32>
    %242 = arith.addf %241, %240 : vector<24x128xf32>
    %243 = arith.mulf %232, %242 : vector<24x128xf32>
    %c0_185 = arith.constant 0 : index
    %c0_186 = arith.constant 0 : index
    %c0_187 = arith.constant 0 : index
    %244 = vector.load %arg18[%c0_185, %c0_186, %c0_187] : memref<2x128x32xf32, #tpu.memory_space<vmem>>, vector<1x128x32xf32>
    %245 = vector.shape_cast %244 : vector<1x128x32xf32> to vector<128x32xf32>
    %cst_188 = arith.constant dense<0.000000e+00> : vector<24x32xf32>
    %246 = tpu.matmul %243, %245, %cst_188 {dimension_numbers = #tpu.dot_dimension_numbers<[1], [0], [0], [1], [0, 0, 1, 1], [], []>} : vector<24x128xf32>, vector<128x32xf32>, vector<24x32xf32> -> vector<24x32xf32>
    %247 = arith.addf %197, %246 : vector<24x32xf32>
    %c0_189 = arith.constant 0 : index
    %c0_190 = arith.constant 0 : index
    %c0_191 = arith.constant 0 : index
    %248 = vector.load %arg19[%c0_189, %c0_190, %c0_191] : memref<2x1x32xf32, #tpu.memory_space<vmem>>, vector<1x1x32xf32>
    %249 = vector.shape_cast %248 : vector<1x1x32xf32> to vector<1x32xf32>
    %250 = vector.broadcast %249 : vector<1x32xf32> to vector<24x32xf32>
    %251 = arith.addf %247, %250 : vector<24x32xf32>
    %c1_192 = arith.constant 1 : index
    %c0_193 = arith.constant 0 : index
    %c0_194 = arith.constant 0 : index
    %252 = vector.load %arg4[%c1_192, %c0_193, %c0_194] : memref<2x1x32xf32, #tpu.memory_space<vmem>>, vector<1x1x32xf32>
    %253 = vector.shape_cast %252 : vector<1x1x32xf32> to vector<1x32xf32>
    %c1_195 = arith.constant 1 : index
    %c0_196 = arith.constant 0 : index
    %c0_197 = arith.constant 0 : index
    %254 = vector.load %arg5[%c1_195, %c0_196, %c0_197] : memref<2x1x32xf32, #tpu.memory_space<vmem>>, vector<1x1x32xf32>
    %255 = vector.shape_cast %254 : vector<1x1x32xf32> to vector<1x32xf32>
    %cst_198 = arith.constant dense<0.000000e+00> : vector<24xf32>
    %256 = vector.multi_reduction <add>, %251, %cst_198 [1] : vector<24x32xf32> to vector<24xf32>
    %257 = vector.shape_cast %256 : vector<24xf32> to vector<24x1xf32>
    %cst_199 = arith.constant 3.200000e+01 : f32
    %258 = vector.broadcast %cst_199 : f32 to vector<24x1xf32>
    %259 = arith.divf %257, %258 : vector<24x1xf32>
    %260 = vector.broadcast %259 : vector<24x1xf32> to vector<24x32xf32>
    %261 = arith.subf %251, %260 : vector<24x32xf32>
    %262 = arith.mulf %261, %261 : vector<24x32xf32>
    %cst_200 = arith.constant dense<0.000000e+00> : vector<24xf32>
    %263 = vector.multi_reduction <add>, %262, %cst_200 [1] : vector<24x32xf32> to vector<24xf32>
    %264 = vector.shape_cast %263 : vector<24xf32> to vector<24x1xf32>
    %cst_201 = arith.constant 3.200000e+01 : f32
    %265 = vector.broadcast %cst_201 : f32 to vector<24x1xf32>
    %266 = arith.divf %264, %265 : vector<24x1xf32>
    %267 = vector.broadcast %259 : vector<24x1xf32> to vector<24x32xf32>
    %268 = arith.subf %251, %267 : vector<24x32xf32>
    %cst_202 = arith.constant 9.99999997E-7 : f32
    %269 = vector.broadcast %cst_202 : f32 to vector<24x1xf32>
    %270 = arith.addf %266, %269 : vector<24x1xf32>
    %271 = math.rsqrt %270 : vector<24x1xf32>
    %272 = vector.broadcast %271 : vector<24x1xf32> to vector<24x32xf32>
    %273 = arith.mulf %268, %272 : vector<24x32xf32>
    %274 = vector.broadcast %253 : vector<1x32xf32> to vector<24x32xf32>
    %275 = arith.mulf %273, %274 : vector<24x32xf32>
    %276 = vector.broadcast %255 : vector<1x32xf32> to vector<24x32xf32>
    %277 = arith.addf %275, %276 : vector<24x32xf32>
    %c1_203 = arith.constant 1 : index
    %c0_204 = arith.constant 0 : index
    %c0_205 = arith.constant 0 : index
    %278 = vector.load %arg13[%c1_203, %c0_204, %c0_205] : memref<2x1x32xf32, #tpu.memory_space<vmem>>, vector<1x1x32xf32>
    %279 = vector.shape_cast %278 : vector<1x1x32xf32> to vector<1x32xf32>
    %c1_206 = arith.constant 1 : index
    %c0_207 = arith.constant 0 : index
    %c0_208 = arith.constant 0 : index
    %c0_209 = arith.constant 0 : index
    %280 = vector.load %arg6[%c1_206, %c0_207, %c0_208, %c0_209] : memref<2x4x32x8xf32, #tpu.memory_space<vmem>>, vector<1x1x32x8xf32>
    %281 = vector.shape_cast %280 : vector<1x1x32x8xf32> to vector<32x8xf32>
    %cst_210 = arith.constant dense<0.000000e+00> : vector<24x8xf32>
    %282 = tpu.matmul %277, %281, %cst_210 {dimension_numbers = #tpu.dot_dimension_numbers<[1], [0], [0], [1], [0, 0, 1, 1], [], []>} : vector<24x32xf32>, vector<32x8xf32>, vector<24x8xf32> -> vector<24x8xf32>
    %c1_211 = arith.constant 1 : index
    %c0_212 = arith.constant 0 : index
    %c0_213 = arith.constant 0 : index
    %c0_214 = arith.constant 0 : index
    %283 = vector.load %arg7[%c1_211, %c0_212, %c0_213, %c0_214] : memref<2x4x1x8xf32, #tpu.memory_space<vmem>>, vector<1x1x1x8xf32>
    %284 = vector.shape_cast %283 : vector<1x1x1x8xf32> to vector<1x8xf32>
    %285 = vector.broadcast %284 : vector<1x8xf32> to vector<24x8xf32>
    %286 = arith.addf %282, %285 : vector<24x8xf32>
    %c1_215 = arith.constant 1 : index
    %c0_216 = arith.constant 0 : index
    %c0_217 = arith.constant 0 : index
    %c0_218 = arith.constant 0 : index
    %287 = vector.load %arg8[%c1_215, %c0_216, %c0_217, %c0_218] : memref<2x4x32x8xf32, #tpu.memory_space<vmem>>, vector<1x1x32x8xf32>
    %288 = vector.shape_cast %287 : vector<1x1x32x8xf32> to vector<32x8xf32>
    %cst_219 = arith.constant dense<0.000000e+00> : vector<24x8xf32>
    %289 = tpu.matmul %277, %288, %cst_219 {dimension_numbers = #tpu.dot_dimension_numbers<[1], [0], [0], [1], [0, 0, 1, 1], [], []>} : vector<24x32xf32>, vector<32x8xf32>, vector<24x8xf32> -> vector<24x8xf32>
    %c1_220 = arith.constant 1 : index
    %c0_221 = arith.constant 0 : index
    %c0_222 = arith.constant 0 : index
    %c0_223 = arith.constant 0 : index
    %290 = vector.load %arg9[%c1_220, %c0_221, %c0_222, %c0_223] : memref<2x4x1x8xf32, #tpu.memory_space<vmem>>, vector<1x1x1x8xf32>
    %291 = vector.shape_cast %290 : vector<1x1x1x8xf32> to vector<1x8xf32>
    %292 = vector.broadcast %291 : vector<1x8xf32> to vector<24x8xf32>
    %293 = arith.addf %289, %292 : vector<24x8xf32>
    %c1_224 = arith.constant 1 : index
    %c0_225 = arith.constant 0 : index
    %c0_226 = arith.constant 0 : index
    %c0_227 = arith.constant 0 : index
    %294 = vector.load %arg10[%c1_224, %c0_225, %c0_226, %c0_227] : memref<2x4x32x8xf32, #tpu.memory_space<vmem>>, vector<1x1x32x8xf32>
    %295 = vector.shape_cast %294 : vector<1x1x32x8xf32> to vector<32x8xf32>
    %cst_228 = arith.constant dense<0.000000e+00> : vector<24x8xf32>
    %296 = tpu.matmul %277, %295, %cst_228 {dimension_numbers = #tpu.dot_dimension_numbers<[1], [0], [0], [1], [0, 0, 1, 1], [], []>} : vector<24x32xf32>, vector<32x8xf32>, vector<24x8xf32> -> vector<24x8xf32>
    %c1_229 = arith.constant 1 : index
    %c0_230 = arith.constant 0 : index
    %c0_231 = arith.constant 0 : index
    %c0_232 = arith.constant 0 : index
    %297 = vector.load %arg11[%c1_229, %c0_230, %c0_231, %c0_232] : memref<2x4x1x8xf32, #tpu.memory_space<vmem>>, vector<1x1x1x8xf32>
    %298 = vector.shape_cast %297 : vector<1x1x1x8xf32> to vector<1x8xf32>
    %299 = vector.broadcast %298 : vector<1x8xf32> to vector<24x8xf32>
    %300 = arith.addf %296, %299 : vector<24x8xf32>
    %cst_233 = arith.constant dense<0.000000e+00> : vector<24x24xf32>
    %301 = tpu.matmul %286, %293, %cst_233 {dimension_numbers = #tpu.dot_dimension_numbers<[1], [1], [0], [0], [0, 0, 1, 0], [], []>} : vector<24x8xf32>, vector<24x8xf32>, vector<24x24xf32> -> vector<24x24xf32>
    %302 = vector.broadcast %11 : vector<1x24xf32> to vector<24x24xf32>
    %303 = arith.addf %301, %302 : vector<24x24xf32>
    %cst_234 = arith.constant dense<0xFF800000> : vector<24xf32>
    %304 = vector.multi_reduction <maximumf>, %303, %cst_234 [1] : vector<24x24xf32> to vector<24xf32>
    %305 = vector.shape_cast %304 : vector<24xf32> to vector<24x1xf32>
    %306 = vector.broadcast %305 : vector<24x1xf32> to vector<24x24xf32>
    %307 = arith.subf %303, %306 : vector<24x24xf32>
    %308 = math.exp %307 : vector<24x24xf32>
    %cst_235 = arith.constant dense<0.000000e+00> : vector<24xf32>
    %309 = vector.multi_reduction <add>, %308, %cst_235 [1] : vector<24x24xf32> to vector<24xf32>
    %310 = vector.shape_cast %309 : vector<24xf32> to vector<24x1xf32>
    %311 = tpu.reciprocal %310 {approx = true} : vector<24x1xf32> -> vector<24x1xf32>
    %312 = vector.broadcast %311 : vector<24x1xf32> to vector<24x24xf32>
    %313 = arith.mulf %308, %312 : vector<24x24xf32>
    %cst_236 = arith.constant dense<0.000000e+00> : vector<24x8xf32>
    %314 = tpu.matmul %313, %300, %cst_236 {dimension_numbers = #tpu.dot_dimension_numbers<[1], [0], [0], [1], [0, 0, 1, 1], [], []>} : vector<24x24xf32>, vector<24x8xf32>, vector<24x8xf32> -> vector<24x8xf32>
    %c1_237 = arith.constant 1 : index
    %c0_238 = arith.constant 0 : index
    %c0_239 = arith.constant 0 : index
    %c0_240 = arith.constant 0 : index
    %315 = vector.load %arg12[%c1_237, %c0_238, %c0_239, %c0_240] : memref<2x4x8x32xf32, #tpu.memory_space<vmem>>, vector<1x1x8x32xf32>
    %316 = vector.shape_cast %315 : vector<1x1x8x32xf32> to vector<8x32xf32>
    %cst_241 = arith.constant dense<0.000000e+00> : vector<24x32xf32>
    %317 = tpu.matmul %314, %316, %cst_241 {dimension_numbers = #tpu.dot_dimension_numbers<[1], [0], [0], [1], [0, 0, 1, 1], [], []>} : vector<24x8xf32>, vector<8x32xf32>, vector<24x32xf32> -> vector<24x32xf32>
    %318 = vector.broadcast %279 : vector<1x32xf32> to vector<24x32xf32>
    %319 = arith.addf %318, %317 : vector<24x32xf32>
    %c1_242 = arith.constant 1 : index
    %c1_243 = arith.constant 1 : index
    %c0_244 = arith.constant 0 : index
    %c0_245 = arith.constant 0 : index
    %320 = vector.load %arg6[%c1_242, %c1_243, %c0_244, %c0_245] : memref<2x4x32x8xf32, #tpu.memory_space<vmem>>, vector<1x1x32x8xf32>
    %321 = vector.shape_cast %320 : vector<1x1x32x8xf32> to vector<32x8xf32>
    %cst_246 = arith.constant dense<0.000000e+00> : vector<24x8xf32>
    %322 = tpu.matmul %277, %321, %cst_246 {dimension_numbers = #tpu.dot_dimension_numbers<[1], [0], [0], [1], [0, 0, 1, 1], [], []>} : vector<24x32xf32>, vector<32x8xf32>, vector<24x8xf32> -> vector<24x8xf32>
    %c1_247 = arith.constant 1 : index
    %c1_248 = arith.constant 1 : index
    %c0_249 = arith.constant 0 : index
    %c0_250 = arith.constant 0 : index
    %323 = vector.load %arg7[%c1_247, %c1_248, %c0_249, %c0_250] : memref<2x4x1x8xf32, #tpu.memory_space<vmem>>, vector<1x1x1x8xf32>
    %324 = vector.shape_cast %323 : vector<1x1x1x8xf32> to vector<1x8xf32>
    %325 = vector.broadcast %324 : vector<1x8xf32> to vector<24x8xf32>
    %326 = arith.addf %322, %325 : vector<24x8xf32>
    %c1_251 = arith.constant 1 : index
    %c1_252 = arith.constant 1 : index
    %c0_253 = arith.constant 0 : index
    %c0_254 = arith.constant 0 : index
    %327 = vector.load %arg8[%c1_251, %c1_252, %c0_253, %c0_254] : memref<2x4x32x8xf32, #tpu.memory_space<vmem>>, vector<1x1x32x8xf32>
    %328 = vector.shape_cast %327 : vector<1x1x32x8xf32> to vector<32x8xf32>
    %cst_255 = arith.constant dense<0.000000e+00> : vector<24x8xf32>
    %329 = tpu.matmul %277, %328, %cst_255 {dimension_numbers = #tpu.dot_dimension_numbers<[1], [0], [0], [1], [0, 0, 1, 1], [], []>} : vector<24x32xf32>, vector<32x8xf32>, vector<24x8xf32> -> vector<24x8xf32>
    %c1_256 = arith.constant 1 : index
    %c1_257 = arith.constant 1 : index
    %c0_258 = arith.constant 0 : index
    %c0_259 = arith.constant 0 : index
    %330 = vector.load %arg9[%c1_256, %c1_257, %c0_258, %c0_259] : memref<2x4x1x8xf32, #tpu.memory_space<vmem>>, vector<1x1x1x8xf32>
    %331 = vector.shape_cast %330 : vector<1x1x1x8xf32> to vector<1x8xf32>
    %332 = vector.broadcast %331 : vector<1x8xf32> to vector<24x8xf32>
    %333 = arith.addf %329, %332 : vector<24x8xf32>
    %c1_260 = arith.constant 1 : index
    %c1_261 = arith.constant 1 : index
    %c0_262 = arith.constant 0 : index
    %c0_263 = arith.constant 0 : index
    %334 = vector.load %arg10[%c1_260, %c1_261, %c0_262, %c0_263] : memref<2x4x32x8xf32, #tpu.memory_space<vmem>>, vector<1x1x32x8xf32>
    %335 = vector.shape_cast %334 : vector<1x1x32x8xf32> to vector<32x8xf32>
    %cst_264 = arith.constant dense<0.000000e+00> : vector<24x8xf32>
    %336 = tpu.matmul %277, %335, %cst_264 {dimension_numbers = #tpu.dot_dimension_numbers<[1], [0], [0], [1], [0, 0, 1, 1], [], []>} : vector<24x32xf32>, vector<32x8xf32>, vector<24x8xf32> -> vector<24x8xf32>
    %c1_265 = arith.constant 1 : index
    %c1_266 = arith.constant 1 : index
    %c0_267 = arith.constant 0 : index
    %c0_268 = arith.constant 0 : index
    %337 = vector.load %arg11[%c1_265, %c1_266, %c0_267, %c0_268] : memref<2x4x1x8xf32, #tpu.memory_space<vmem>>, vector<1x1x1x8xf32>
    %338 = vector.shape_cast %337 : vector<1x1x1x8xf32> to vector<1x8xf32>
    %339 = vector.broadcast %338 : vector<1x8xf32> to vector<24x8xf32>
    %340 = arith.addf %336, %339 : vector<24x8xf32>
    %cst_269 = arith.constant dense<0.000000e+00> : vector<24x24xf32>
    %341 = tpu.matmul %326, %333, %cst_269 {dimension_numbers = #tpu.dot_dimension_numbers<[1], [1], [0], [0], [0, 0, 1, 0], [], []>} : vector<24x8xf32>, vector<24x8xf32>, vector<24x24xf32> -> vector<24x24xf32>
    %342 = vector.broadcast %11 : vector<1x24xf32> to vector<24x24xf32>
    %343 = arith.addf %341, %342 : vector<24x24xf32>
    %cst_270 = arith.constant dense<0xFF800000> : vector<24xf32>
    %344 = vector.multi_reduction <maximumf>, %343, %cst_270 [1] : vector<24x24xf32> to vector<24xf32>
    %345 = vector.shape_cast %344 : vector<24xf32> to vector<24x1xf32>
    %346 = vector.broadcast %345 : vector<24x1xf32> to vector<24x24xf32>
    %347 = arith.subf %343, %346 : vector<24x24xf32>
    %348 = math.exp %347 : vector<24x24xf32>
    %cst_271 = arith.constant dense<0.000000e+00> : vector<24xf32>
    %349 = vector.multi_reduction <add>, %348, %cst_271 [1] : vector<24x24xf32> to vector<24xf32>
    %350 = vector.shape_cast %349 : vector<24xf32> to vector<24x1xf32>
    %351 = tpu.reciprocal %350 {approx = true} : vector<24x1xf32> -> vector<24x1xf32>
    %352 = vector.broadcast %351 : vector<24x1xf32> to vector<24x24xf32>
    %353 = arith.mulf %348, %352 : vector<24x24xf32>
    %cst_272 = arith.constant dense<0.000000e+00> : vector<24x8xf32>
    %354 = tpu.matmul %353, %340, %cst_272 {dimension_numbers = #tpu.dot_dimension_numbers<[1], [0], [0], [1], [0, 0, 1, 1], [], []>} : vector<24x24xf32>, vector<24x8xf32>, vector<24x8xf32> -> vector<24x8xf32>
    %c1_273 = arith.constant 1 : index
    %c1_274 = arith.constant 1 : index
    %c0_275 = arith.constant 0 : index
    %c0_276 = arith.constant 0 : index
    %355 = vector.load %arg12[%c1_273, %c1_274, %c0_275, %c0_276] : memref<2x4x8x32xf32, #tpu.memory_space<vmem>>, vector<1x1x8x32xf32>
    %356 = vector.shape_cast %355 : vector<1x1x8x32xf32> to vector<8x32xf32>
    %cst_277 = arith.constant dense<0.000000e+00> : vector<24x32xf32>
    %357 = tpu.matmul %354, %356, %cst_277 {dimension_numbers = #tpu.dot_dimension_numbers<[1], [0], [0], [1], [0, 0, 1, 1], [], []>} : vector<24x8xf32>, vector<8x32xf32>, vector<24x32xf32> -> vector<24x32xf32>
    %358 = arith.addf %319, %357 : vector<24x32xf32>
    %c1_278 = arith.constant 1 : index
    %c2_279 = arith.constant 2 : index
    %c0_280 = arith.constant 0 : index
    %c0_281 = arith.constant 0 : index
    %359 = vector.load %arg6[%c1_278, %c2_279, %c0_280, %c0_281] : memref<2x4x32x8xf32, #tpu.memory_space<vmem>>, vector<1x1x32x8xf32>
    %360 = vector.shape_cast %359 : vector<1x1x32x8xf32> to vector<32x8xf32>
    %cst_282 = arith.constant dense<0.000000e+00> : vector<24x8xf32>
    %361 = tpu.matmul %277, %360, %cst_282 {dimension_numbers = #tpu.dot_dimension_numbers<[1], [0], [0], [1], [0, 0, 1, 1], [], []>} : vector<24x32xf32>, vector<32x8xf32>, vector<24x8xf32> -> vector<24x8xf32>
    %c1_283 = arith.constant 1 : index
    %c2_284 = arith.constant 2 : index
    %c0_285 = arith.constant 0 : index
    %c0_286 = arith.constant 0 : index
    %362 = vector.load %arg7[%c1_283, %c2_284, %c0_285, %c0_286] : memref<2x4x1x8xf32, #tpu.memory_space<vmem>>, vector<1x1x1x8xf32>
    %363 = vector.shape_cast %362 : vector<1x1x1x8xf32> to vector<1x8xf32>
    %364 = vector.broadcast %363 : vector<1x8xf32> to vector<24x8xf32>
    %365 = arith.addf %361, %364 : vector<24x8xf32>
    %c1_287 = arith.constant 1 : index
    %c2_288 = arith.constant 2 : index
    %c0_289 = arith.constant 0 : index
    %c0_290 = arith.constant 0 : index
    %366 = vector.load %arg8[%c1_287, %c2_288, %c0_289, %c0_290] : memref<2x4x32x8xf32, #tpu.memory_space<vmem>>, vector<1x1x32x8xf32>
    %367 = vector.shape_cast %366 : vector<1x1x32x8xf32> to vector<32x8xf32>
    %cst_291 = arith.constant dense<0.000000e+00> : vector<24x8xf32>
    %368 = tpu.matmul %277, %367, %cst_291 {dimension_numbers = #tpu.dot_dimension_numbers<[1], [0], [0], [1], [0, 0, 1, 1], [], []>} : vector<24x32xf32>, vector<32x8xf32>, vector<24x8xf32> -> vector<24x8xf32>
    %c1_292 = arith.constant 1 : index
    %c2_293 = arith.constant 2 : index
    %c0_294 = arith.constant 0 : index
    %c0_295 = arith.constant 0 : index
    %369 = vector.load %arg9[%c1_292, %c2_293, %c0_294, %c0_295] : memref<2x4x1x8xf32, #tpu.memory_space<vmem>>, vector<1x1x1x8xf32>
    %370 = vector.shape_cast %369 : vector<1x1x1x8xf32> to vector<1x8xf32>
    %371 = vector.broadcast %370 : vector<1x8xf32> to vector<24x8xf32>
    %372 = arith.addf %368, %371 : vector<24x8xf32>
    %c1_296 = arith.constant 1 : index
    %c2_297 = arith.constant 2 : index
    %c0_298 = arith.constant 0 : index
    %c0_299 = arith.constant 0 : index
    %373 = vector.load %arg10[%c1_296, %c2_297, %c0_298, %c0_299] : memref<2x4x32x8xf32, #tpu.memory_space<vmem>>, vector<1x1x32x8xf32>
    %374 = vector.shape_cast %373 : vector<1x1x32x8xf32> to vector<32x8xf32>
    %cst_300 = arith.constant dense<0.000000e+00> : vector<24x8xf32>
    %375 = tpu.matmul %277, %374, %cst_300 {dimension_numbers = #tpu.dot_dimension_numbers<[1], [0], [0], [1], [0, 0, 1, 1], [], []>} : vector<24x32xf32>, vector<32x8xf32>, vector<24x8xf32> -> vector<24x8xf32>
    %c1_301 = arith.constant 1 : index
    %c2_302 = arith.constant 2 : index
    %c0_303 = arith.constant 0 : index
    %c0_304 = arith.constant 0 : index
    %376 = vector.load %arg11[%c1_301, %c2_302, %c0_303, %c0_304] : memref<2x4x1x8xf32, #tpu.memory_space<vmem>>, vector<1x1x1x8xf32>
    %377 = vector.shape_cast %376 : vector<1x1x1x8xf32> to vector<1x8xf32>
    %378 = vector.broadcast %377 : vector<1x8xf32> to vector<24x8xf32>
    %379 = arith.addf %375, %378 : vector<24x8xf32>
    %cst_305 = arith.constant dense<0.000000e+00> : vector<24x24xf32>
    %380 = tpu.matmul %365, %372, %cst_305 {dimension_numbers = #tpu.dot_dimension_numbers<[1], [1], [0], [0], [0, 0, 1, 0], [], []>} : vector<24x8xf32>, vector<24x8xf32>, vector<24x24xf32> -> vector<24x24xf32>
    %381 = vector.broadcast %11 : vector<1x24xf32> to vector<24x24xf32>
    %382 = arith.addf %380, %381 : vector<24x24xf32>
    %cst_306 = arith.constant dense<0xFF800000> : vector<24xf32>
    %383 = vector.multi_reduction <maximumf>, %382, %cst_306 [1] : vector<24x24xf32> to vector<24xf32>
    %384 = vector.shape_cast %383 : vector<24xf32> to vector<24x1xf32>
    %385 = vector.broadcast %384 : vector<24x1xf32> to vector<24x24xf32>
    %386 = arith.subf %382, %385 : vector<24x24xf32>
    %387 = math.exp %386 : vector<24x24xf32>
    %cst_307 = arith.constant dense<0.000000e+00> : vector<24xf32>
    %388 = vector.multi_reduction <add>, %387, %cst_307 [1] : vector<24x24xf32> to vector<24xf32>
    %389 = vector.shape_cast %388 : vector<24xf32> to vector<24x1xf32>
    %390 = tpu.reciprocal %389 {approx = true} : vector<24x1xf32> -> vector<24x1xf32>
    %391 = vector.broadcast %390 : vector<24x1xf32> to vector<24x24xf32>
    %392 = arith.mulf %387, %391 : vector<24x24xf32>
    %cst_308 = arith.constant dense<0.000000e+00> : vector<24x8xf32>
    %393 = tpu.matmul %392, %379, %cst_308 {dimension_numbers = #tpu.dot_dimension_numbers<[1], [0], [0], [1], [0, 0, 1, 1], [], []>} : vector<24x24xf32>, vector<24x8xf32>, vector<24x8xf32> -> vector<24x8xf32>
    %c1_309 = arith.constant 1 : index
    %c2_310 = arith.constant 2 : index
    %c0_311 = arith.constant 0 : index
    %c0_312 = arith.constant 0 : index
    %394 = vector.load %arg12[%c1_309, %c2_310, %c0_311, %c0_312] : memref<2x4x8x32xf32, #tpu.memory_space<vmem>>, vector<1x1x8x32xf32>
    %395 = vector.shape_cast %394 : vector<1x1x8x32xf32> to vector<8x32xf32>
    %cst_313 = arith.constant dense<0.000000e+00> : vector<24x32xf32>
    %396 = tpu.matmul %393, %395, %cst_313 {dimension_numbers = #tpu.dot_dimension_numbers<[1], [0], [0], [1], [0, 0, 1, 1], [], []>} : vector<24x8xf32>, vector<8x32xf32>, vector<24x32xf32> -> vector<24x32xf32>
    %397 = arith.addf %358, %396 : vector<24x32xf32>
    %c1_314 = arith.constant 1 : index
    %c3_315 = arith.constant 3 : index
    %c0_316 = arith.constant 0 : index
    %c0_317 = arith.constant 0 : index
    %398 = vector.load %arg6[%c1_314, %c3_315, %c0_316, %c0_317] : memref<2x4x32x8xf32, #tpu.memory_space<vmem>>, vector<1x1x32x8xf32>
    %399 = vector.shape_cast %398 : vector<1x1x32x8xf32> to vector<32x8xf32>
    %cst_318 = arith.constant dense<0.000000e+00> : vector<24x8xf32>
    %400 = tpu.matmul %277, %399, %cst_318 {dimension_numbers = #tpu.dot_dimension_numbers<[1], [0], [0], [1], [0, 0, 1, 1], [], []>} : vector<24x32xf32>, vector<32x8xf32>, vector<24x8xf32> -> vector<24x8xf32>
    %c1_319 = arith.constant 1 : index
    %c3_320 = arith.constant 3 : index
    %c0_321 = arith.constant 0 : index
    %c0_322 = arith.constant 0 : index
    %401 = vector.load %arg7[%c1_319, %c3_320, %c0_321, %c0_322] : memref<2x4x1x8xf32, #tpu.memory_space<vmem>>, vector<1x1x1x8xf32>
    %402 = vector.shape_cast %401 : vector<1x1x1x8xf32> to vector<1x8xf32>
    %403 = vector.broadcast %402 : vector<1x8xf32> to vector<24x8xf32>
    %404 = arith.addf %400, %403 : vector<24x8xf32>
    %c1_323 = arith.constant 1 : index
    %c3_324 = arith.constant 3 : index
    %c0_325 = arith.constant 0 : index
    %c0_326 = arith.constant 0 : index
    %405 = vector.load %arg8[%c1_323, %c3_324, %c0_325, %c0_326] : memref<2x4x32x8xf32, #tpu.memory_space<vmem>>, vector<1x1x32x8xf32>
    %406 = vector.shape_cast %405 : vector<1x1x32x8xf32> to vector<32x8xf32>
    %cst_327 = arith.constant dense<0.000000e+00> : vector<24x8xf32>
    %407 = tpu.matmul %277, %406, %cst_327 {dimension_numbers = #tpu.dot_dimension_numbers<[1], [0], [0], [1], [0, 0, 1, 1], [], []>} : vector<24x32xf32>, vector<32x8xf32>, vector<24x8xf32> -> vector<24x8xf32>
    %c1_328 = arith.constant 1 : index
    %c3_329 = arith.constant 3 : index
    %c0_330 = arith.constant 0 : index
    %c0_331 = arith.constant 0 : index
    %408 = vector.load %arg9[%c1_328, %c3_329, %c0_330, %c0_331] : memref<2x4x1x8xf32, #tpu.memory_space<vmem>>, vector<1x1x1x8xf32>
    %409 = vector.shape_cast %408 : vector<1x1x1x8xf32> to vector<1x8xf32>
    %410 = vector.broadcast %409 : vector<1x8xf32> to vector<24x8xf32>
    %411 = arith.addf %407, %410 : vector<24x8xf32>
    %c1_332 = arith.constant 1 : index
    %c3_333 = arith.constant 3 : index
    %c0_334 = arith.constant 0 : index
    %c0_335 = arith.constant 0 : index
    %412 = vector.load %arg10[%c1_332, %c3_333, %c0_334, %c0_335] : memref<2x4x32x8xf32, #tpu.memory_space<vmem>>, vector<1x1x32x8xf32>
    %413 = vector.shape_cast %412 : vector<1x1x32x8xf32> to vector<32x8xf32>
    %cst_336 = arith.constant dense<0.000000e+00> : vector<24x8xf32>
    %414 = tpu.matmul %277, %413, %cst_336 {dimension_numbers = #tpu.dot_dimension_numbers<[1], [0], [0], [1], [0, 0, 1, 1], [], []>} : vector<24x32xf32>, vector<32x8xf32>, vector<24x8xf32> -> vector<24x8xf32>
    %c1_337 = arith.constant 1 : index
    %c3_338 = arith.constant 3 : index
    %c0_339 = arith.constant 0 : index
    %c0_340 = arith.constant 0 : index
    %415 = vector.load %arg11[%c1_337, %c3_338, %c0_339, %c0_340] : memref<2x4x1x8xf32, #tpu.memory_space<vmem>>, vector<1x1x1x8xf32>
    %416 = vector.shape_cast %415 : vector<1x1x1x8xf32> to vector<1x8xf32>
    %417 = vector.broadcast %416 : vector<1x8xf32> to vector<24x8xf32>
    %418 = arith.addf %414, %417 : vector<24x8xf32>
    %cst_341 = arith.constant dense<0.000000e+00> : vector<24x24xf32>
    %419 = tpu.matmul %404, %411, %cst_341 {dimension_numbers = #tpu.dot_dimension_numbers<[1], [1], [0], [0], [0, 0, 1, 0], [], []>} : vector<24x8xf32>, vector<24x8xf32>, vector<24x24xf32> -> vector<24x24xf32>
    %420 = vector.broadcast %11 : vector<1x24xf32> to vector<24x24xf32>
    %421 = arith.addf %419, %420 : vector<24x24xf32>
    %cst_342 = arith.constant dense<0xFF800000> : vector<24xf32>
    %422 = vector.multi_reduction <maximumf>, %421, %cst_342 [1] : vector<24x24xf32> to vector<24xf32>
    %423 = vector.shape_cast %422 : vector<24xf32> to vector<24x1xf32>
    %424 = vector.broadcast %423 : vector<24x1xf32> to vector<24x24xf32>
    %425 = arith.subf %421, %424 : vector<24x24xf32>
    %426 = math.exp %425 : vector<24x24xf32>
    %cst_343 = arith.constant dense<0.000000e+00> : vector<24xf32>
    %427 = vector.multi_reduction <add>, %426, %cst_343 [1] : vector<24x24xf32> to vector<24xf32>
    %428 = vector.shape_cast %427 : vector<24xf32> to vector<24x1xf32>
    %429 = tpu.reciprocal %428 {approx = true} : vector<24x1xf32> -> vector<24x1xf32>
    %430 = vector.broadcast %429 : vector<24x1xf32> to vector<24x24xf32>
    %431 = arith.mulf %426, %430 : vector<24x24xf32>
    %cst_344 = arith.constant dense<0.000000e+00> : vector<24x8xf32>
    %432 = tpu.matmul %431, %418, %cst_344 {dimension_numbers = #tpu.dot_dimension_numbers<[1], [0], [0], [1], [0, 0, 1, 1], [], []>} : vector<24x24xf32>, vector<24x8xf32>, vector<24x8xf32> -> vector<24x8xf32>
    %c1_345 = arith.constant 1 : index
    %c3_346 = arith.constant 3 : index
    %c0_347 = arith.constant 0 : index
    %c0_348 = arith.constant 0 : index
    %433 = vector.load %arg12[%c1_345, %c3_346, %c0_347, %c0_348] : memref<2x4x8x32xf32, #tpu.memory_space<vmem>>, vector<1x1x8x32xf32>
    %434 = vector.shape_cast %433 : vector<1x1x8x32xf32> to vector<8x32xf32>
    %cst_349 = arith.constant dense<0.000000e+00> : vector<24x32xf32>
    %435 = tpu.matmul %432, %434, %cst_349 {dimension_numbers = #tpu.dot_dimension_numbers<[1], [0], [0], [1], [0, 0, 1, 1], [], []>} : vector<24x8xf32>, vector<8x32xf32>, vector<24x32xf32> -> vector<24x32xf32>
    %436 = arith.addf %397, %435 : vector<24x32xf32>
    %437 = arith.addf %251, %436 : vector<24x32xf32>
    %c1_350 = arith.constant 1 : index
    %c0_351 = arith.constant 0 : index
    %c0_352 = arith.constant 0 : index
    %438 = vector.load %arg14[%c1_350, %c0_351, %c0_352] : memref<2x1x32xf32, #tpu.memory_space<vmem>>, vector<1x1x32xf32>
    %439 = vector.shape_cast %438 : vector<1x1x32xf32> to vector<1x32xf32>
    %c1_353 = arith.constant 1 : index
    %c0_354 = arith.constant 0 : index
    %c0_355 = arith.constant 0 : index
    %440 = vector.load %arg15[%c1_353, %c0_354, %c0_355] : memref<2x1x32xf32, #tpu.memory_space<vmem>>, vector<1x1x32xf32>
    %441 = vector.shape_cast %440 : vector<1x1x32xf32> to vector<1x32xf32>
    %cst_356 = arith.constant dense<0.000000e+00> : vector<24xf32>
    %442 = vector.multi_reduction <add>, %437, %cst_356 [1] : vector<24x32xf32> to vector<24xf32>
    %443 = vector.shape_cast %442 : vector<24xf32> to vector<24x1xf32>
    %cst_357 = arith.constant 3.200000e+01 : f32
    %444 = vector.broadcast %cst_357 : f32 to vector<24x1xf32>
    %445 = arith.divf %443, %444 : vector<24x1xf32>
    %446 = vector.broadcast %445 : vector<24x1xf32> to vector<24x32xf32>
    %447 = arith.subf %437, %446 : vector<24x32xf32>
    %448 = arith.mulf %447, %447 : vector<24x32xf32>
    %cst_358 = arith.constant dense<0.000000e+00> : vector<24xf32>
    %449 = vector.multi_reduction <add>, %448, %cst_358 [1] : vector<24x32xf32> to vector<24xf32>
    %450 = vector.shape_cast %449 : vector<24xf32> to vector<24x1xf32>
    %cst_359 = arith.constant 3.200000e+01 : f32
    %451 = vector.broadcast %cst_359 : f32 to vector<24x1xf32>
    %452 = arith.divf %450, %451 : vector<24x1xf32>
    %453 = vector.broadcast %445 : vector<24x1xf32> to vector<24x32xf32>
    %454 = arith.subf %437, %453 : vector<24x32xf32>
    %cst_360 = arith.constant 9.99999997E-7 : f32
    %455 = vector.broadcast %cst_360 : f32 to vector<24x1xf32>
    %456 = arith.addf %452, %455 : vector<24x1xf32>
    %457 = math.rsqrt %456 : vector<24x1xf32>
    %458 = vector.broadcast %457 : vector<24x1xf32> to vector<24x32xf32>
    %459 = arith.mulf %454, %458 : vector<24x32xf32>
    %460 = vector.broadcast %439 : vector<1x32xf32> to vector<24x32xf32>
    %461 = arith.mulf %459, %460 : vector<24x32xf32>
    %462 = vector.broadcast %441 : vector<1x32xf32> to vector<24x32xf32>
    %463 = arith.addf %461, %462 : vector<24x32xf32>
    %c1_361 = arith.constant 1 : index
    %c0_362 = arith.constant 0 : index
    %c0_363 = arith.constant 0 : index
    %464 = vector.load %arg16[%c1_361, %c0_362, %c0_363] : memref<2x32x128xf32, #tpu.memory_space<vmem>>, vector<1x32x128xf32>
    %465 = vector.shape_cast %464 : vector<1x32x128xf32> to vector<32x128xf32>
    %cst_364 = arith.constant dense<0.000000e+00> : vector<24x128xf32>
    %466 = tpu.matmul %463, %465, %cst_364 {dimension_numbers = #tpu.dot_dimension_numbers<[1], [0], [0], [1], [0, 0, 1, 1], [], []>} : vector<24x32xf32>, vector<32x128xf32>, vector<24x128xf32> -> vector<24x128xf32>
    %c1_365 = arith.constant 1 : index
    %c0_366 = arith.constant 0 : index
    %c0_367 = arith.constant 0 : index
    %467 = vector.load %arg17[%c1_365, %c0_366, %c0_367] : memref<2x1x128xf32, #tpu.memory_space<vmem>>, vector<1x1x128xf32>
    %468 = vector.shape_cast %467 : vector<1x1x128xf32> to vector<1x128xf32>
    %469 = vector.broadcast %468 : vector<1x128xf32> to vector<24x128xf32>
    %470 = arith.addf %466, %469 : vector<24x128xf32>
    %cst_368 = arith.constant 5.000000e-01 : f32
    %471 = vector.broadcast %cst_368 : f32 to vector<24x128xf32>
    %472 = arith.mulf %471, %470 : vector<24x128xf32>
    %473 = arith.mulf %470, %470 : vector<24x128xf32>
    %474 = arith.mulf %473, %470 : vector<24x128xf32>
    %cst_369 = arith.constant 4.471500e-02 : f32
    %475 = vector.broadcast %cst_369 : f32 to vector<24x128xf32>
    %476 = arith.mulf %475, %474 : vector<24x128xf32>
    %477 = arith.addf %470, %476 : vector<24x128xf32>
    %cst_370 = arith.constant 0.797884583 : f32
    %478 = vector.broadcast %cst_370 : f32 to vector<24x128xf32>
    %479 = arith.mulf %478, %477 : vector<24x128xf32>
    %480 = math.tanh %479 : vector<24x128xf32>
    %cst_371 = arith.constant 1.000000e+00 : f32
    %481 = vector.broadcast %cst_371 : f32 to vector<24x128xf32>
    %482 = arith.addf %481, %480 : vector<24x128xf32>
    %483 = arith.mulf %472, %482 : vector<24x128xf32>
    %c1_372 = arith.constant 1 : index
    %c0_373 = arith.constant 0 : index
    %c0_374 = arith.constant 0 : index
    %484 = vector.load %arg18[%c1_372, %c0_373, %c0_374] : memref<2x128x32xf32, #tpu.memory_space<vmem>>, vector<1x128x32xf32>
    %485 = vector.shape_cast %484 : vector<1x128x32xf32> to vector<128x32xf32>
    %cst_375 = arith.constant dense<0.000000e+00> : vector<24x32xf32>
    %486 = tpu.matmul %483, %485, %cst_375 {dimension_numbers = #tpu.dot_dimension_numbers<[1], [0], [0], [1], [0, 0, 1, 1], [], []>} : vector<24x128xf32>, vector<128x32xf32>, vector<24x32xf32> -> vector<24x32xf32>
    %487 = arith.addf %437, %486 : vector<24x32xf32>
    %c1_376 = arith.constant 1 : index
    %c0_377 = arith.constant 0 : index
    %c0_378 = arith.constant 0 : index
    %488 = vector.load %arg19[%c1_376, %c0_377, %c0_378] : memref<2x1x32xf32, #tpu.memory_space<vmem>>, vector<1x1x32xf32>
    %489 = vector.shape_cast %488 : vector<1x1x32xf32> to vector<1x32xf32>
    %490 = vector.broadcast %489 : vector<1x32xf32> to vector<24x32xf32>
    %491 = arith.addf %487, %490 : vector<24x32xf32>
    %492 = vector.extract_strided_slice %491 {offsets = [0, 0], sizes = [1, 32], strides = [1, 1]} : vector<24x32xf32> to vector<1x32xf32>
    %c0_379 = arith.constant 0 : index
    %c0_380 = arith.constant 0 : index
    %493 = vector.load %arg20[%c0_379, %c0_380] : memref<1x32xf32, #tpu.memory_space<vmem>>, vector<1x32xf32>
    %c0_381 = arith.constant 0 : index
    %c0_382 = arith.constant 0 : index
    %494 = vector.load %arg21[%c0_381, %c0_382] : memref<1x32xf32, #tpu.memory_space<vmem>>, vector<1x32xf32>
    %cst_383 = arith.constant dense<0.000000e+00> : vector<1xf32>
    %495 = vector.multi_reduction <add>, %492, %cst_383 [1] : vector<1x32xf32> to vector<1xf32>
    %496 = vector.shape_cast %495 : vector<1xf32> to vector<1x1xf32>
    %cst_384 = arith.constant 3.200000e+01 : f32
    %497 = vector.broadcast %cst_384 : f32 to vector<1x1xf32>
    %498 = arith.divf %496, %497 : vector<1x1xf32>
    %499 = vector.broadcast %498 : vector<1x1xf32> to vector<1x32xf32>
    %500 = arith.subf %492, %499 : vector<1x32xf32>
    %501 = arith.mulf %500, %500 : vector<1x32xf32>
    %cst_385 = arith.constant dense<0.000000e+00> : vector<1xf32>
    %502 = vector.multi_reduction <add>, %501, %cst_385 [1] : vector<1x32xf32> to vector<1xf32>
    %503 = vector.shape_cast %502 : vector<1xf32> to vector<1x1xf32>
    %cst_386 = arith.constant 3.200000e+01 : f32
    %504 = vector.broadcast %cst_386 : f32 to vector<1x1xf32>
    %505 = arith.divf %503, %504 : vector<1x1xf32>
    %506 = vector.broadcast %498 : vector<1x1xf32> to vector<1x32xf32>
    %507 = arith.subf %492, %506 : vector<1x32xf32>
    %cst_387 = arith.constant 9.99999997E-7 : f32
    %508 = vector.broadcast %cst_387 : f32 to vector<1x1xf32>
    %509 = arith.addf %505, %508 : vector<1x1xf32>
    %510 = math.rsqrt %509 : vector<1x1xf32>
    %511 = vector.broadcast %510 : vector<1x1xf32> to vector<1x32xf32>
    %512 = arith.mulf %507, %511 : vector<1x32xf32>
    %513 = arith.mulf %512, %493 : vector<1x32xf32>
    %514 = arith.addf %513, %494 : vector<1x32xf32>
    %c0_388 = arith.constant 0 : index
    %c0_389 = arith.constant 0 : index
    %515 = vector.load %arg22[%c0_388, %c0_389] : memref<32x10xf32, #tpu.memory_space<vmem>>, vector<32x10xf32>
    %cst_390 = arith.constant dense<0.000000e+00> : vector<1x10xf32>
    %516 = tpu.matmul %514, %515, %cst_390 {dimension_numbers = #tpu.dot_dimension_numbers<[1], [0], [0], [1], [0, 0, 1, 1], [], []>} : vector<1x32xf32>, vector<32x10xf32>, vector<1x10xf32> -> vector<1x10xf32>
    %c0_391 = arith.constant 0 : index
    %c0_392 = arith.constant 0 : index
    %517 = vector.load %arg23[%c0_391, %c0_392] : memref<1x10xf32, #tpu.memory_space<vmem>>, vector<1x10xf32>
    %518 = arith.addf %516, %517 : vector<1x10xf32>
    %c0_393 = arith.constant 0 : index
    %c0_394 = arith.constant 0 : index
    %c0_395 = arith.constant 0 : index
    %519 = vector.load %arg24[%c0_393, %c0_394, %c0_395] : memref<1x1x10xf32, #tpu.memory_space<vmem>>, vector<1x1x10xf32>
    %520 = vector.shape_cast %519 : vector<1x1x10xf32> to vector<1x10xf32>
    %521 = vector.shape_cast %518 : vector<1x10xf32> to vector<1x1x10xf32>
    tpu.vector_store %arg24[%c0_393, %c0_394, %c0_395], %521 {strides = array<i32>} : memref<1x1x10xf32, #tpu.memory_space<vmem>>, vector<1x1x10xf32>,
    return
  }
  func.func @transform_0(%arg0: i32) -> (i32, i32, i32) {
    %c0_i32 = arith.constant 0 : i32
    %c0_i32_0 = arith.constant 0 : i32
    %c0_i32_1 = arith.constant 0 : i32
    return %arg0, %c0_i32, %c0_i32_0 : i32, i32, i32
  }
  func.func @transform_1(%arg0: i32) -> (i32, i32) {
    %c0_i32 = arith.constant 0 : i32
    %c0_i32_0 = arith.constant 0 : i32
    %c0_i32_1 = arith.constant 0 : i32
    return %c0_i32, %c0_i32_0 : i32, i32
  }
  func.func @transform_2(%arg0: i32) -> (i32, i32) {
    %c0_i32 = arith.constant 0 : i32
    %c0_i32_0 = arith.constant 0 : i32
    %c0_i32_1 = arith.constant 0 : i32
    return %c0_i32, %c0_i32_0 : i32, i32
  }
  func.func @transform_3(%arg0: i32) -> (i32, i32, i32) {
    %c0_i32 = arith.constant 0 : i32
    %c0_i32_0 = arith.constant 0 : i32
    %c0_i32_1 = arith.constant 0 : i32
    %c0_i32_2 = arith.constant 0 : i32
    return %c0_i32, %c0_i32_0, %c0_i32_1 : i32, i32, i32
  }
  func.func @transform_4(%arg0: i32) -> (i32, i32, i32) {
    %c0_i32 = arith.constant 0 : i32
    %c0_i32_0 = arith.constant 0 : i32
    %c0_i32_1 = arith.constant 0 : i32
    %c0_i32_2 = arith.constant 0 : i32
    return %c0_i32, %c0_i32_0, %c0_i32_1 : i32, i32, i32
  }
  func.func @transform_5(%arg0: i32) -> (i32, i32, i32, i32) {
    %c0_i32 = arith.constant 0 : i32
    %c0_i32_0 = arith.constant 0 : i32
    %c0_i32_1 = arith.constant 0 : i32
    %c0_i32_2 = arith.constant 0 : i32
    %c0_i32_3 = arith.constant 0 : i32
    return %c0_i32, %c0_i32_0, %c0_i32_1, %c0_i32_2 : i32, i32, i32, i32
  }
  func.func @transform_6(%arg0: i32) -> (i32, i32, i32, i32) {
    %c0_i32 = arith.constant 0 : i32
    %c0_i32_0 = arith.constant 0 : i32
    %c0_i32_1 = arith.constant 0 : i32
    %c0_i32_2 = arith.constant 0 : i32
    %c0_i32_3 = arith.constant 0 : i32
    return %c0_i32, %c0_i32_0, %c0_i32_1, %c0_i32_2 : i32, i32, i32, i32
  }
  func.func @transform_7(%arg0: i32) -> (i32, i32, i32, i32) {
    %c0_i32 = arith.constant 0 : i32
    %c0_i32_0 = arith.constant 0 : i32
    %c0_i32_1 = arith.constant 0 : i32
    %c0_i32_2 = arith.constant 0 : i32
    %c0_i32_3 = arith.constant 0 : i32
    return %c0_i32, %c0_i32_0, %c0_i32_1, %c0_i32_2 : i32, i32, i32, i32
  }
  func.func @transform_8(%arg0: i32) -> (i32, i32, i32, i32) {
    %c0_i32 = arith.constant 0 : i32
    %c0_i32_0 = arith.constant 0 : i32
    %c0_i32_1 = arith.constant 0 : i32
    %c0_i32_2 = arith.constant 0 : i32
    %c0_i32_3 = arith.constant 0 : i32
    return %c0_i32, %c0_i32_0, %c0_i32_1, %c0_i32_2 : i32, i32, i32, i32
  }
  func.func @transform_9(%arg0: i32) -> (i32, i32, i32, i32) {
    %c0_i32 = arith.constant 0 : i32
    %c0_i32_0 = arith.constant 0 : i32
    %c0_i32_1 = arith.constant 0 : i32
    %c0_i32_2 = arith.constant 0 : i32
    %c0_i32_3 = arith.constant 0 : i32
    return %c0_i32, %c0_i32_0, %c0_i32_1, %c0_i32_2 : i32, i32, i32, i32
  }
  func.func @transform_10(%arg0: i32) -> (i32, i32, i32, i32) {
    %c0_i32 = arith.constant 0 : i32
    %c0_i32_0 = arith.constant 0 : i32
    %c0_i32_1 = arith.constant 0 : i32
    %c0_i32_2 = arith.constant 0 : i32
    %c0_i32_3 = arith.constant 0 : i32
    return %c0_i32, %c0_i32_0, %c0_i32_1, %c0_i32_2 : i32, i32, i32, i32
  }
  func.func @transform_11(%arg0: i32) -> (i32, i32, i32, i32) {
    %c0_i32 = arith.constant 0 : i32
    %c0_i32_0 = arith.constant 0 : i32
    %c0_i32_1 = arith.constant 0 : i32
    %c0_i32_2 = arith.constant 0 : i32
    %c0_i32_3 = arith.constant 0 : i32
    return %c0_i32, %c0_i32_0, %c0_i32_1, %c0_i32_2 : i32, i32, i32, i32
  }
  func.func @transform_12(%arg0: i32) -> (i32, i32, i32) {
    %c0_i32 = arith.constant 0 : i32
    %c0_i32_0 = arith.constant 0 : i32
    %c0_i32_1 = arith.constant 0 : i32
    %c0_i32_2 = arith.constant 0 : i32
    return %c0_i32, %c0_i32_0, %c0_i32_1 : i32, i32, i32
  }
  func.func @transform_13(%arg0: i32) -> (i32, i32, i32) {
    %c0_i32 = arith.constant 0 : i32
    %c0_i32_0 = arith.constant 0 : i32
    %c0_i32_1 = arith.constant 0 : i32
    %c0_i32_2 = arith.constant 0 : i32
    return %c0_i32, %c0_i32_0, %c0_i32_1 : i32, i32, i32
  }
  func.func @transform_14(%arg0: i32) -> (i32, i32, i32) {
    %c0_i32 = arith.constant 0 : i32
    %c0_i32_0 = arith.constant 0 : i32
    %c0_i32_1 = arith.constant 0 : i32
    %c0_i32_2 = arith.constant 0 : i32
    return %c0_i32, %c0_i32_0, %c0_i32_1 : i32, i32, i32
  }
  func.func @transform_15(%arg0: i32) -> (i32, i32, i32) {
    %c0_i32 = arith.constant 0 : i32
    %c0_i32_0 = arith.constant 0 : i32
    %c0_i32_1 = arith.constant 0 : i32
    %c0_i32_2 = arith.constant 0 : i32
    return %c0_i32, %c0_i32_0, %c0_i32_1 : i32, i32, i32
  }
  func.func @transform_16(%arg0: i32) -> (i32, i32, i32) {
    %c0_i32 = arith.constant 0 : i32
    %c0_i32_0 = arith.constant 0 : i32
    %c0_i32_1 = arith.constant 0 : i32
    %c0_i32_2 = arith.constant 0 : i32
    return %c0_i32, %c0_i32_0, %c0_i32_1 : i32, i32, i32
  }
  func.func @transform_17(%arg0: i32) -> (i32, i32, i32) {
    %c0_i32 = arith.constant 0 : i32
    %c0_i32_0 = arith.constant 0 : i32
    %c0_i32_1 = arith.constant 0 : i32
    %c0_i32_2 = arith.constant 0 : i32
    return %c0_i32, %c0_i32_0, %c0_i32_1 : i32, i32, i32
  }
  func.func @transform_18(%arg0: i32) -> (i32, i32, i32) {
    %c0_i32 = arith.constant 0 : i32
    %c0_i32_0 = arith.constant 0 : i32
    %c0_i32_1 = arith.constant 0 : i32
    %c0_i32_2 = arith.constant 0 : i32
    return %c0_i32, %c0_i32_0, %c0_i32_1 : i32, i32, i32
  }
  func.func @transform_19(%arg0: i32) -> (i32, i32) {
    %c0_i32 = arith.constant 0 : i32
    %c0_i32_0 = arith.constant 0 : i32
    %c0_i32_1 = arith.constant 0 : i32
    return %c0_i32, %c0_i32_0 : i32, i32
  }
  func.func @transform_20(%arg0: i32) -> (i32, i32) {
    %c0_i32 = arith.constant 0 : i32
    %c0_i32_0 = arith.constant 0 : i32
    %c0_i32_1 = arith.constant 0 : i32
    return %c0_i32, %c0_i32_0 : i32, i32
  }
  func.func @transform_21(%arg0: i32) -> (i32, i32) {
    %c0_i32 = arith.constant 0 : i32
    %c0_i32_0 = arith.constant 0 : i32
    %c0_i32_1 = arith.constant 0 : i32
    return %c0_i32, %c0_i32_0 : i32, i32
  }
  func.func @transform_22(%arg0: i32) -> (i32, i32) {
    %c0_i32 = arith.constant 0 : i32
    %c0_i32_0 = arith.constant 0 : i32
    %c0_i32_1 = arith.constant 0 : i32
    return %c0_i32, %c0_i32_0 : i32, i32
  }
  func.func @transform_23(%arg0: i32) -> (i32, i32, i32) {
    %c0_i32 = arith.constant 0 : i32
    %c0_i32_0 = arith.constant 0 : i32
    %c0_i32_1 = arith.constant 0 : i32
    return %arg0, %c0_i32, %c0_i32_0 : i32, i32, i32
  }
}

</mosaic_0001>

<bundles_post_ra>
// kernel: vit_forward.1
= control target key start
LH: loop header
LB: loop body
LE: loop exit
PB: predicated region body
PF: predicated region fallthrough
CT: control target
= control target key end

     0   :  { %s10320_s0 = inlined_call_operand.vmem [shape: f32[2,24,48], index: 0, kind: input, shape index: {}]   ;;  %s10321_s1 = inlined_call_operand.vmem [shape: f32[24,32], index: 1, kind: input, shape index: {}]   ;;  %s10322_s2 = inlined_call_operand.vmem [shape: f32[48,32], index: 2, kind: input, shape index: {}]   ;;  %s10323_s3 = inlined_call_operand.vmem [shape: f32[2,1,32], index: 3, kind: input, shape index: {}]   ;;  %s10324_s4 = inlined_call_operand.vmem [shape: f32[2,1,32], index: 4, kind: input, shape index: {}]   ;;  %s10325_s5 = inlined_call_operand.vmem [shape: f32[2,4,32,8], index: 5, kind: input, shape index: {}]   ;;  %s10326_s6 = inlined_call_operand.vmem [shape: f32[2,4,1,8], index: 6, kind: input, shape index: {}]   ;;  %s10327_s7 = inlined_call_operand.vmem [shape: f32[2,4,32,8], index: 7, kind: input, shape index: {}]   ;;  %s10328_s8 = inlined_call_operand.vmem [shape: f32[2,4,1,8], index: 8, kind: input, shape index: {}]   ;;  %s10329_s9 = inlined_call_operand.vmem [shape: f32[2,4,32,8], index: 9, kind: input, shape index: {}]   ;;  %s10330_s10 = inlined_call_operand.vmem [shape: f32[2,4,1,8], index: 10, kind: input, shape index: {}]   ;;  %s10331_s11 = inlined_call_operand.vmem [shape: f32[2,4,8,32], index: 11, kind: input, shape index: {}]   ;;  %s10332_s12 = inlined_call_operand.vmem [shape: f32[2,1,32], index: 12, kind: input, shape index: {}]   ;;  %s10333_s13 = inlined_call_operand.vmem [shape: f32[2,1,32], index: 13, kind: input, shape index: {}]   ;;  %s10334_s14 = inlined_call_operand.vmem [shape: f32[2,1,32], index: 14, kind: input, shape index: {}]   ;;  %s10335_s15 = inlined_call_operand.vmem [shape: f32[2,32,128], index: 15, kind: input, shape index: {}]   ;;  %s10336_s16 = inlined_call_operand.vmem [shape: f32[2,1,128], index: 16, kind: input, shape index: {}]   ;;  %s10337_s17 = inlined_call_operand.vmem [shape: f32[2,128,32], index: 17, kind: input, shape index: {}]   ;;  %s10338_s18 = inlined_call_operand.vmem [shape: f32[2,1,32], index: 18, kind: input, shape index: {}]   ;;  %s10339_s19 = inlined_call_operand.vmem [shape: f32[1,32], index: 19, kind: input, shape index: {}]   ;;  %s10340_s20 = inlined_call_operand.vmem [shape: f32[1,32], index: 20, kind: input, shape index: {}]   ;;  %s10341_s21 = inlined_call_operand.vmem [shape: f32[32,10], index: 21, kind: input, shape index: {}]   ;;  %s10342_s22 = inlined_call_operand.vmem [shape: f32[1,10], index: 22, kind: input, shape index: {}]   ;;  %s10343_s23 = inlined_call_operand.hbm [shape: f32[2,1,10], index: 23, kind: output, shape index: {}]  }
   0x1   :  { %10363 = sst [smem:[#allocation11_spill]] %s10320_s0 }
   0x2   :  { %10364 = sst [smem:[#allocation12_spill]] %s10321_s1 }
   0x3   :  { %10365 = sst [smem:[#allocation13_spill]] %s10322_s2 }
   0x4   :  { %10366 = sst [smem:[#allocation14_spill]] %s10323_s3 }
   0x5   :  { %10367 = sst [smem:[#allocation15_spill]] %s10324_s4 }
   0x6   :  { %10368 = sst [smem:[#allocation16_spill]] %s10325_s5 }
   0x7   :  { %10369 = sst [smem:[#allocation17_spill]] %s10326_s6 }
   0x8   :  { %10370 = sst [smem:[#allocation18_spill]] %s10327_s7 }
   0x9   :  { %10371 = sst [smem:[#allocation19_spill]] %s10328_s8 }
   0xa   :  { %10372 = sst [smem:[#allocation20_spill]] %s10343_s23 }
   0xb   :  { %28 = vsyncpa [#allocation3], 0 }
   0xc   :  { %30 = vsyncpa [#allocation3 + $0x1], 0  ;;  %s8721_s4 = smov 0   ;;  %s8723_s30 = smov 0  }
   0xd   :  { %s8725_s24 = smov 0   ;;  %s8727_s25 = smov 0  }
   0xe LB: > { %10373 = sst [smem:[#allocation5_spill]] %s8582_s4  ;;  %s8742_s5 = sadd.s32 4294967295, %s8594_s25   ;;  %s8594_s25 = sphi %s8727_s25, %s10397_s25   ;;  %s8590_s24 = sphi %s8725_s24, %s10399_s24   ;;  %s8586_s30 = sphi %s8723_s30, %s10401_s30   ;;  %s8582_s4 = sphi %s8721_s4, %s10400_s4  }
   0xf   : > { %10374 = sst [smem:[#allocation6_spill]] %s8590_s24  ;;  %s6470_s1 = sadd.s32 4294967294, %s8594_s25  }
  0x10   : > { %10375 = sst [smem:[#allocation7_spill]] %s8594_s25  ;;  %s8746_s26 = sadd.s32 1, %s8594_s25  }
  0x11   : > { %10376 = sst [smem:[#allocation8_spill]] %s8746_s26  ;;  %s531_s2 = sadd.s32 1, %s8590_s24 }
  0x12   : > { %s528_s6 = ssub.s32 %s8594_s25, %s8746_s26  ;;  %p541_p0 = scmp.ne.s32.totalorder %s8590_s24, %s8586_s30 }
  0x13   : > { %p529_p1 = scmp.eq.s32.totalorder %s528_s6, 0  ;;  %p542_p2 = scmp.eq.s32.totalorder %s8742_s5, 1 }
  0x14   : > { %p547_p3 = scmp.ne.s32.totalorder %s8586_s30, %s8582_s4  ;;  %p548_p4 = scmp.eq.s32.totalorder %s6470_s1, 1 }
  0x15   : > { %s8757_s27 = scalar_select %p529_p1, %s8590_s24, %s531_s2  }
  0x16   : > { %p8759_p5 = por %p542_p2, %p541_p0  ;;  %p8763_p6 = por %p548_p4, %p547_p3 }
  0x17   : > { %10377 = sst [smem:[#allocation9_spill]] %s8757_s27  ;;  %p6473_p7 = scmp.ge.s32.totalorder %s8594_s25, 1 }
  0x18   : > { %s10379_s28 = scalar_select %p8763_p6, 1, 0 }
  0x19   : > { %p640_p8 = scmp.lt.s32.totalorder %s8594_s25, 3 }
  0x1a   : > { %10380 = sst [smem:[#allocation10_spill]] %s10379_s28 }
  0x1b   : > { %p641_p9 = pnand %p6473_p7, %p640_p8 }
  0x1c   : > { %s10381_s0 = sld [smem:[#allocation13_spill]] (!%p641_p9)  ;;  %v8596_v3 = vmov (!%p641_p9), 0.0|0.0   ;;  %vm8597_vm0 = vmmov (!%p641_p9), 0   ;;  %v8598_v6 = vmov (!%p641_p9), 0.0   ;;  %p703_p10 = scmp.lt.s32.totalorder (!%p641_p9), %s8742_s5, 1  ;;  %vm720_vm1 = vcmask (!%p641_p9), 392192  }
  0x1d   : > { %644 = sbr.rel (%p641_p9) target bundleno = 11249 (0x2bf1), region = 112  ;;  %8079 = vmatprep.subr.bf16.mxu0 (!%p641_p9), %v8596_v3  ;;  %7207 = vmatprep.mubr.msk.f32.mxu0 (!%p641_p9), %vm8597_vm0, %v8598_v6  ;;  %s10382_s28 = sld [smem:[#allocation11_spill]] (!%p641_p9)  ;;  %vm816_vm2 = vcmask (!%p641_p9), 261120   ;;  %vm1158_vm3 = vcmask (!%p641_p9), 64512   ;;  %vm1257_vm6 = vcmask (!%p641_p9), 195584   ;;  %vm6306_vm7 = vcmask (!%p641_p9), 253952  }
  0x1e   : > { %8094 = vmatprep.subr.bf16.mxu1 (!%p641_p9), %v8596_v3  ;;  %7241 = vmatprep.mubr.msk.f32.mxu1 (!%p641_p9), %vm8597_vm0, %v8598_v6  ;;  %s10383_s29 = sld [smem:[#allocation12_spill]] (!%p641_p9)  ;;  %s10384_s6 = sld [smem:[#allocation16_spill]] (!%p641_p9)  ;;  %vm8929_vm4 = vmpackc.low (!%p641_p9), %vm1158_vm3, %vm1158_vm3  ;;  %vm6400_vm8 = vcmask (!%p641_p9), 73728  }
  0x1f   : > { %s10387_s2 = sld [smem:[#allocation14_spill]] (!%p641_p9)  ;;  %s10388_s3 = sld [smem:[#allocation15_spill]] (!%p641_p9) }
  0x20   : > { %s10389_s8 = sld [smem:[#allocation19_spill]] (!%p641_p9)  ;;  %s6830_s25 = sshll.u32 (!%p641_p9), %s8742_s5, 4 }
  0x22   : > { %v711_v0 = vld [vmem:[%s10381_s0] sm:$0xff] (!%p641_p9)  ;;  %v712_v1 = vld [vmem:[%s10381_s0 + $0x8] sm:$0xff] (!%p641_p9)  ;;  %v713_v2 = vld [vmem:[%s10381_s0 + $0x10] sm:$0xff] (!%p641_p9) }
  0x23   : > { %v8080_v4 = vpack.c.bf16 (!%p641_p9), %v712_v1, %v711_v0  ;;  %v714_v5 = vld [vmem:[%s10381_s0 + $0x18] sm:$0xff] (!%p641_p9)  ;;  %v715_v8 = vld [vmem:[%s10381_s0 + $0x20] sm:$0xff] (!%p641_p9)  ;;  %v716_v9 = vld [vmem:[%s10381_s0 + $0x28] sm:$0xff] (!%p641_p9)  ;;  %s10393_s0 = sld [smem:[#allocation20_spill]] (!%p641_p9) }
  0x24   : > { %v8083_v7 = vpack.c.bf16 %v714_v5, %v713_v2  ;;  %s704_s27 = scalar_select %p703_p10, %s8742_s5, 1  ;;  %v8086_v10 = vpack.c.bf16 %v716_v9, %v715_v8  ;;  %v717_v14 = vld [vmem:[%s10383_s29] sm:$0xff]  ;;  %v718_v18 = vld [vmem:[%s10383_s29 + $0x8] sm:$0xff]  ;;  %v719_v23 = vld [vmem:[%s10383_s29 + $0x10] sm:$0xff] }
  0x25   : > { %8081 = vmatpush3.bf16.msra.mxu0 %v8080_v4  ;;  %v876_v44 = vld [vmem:[%s10384_s6] sm:$0xff]  ;;  %v877_v45 = vld [vmem:[%s10384_s6 + $0x8] sm:$0xff]  ;;  %v878_v50 = vld [vmem:[%s10384_s6 + $0x10] sm:$0xff]  ;;  %s8600_s5 = smov [#allocation2]  }
  0x26   : > { %8082 = vmatprep.subr.bf16.mxu0 %v8596_v3  ;;  %s8354_s1 = smul.u32 24, %s704_s27  ;;  %v8089_v47 = vpack.c.bf16 %v877_v45, %v876_v44  ;;  %v879_v51 = vld [vmem:[%s10384_s6 + $0x18] sm:$0xff]  ;;  %v6478_v2 = vld [vmem:[%s10387_s2] ss:$0 sm:$0xff]  ;;  %v1068_v8 = vld [vmem:[%s10329_s9 + $0x8] sm:$0xff] }
  0x27   : > { %v8092_v53 = vpack.c.bf16 %v879_v51, %v878_v50  ;;  %v6479_v5 = vld [vmem:[%s10388_s3] ss:$0 sm:$0xff] }
  0x28   : > { %s707_s4 = scalar_lea.vmem %s10382_s28, %s8354_s1  ;;  %v6488_v45 = vld [vmem:[%s10330_s10] ss:$0 sm:$0xff]  ;;  %s10392_s28 = sld [smem:[#allocation17_spill]] }
  0x29   : > { %8084 = vmatpush3.bf16.msra.mxu0 %v8083_v7  ;;  %v708_v11 = vld [vmem:[%s707_s4] sm:$0xff]  ;;  %v709_v12 = vld [vmem:[%s707_s4 + $0x8] sm:$0xff]  ;;  %v710_v13 = vld [vmem:[%s707_s4 + $0x10] sm:$0xff]  ;;  %s10385_s4 = sld [smem:[#allocation18_spill]]  ;;  %s10278_s29 = scalar_lea.hbm %s10393_s0, %s6830_s25 }
  0x2a   : > { %8085 = vmatprep.subr.bf16.mxu0 %v8596_v3  ;;  %v1067_v7 = vld [vmem:[%s10329_s9] sm:$0xff] }
  0x2d   : > { %8087 = vmatpush3.bf16.msra.mxu0 %v8086_v10 }
  0x2e   : > { %8088 = vmatprep.subr.bf16.mxu0 %v8596_v3 }
  0x2f   : > { %s10386_s26 = smov %s10385_s4  ;;  %v976_v46 = vld [vmem:[%s10385_s4] sm:$0xff]  ;;  %s701_s4 = sand.u32 1, %s8586_s30  }
  0x30   : > { %7208 = vmatmul.mubr.msk.f32.vlgmr.msra.gmra.mrb[0].mxu0 %vm720_vm1, %v708_v11  ;;  %v977_v48 = vld [vmem:[%s10386_s26 + $0x8] sm:$0xff]  ;;  %v978_v52 = vld [vmem:[%s10386_s26 + $0x10] sm:$0xff]  ;;  %v979_v54 = vld [vmem:[%s10386_s26 + $0x18] sm:$0xff]  ;;  %s6403_s1 = scalar_lea.sflag [#allocation3], %s701_s4 }
  0x31   : > { %7210 = vmatprep.mubr.msk.f32.mxu0 %vm8597_vm0, %v8598_v6  ;;  %v8095_v49 = vpack.c.bf16 %v977_v48, %v976_v46  ;;  %8090 = vmatpush3.bf16.msra.mxu0 %v8089_v47  ;;  %v8098_v55 = vpack.c.bf16 %v979_v54, %v978_v52  ;;  %v6480_v46 = vld [vmem:[%s10392_s28] ss:$0 sm:$0xff] }
  0x32   : > { %8091 = vmatprep.subr.bf16.mxu0 %v8596_v3 }
  0x33   : > { %8096 = vmatpush3.bf16.msra.mxu1 %v8095_v49 }
  0x34   : > { %7211 = vmatmul.mubr.msk.f32.gmra.mrb[2].mxu0 %vm720_vm1, %v709_v12  ;;  %8097 = vmatprep.subr.bf16.mxu1 %v8596_v3 }
  0x35   : > { %7213 = vmatprep.mubr.msk.f32.mxu0 %vm8597_vm0, %v8598_v6  ;;  %8093 = vmatpush3.bf16.msra.mxu0 %v8092_v53 }
  0x36   : > { %8100 = vmatprep.subr.bf16.mxu0 %v8596_v3 }
  0x37   : > { %8099 = vmatpush3.bf16.msra.mxu1 %v8098_v55 }
  0x38   : > { %7214 = vmatmul.mubr.msk.f32.gmra.mrb[4].mxu0 %vm720_vm1, %v710_v13  ;;  %8106 = vmatprep.subr.bf16.mxu1 %v8596_v3  ;;  %v8101_v13 = vpack.c.bf16 %v1068_v8, %v1067_v7 }
  0x39   : > { %7224 = vmatprep.mubr.msk.f32.mxu0 %vm8597_vm0, %v8598_v6 }
 0x103   : > { %v796_v15 = vpop.f32.mrb[0].mxu0 }
 0x104   : > { %v8810_v16 = vadd.f32 %v796_v15, %v717_v14  ;;  %v7209_v17 = vpop.f32.mrb[1].mxu0  ;;  %v1069_v14 = vld [vmem:[%s10329_s9 + $0x10] sm:$0xff]  ;;  %v1070_v15 = vld [vmem:[%s10329_s9 + $0x18] sm:$0xff] }
 0x106   : > { %v817_v19 = vsel %vm816_vm2, %v8810_v16, 0.0 }
 0x107   : > { %818 = vadd.xlane.f32.xlu0 %v817_v19  ;;  %v801_v20 = vpop.f32.mrb[2].mxu0 }
 0x108   : > { %v8817_v21 = vadd.f32 %v801_v20, %v718_v18  ;;  %v7212_v22 = vpop.f32.mrb[3].mxu0 }
 0x109   : > { %v8104_v22 = vpack.c.bf16 %v1070_v15, %v1069_v14 }
 0x10a   : > { %v820_v24 = vsel %vm816_vm2, %v8817_v21, 0.0 }
 0x10b   : > { %821 = vadd.xlane.f32.xlu0 %v820_v24  ;;  %v806_v25 = vpop.f32.mrb[4].mxu0 }
 0x10c   : > { %v8824_v26 = vadd.f32 %v806_v25, %v719_v23  ;;  %v7215_v27 = vpop.f32.mrb[5].mxu0 }
 0x10e   : > { %v823_v28 = vsel %vm816_vm2, %v8824_v26, 0.0 }
 0x10f   : > { %824 = vadd.xlane.f32.xlu1 %v823_v28 }
 0x194   : > { %v819_v29 = vpop.xlane.xlu0 %818 }
 0x195   : > { %v827_v30 = vmul.f32 0.03125, %v819_v29 }
 0x197   : > { %v830_v31 = vsub.f32 %v8810_v16, %v827_v30  ;;  %v6484_v30 = vld [vmem:[%s10389_s8] ss:$0 sm:$0xff] }
 0x198   : > { %v822_v32 = vpop.xlane.xlu0 %821 }
 0x199   : > { %v828_v33 = vmul.f32 0.03125, %v822_v32  ;;  %v833_v34 = vmul.f32 %v830_v31, %v830_v31 }
 0x19b   : > { %v831_v35 = vsub.f32 %v8817_v21, %v828_v33  ;;  %v836_v36 = vsel %vm816_vm2, %v833_v34, 0.0 }
 0x19c   : > { %837 = vadd.xlane.f32.xlu1 %v836_v36  ;;  %v825_v37 = vpop.xlane.xlu1 %824 }
 0x19d   : > { %v829_v38 = vmul.f32 0.03125, %v825_v37  ;;  %v834_v39 = vmul.f32 %v831_v35, %v831_v35 }
 0x19f   : > { %v832_v40 = vsub.f32 %v8824_v26, %v829_v38  ;;  %v839_v41 = vsel %vm816_vm2, %v834_v39, 0.0 }
 0x1a0   : > { %840 = vadd.xlane.f32.xlu0 %v839_v41 }
 0x1a1   : > { %v835_v42 = vmul.f32 %v832_v40, %v832_v40 }
 0x1a3   : > { %v842_v43 = vsel %vm816_vm2, %v835_v42, 0.0 }
 0x1a4   : > { %843 = vadd.xlane.f32.xlu1 %v842_v43 }
 0x229   : > { %v838_v56 = vpop.xlane.xlu1 %837 }
 0x22a   : > { %v845_v57 = vmul.f32 0.03125, %v838_v56 }
 0x22c   : > { %v848_v58 = vadd.f32 1e-06, %v845_v57 }
 0x22d   : > { %v841_v59 = vpop.xlane.xlu0 %840 }
 0x22e   : > { %8398 = vrsqrt.f32 %v848_v58  ;;  %v846_v60 = vmul.f32 0.03125, %v841_v59  ;;  %v810_v59 = vlaneseq }
 0x230   : > { %v849_v61 = vadd.f32 1e-06, %v846_v60  ;;  %v811_v60 = vand.u32 127, %v810_v59 }
 0x231   : > { %v844_v62 = vpop.xlane.xlu1 %843 }
 0x232   : > { %8400 = vrsqrt.f32 %v849_v61  ;;  %v847_v63 = vmul.f32 0.03125, %v844_v62  ;;  %vm812_vm5 = vcmp.lt.s32.totalorder %v811_v60, 17  ;;  %v8599_v61 = vmov -1e+30   ;;  %v6516_v60 = vld [vmem:[%s10386_s26 + $0x30] sm:$0xff] }
 0x233   : > { %v8955_v62 = vsel %vm812_vm5, 0.0, %v8599_v61  ;;  %v6517_v61 = vld [vmem:[%s10386_s26 + $0x38] sm:$0xff] }
 0x234   : > { %v850_v0 = vadd.f32 1e-06, %v847_v63 }
 0x236   : > { %8402 = vrsqrt.f32 %v850_v0 }
 0x238   : > { %v8399_v1 = vpop.eup %8398 }
 0x239   : > { %v854_v4 = vmul.f32 %v8399_v1, %v830_v31 }
 0x23b   : > { %v863_v9 = vmul.f32 %v6478_v2, %v854_v4 }
 0x23c   : > { %v8401_v10 = vpop.eup %8400 }
 0x23d   : > { %v8874_v11 = vadd.f32 %v6479_v5, %v863_v9  ;;  %v855_v12 = vmul.f32 %v8401_v10, %v831_v35 }
 0x23f   : > { %v864_v17 = vmul.f32 %v6478_v2, %v855_v12  ;;  %7225 = vmatmul.mubr.msk.f32.vlgmr.msra.gmra.mrb[6].mxu0 %vm816_vm2, %v8874_v11  ;;  %7242 = vmatmul.mubr.msk.f32.vlgmr.msra.gmra.mrb[0].mxu1 %vm816_vm2, %v8874_v11 }
 0x240   : > { %v8403_v18 = vpop.eup %8402  ;;  %7227 = vmatprep.mubr.msk.f32.mxu0 %vm8597_vm0, %v8598_v6  ;;  %7244 = vmatprep.mubr.msk.f32.mxu1 %vm8597_vm0, %v8598_v6 }
 0x241   : > { %v8890_v19 = vadd.f32 %v6479_v5, %v864_v17  ;;  %v856_v20 = vmul.f32 %v8403_v18, %v832_v40  ;;  %8102 = vmatpush3.bf16.msra.mxu0 %v8101_v13 }
 0x242   : > { %8103 = vmatprep.subr.bf16.mxu0 %v8596_v3 }
 0x243   : > { %v865_v23 = vmul.f32 %v6478_v2, %v856_v20  ;;  %7228 = vmatmul.mubr.msk.f32.gmra.mrb[8].mxu0 %vm816_vm2, %v8890_v19  ;;  %7245 = vmatmul.mubr.msk.f32.gmra.mrb[2].mxu1 %vm816_vm2, %v8890_v19 }
 0x244   : > { %7230 = vmatprep.mubr.msk.f32.mxu0 %vm8597_vm0, %v8598_v6  ;;  %7247 = vmatprep.mubr.msk.f32.mxu1 %vm8597_vm0, %v8598_v6 }
 0x245   : > { %v8901_v24 = vadd.f32 %v6479_v5, %v865_v23  ;;  %8105 = vmatpush3.bf16.msra.mxu0 %v8104_v22 }
 0x246   : > { %8110 = vmatprep.subr.bf16.mxu0 %v8596_v3 }
 0x247   : > { %7231 = vmatmul.mubr.msk.f32.gmra.mrb[10].mxu0 %vm816_vm2, %v8901_v24  ;;  %7248 = vmatmul.mubr.msk.f32.gmra.mrb[4].mxu1 %vm816_vm2, %v8901_v24 }
 0x248   : > { %7258 = vmatprep.mubr.msk.f32.mxu0 %vm8597_vm0, %v8598_v6  ;;  %7273 = vmatprep.mubr.msk.f32.mxu1 %vm8597_vm0, %v8598_v6 }
 0x24b   : > { %7259 = vmatmul.mubr.msk.f32.vlgmr.msra.gmra.mrb[12].mxu0 %vm816_vm2, %v8874_v11 }
 0x24c   : > { %7261 = vmatprep.mubr.msk.f32.mxu0 %vm8597_vm0, %v8598_v6 }
 0x24f   : > { %7262 = vmatmul.mubr.msk.f32.gmra.mrb[14].mxu0 %vm816_vm2, %v8890_v19 }
 0x250   : > { %7264 = vmatprep.mubr.msk.f32.mxu0 %vm8597_vm0, %v8598_v6 }
 0x253   : > { %7265 = vmatmul.mubr.msk.f32.gmra.mrb[16].mxu0 %vm816_vm2, %v8901_v24 }
 0x254   : > { %7288 = vmatprep.mubr.msk.f32.mxu0 %vm8597_vm0, %v8598_v6 }
 0x312   : > { %v962_v25 = vpop.f32.mrb[6].mxu0  ;;  %v1053_v27 = vpop.f32.mrb[0].mxu1 }
 0x313   : > { %v7226_v28 = vpop.f32.mrb[7].mxu0  ;;  %v7243_v29 = vpop.f32.mrb[1].mxu1  ;;  %v1054_v33 = vadd.f32 %v6484_v30, %v1053_v27  ;;  %v963_v52 = vadd.f32 %v6480_v46, %v962_v25 }
 0x316   : > { %v967_v31 = vpop.f32.mrb[8].mxu0  ;;  %v1058_v32 = vpop.f32.mrb[2].mxu1 }
 0x317   : > { %v1059_v34 = vadd.f32 %v6484_v30, %v1058_v32  ;;  %v7229_v35 = vpop.f32.mrb[9].mxu0  ;;  %v7246_v36 = vpop.f32.mrb[3].mxu1  ;;  %v968_v56 = vadd.f32 %v6480_v46, %v967_v31 }
 0x319   : > { %v8107_v38 = vpack.c.bf16 %v1059_v34, %v1054_v33  ;;  %v1380_v34 = vld [vmem:[%s10331_s11] sm:$0xff] }
 0x31a   : > { %v972_v39 = vpop.f32.mrb[10].mxu0  ;;  %v1063_v40 = vpop.f32.mrb[4].mxu1 }
 0x31b   : > { %v7232_v41 = vpop.f32.mrb[11].mxu0  ;;  %v7249_v42 = vpop.f32.mrb[5].mxu1  ;;  %8109 = vmatpush3.bf16.xpose.msk.msra.mxu1 %vm8929_vm4, %v8107_v38  ;;  %v1064_v47 = vadd.f32 %v6484_v30, %v1063_v40  ;;  %v973_v58 = vadd.f32 %v6480_v46, %v972_v39  ;;  %v6505_v39 = vld [vmem:[%s10384_s6 + $0x20] sm:$0xff]  ;;  %v6506_v40 = vld [vmem:[%s10384_s6 + $0x28] sm:$0xff] }
 0x31c   : > { %7271 = vmatprep.subr.mxu1 %v8598_v6  ;;  %v8114_v42 = vpack.c.bf16 %v6506_v40, %v6505_v39  ;;  %v6519_v40 = vld [vmem:[%s10389_s8 + $0x1] ss:$0 sm:$0xff] }
 0x31e   : > { %v1144_v43 = vpop.f32.mrb[12].mxu0 }
 0x31f   : > { %v7260_v44 = vpop.f32.mrb[13].mxu0  ;;  %v1145_v49 = vadd.f32 %v6488_v45, %v1144_v43 }
 0x320   : > { %v6507_v44 = vld [vmem:[%s10384_s6 + $0x30] sm:$0xff] }
 0x322   : > { %v1149_v48 = vpop.f32.mrb[14].mxu0 }
 0x323   : > { %v1150_v50 = vadd.f32 %v6488_v45, %v1149_v48  ;;  %v7263_v51 = vpop.f32.mrb[15].mxu0  ;;  %7272 = vmatpush3.xpose.msk.msra.mxu1 %vm1158_vm3, %v1064_v47 }
 0x324   : > { %7297 = vmatprep.subr.mxu1 %v8598_v6  ;;  %v6523_v51 = vld [vmem:[%s10329_s9 + $0x20] sm:$0xff] }
 0x325   : > { %v8111_v53 = vpack.c.bf16 %v1150_v50, %v1145_v49 }
 0x326   : > { %v1154_v54 = vpop.f32.mrb[16].mxu0  ;;  %7274 = vmatmul.mubr.msk.f32.vlgmr.msra.gmra.mrb[6].mxu1 %vm1158_vm3, %v963_v52  ;;  %v6524_v52 = vld [vmem:[%s10329_s9 + $0x28] sm:$0xff] }
 0x327   : > { %v7266_v55 = vpop.f32.mrb[17].mxu0  ;;  %8112 = vmatpush3.bf16.msra.mxu0 %v8111_v53  ;;  %7276 = vmatprep.mubr.msk.f32.mxu1 %vm8597_vm0, %v8598_v6  ;;  %v1155_v57 = vadd.f32 %v6488_v45, %v1154_v54  ;;  %v6508_v45 = vld [vmem:[%s10384_s6 + $0x38] sm:$0xff]  ;;  %v8126_v53 = vpack.c.bf16 %v6524_v52, %v6523_v51  ;;  %v6525_v54 = vld [vmem:[%s10329_s9 + $0x30] sm:$0xff] }
 0x328   : > { %7286 = vmatprep.subr.mxu0 %v8598_v6  ;;  %7298 = vmatpush3.msra.mxu1 %v1380_v34  ;;  %v8117_v47 = vpack.c.bf16 %v6508_v45, %v6507_v44  ;;  %v6526_v55 = vld [vmem:[%s10329_s9 + $0x38] sm:$0xff] }
 0x329   : > { %8119 = vmatprep.subr.bf16.mxu1 %v8596_v3 }
 0x32a   : > { %7277 = vmatmul.mubr.msk.f32.gmra.mrb[8].mxu1 %vm1158_vm3, %v968_v56  ;;  %v8129_v56 = vpack.c.bf16 %v6526_v55, %v6525_v54 }
 0x32b   : > { %7287 = vmatpush3.msra.mxu0 %v1155_v57  ;;  %7279 = vmatprep.mubr.msk.f32.mxu1 %vm8597_vm0, %v8598_v6  ;;  %v6514_v57 = vld [vmem:[%s10386_s26 + $0x20] sm:$0xff] }
 0x32c   : > { %8113 = vmatprep.subr.bf16.mxu0 %v8596_v3 }
 0x32e   : > { %7280 = vmatmul.mubr.msk.f32.gmra.mrb[10].mxu1 %vm1158_vm3, %v973_v58  ;;  %v6515_v58 = vld [vmem:[%s10386_s26 + $0x28] sm:$0xff] }
 0x32f   : > { %7299 = vmatprep.mubr.msk.f32.mxu1 %vm8597_vm0, %v8598_v6  ;;  %v8120_v59 = vpack.c.bf16 %v6515_v58, %v6514_v57 }
 0x3f9   : > { %v1243_v63 = vpop.f32.mrb[6].mxu1 }
 0x3fa   : > { %v1244_v0 = vadd.f32 %v1243_v63, %v8955_v62  ;;  %v7275_v1 = vpop.f32.mrb[7].mxu1 }
 0x3fb   : > { %v8123_v1 = vpack.c.bf16 %v6517_v61, %v6516_v60 }
 0x3fc   : > { %v1258_v2 = vsel %vm1257_vm6, %v1244_v0, -inf }
 0x3fd   : > { %1259 = vmax.xlane.f32.xlu0 %v1258_v2  ;;  %v1248_v4 = vpop.f32.mrb[8].mxu1 }
 0x3fe   : > { %v1249_v5 = vadd.f32 %v1248_v4, %v8955_v62  ;;  %v7278_v7 = vpop.f32.mrb[9].mxu1 }
 0x400   : > { %v1261_v8 = vsel %vm1257_vm6, %v1249_v5, -inf }
 0x401   : > { %1262 = vmax.xlane.f32.xlu1 %v1261_v8  ;;  %v1253_v9 = vpop.f32.mrb[10].mxu1 }
 0x402   : > { %v1254_v10 = vadd.f32 %v1253_v9, %v8955_v62  ;;  %v7281_v12 = vpop.f32.mrb[11].mxu1 }
 0x404   : > { %v1264_v13 = vsel %vm1257_vm6, %v1254_v10, -inf }
 0x405   : > { %1265 = vmax.xlane.f32.xlu0 %v1264_v13 }
 0x48a   : > { %v1260_v14 = vpop.xlane.xlu0 %1259 }
 0x48b   : > { %v1267_v15 = vsub.f32 %v1244_v0, %v1260_v14 }
 0x48d   : > { %v1270_v17 = vmul.f32 1.442695, %v1267_v15 }
 0x48e   : > { %v1263_v18 = vpop.xlane.xlu1 %1262 }
 0x48f   : > { %8404 = vpow2.f32 %v1270_v17  ;;  %v1268_v20 = vsub.f32 %v1249_v5, %v1263_v18  ;;  %v6528_v18 = vld [vmem:[%s10330_s10 + $0x1] ss:$0 sm:$0xff] }
 0x491   : > { %v1272_v22 = vmul.f32 1.442695, %v1268_v20 }
 0x492   : > { %v1266_v23 = vpop.xlane.xlu0 %1265 }
 0x493   : > { %8406 = vpow2.f32 %v1272_v22  ;;  %v1269_v25 = vsub.f32 %v1254_v10, %v1266_v23 }
 0x495   : > { %v1274_v27 = vmul.f32 1.442695, %v1269_v25 }
 0x497   : > { %8408 = vpow2.f32 %v1274_v27 }
 0x499   : > { %v8405_v28 = vpop.eup %8404 }
 0x49a   : > { %v1276_v29 = vsel %vm1257_vm6, %v8405_v28, 0.0 }
 0x49b   : > { %1277 = vadd.xlane.f32.xlu1 %v1276_v29 }
 0x49d   : > { %v8407_v30 = vpop.eup %8406 }
 0x49e   : > { %v1279_v31 = vsel %vm1257_vm6, %v8407_v30, 0.0 }
 0x49f   : > { %1280 = vadd.xlane.f32.xlu0 %v1279_v31 }
 0x4a1   : > { %v8409_v32 = vpop.eup %8408 }
 0x4a2   : > { %v1282_v33 = vsel %vm1257_vm6, %v8409_v32, 0.0 }
 0x4a3   : > { %1283 = vadd.xlane.f32.xlu1 %v1282_v33 }
 0x528   : > { %v1278_v35 = vpop.xlane.xlu1 %1277 }
 0x529   : > { %8410 = vrcp.f32 %v1278_v35 }
 0x52c   : > { %v1281_v36 = vpop.xlane.xlu0 %1280 }
 0x52d   : > { %8412 = vrcp.f32 %v1281_v36 }
 0x530   : > { %v1284_v38 = vpop.xlane.xlu1 %1283 }
 0x531   : > { %8414 = vrcp.f32 %v1284_v38 }
 0x533   : > { %v8411_v41 = vpop.eup %8410 }
 0x534   : > { %v1288_v43 = vmul.f32 %v8411_v41, %v8405_v28 }
 0x536   : > { %7289 = vmatmul.mubr.msk.f32.vlgmr.msra.gmra.mrb[18].mxu0 %vm1257_vm6, %v1288_v43 }
 0x537   : > { %v8413_v46 = vpop.eup %8412  ;;  %7291 = vmatprep.mubr.msk.f32.mxu0 %vm8597_vm0, %v8598_v6  ;;  %8115 = vmatpush3.bf16.msra.mxu0 %v8114_v42 }
 0x538   : > { %v1289_v48 = vmul.f32 %v8413_v46, %v8407_v30  ;;  %8116 = vmatprep.subr.bf16.mxu0 %v8596_v3 }
 0x53a   : > { %7292 = vmatmul.mubr.msk.f32.gmra.mrb[20].mxu0 %vm1257_vm6, %v1289_v48  ;;  %v6510_v48 = vld [vmem:[%s10392_s28 + $0x1] ss:$0 sm:$0xff] }
 0x53b   : > { %v8415_v49 = vpop.eup %8414  ;;  %7294 = vmatprep.mubr.msk.f32.mxu0 %vm8597_vm0, %v8598_v6  ;;  %8118 = vmatpush3.bf16.msra.mxu0 %v8117_v47 }
 0x53c   : > { %v1290_v50 = vmul.f32 %v8415_v49, %v8409_v32  ;;  %8125 = vmatprep.subr.bf16.mxu0 %v8596_v3 }
 0x53e   : > { %7295 = vmatmul.mubr.msk.f32.gmra.mrb[22].mxu0 %vm1257_vm6, %v1290_v50 }
 0x53f   : > { %7316 = vmatprep.mubr.msk.f32.mxu0 %vm8597_vm0, %v8598_v6 }
 0x542   : > { %7317 = vmatmul.mubr.msk.f32.vlgmr.msra.gmra.mrb[24].mxu0 %vm816_vm2, %v8874_v11 }
 0x543   : > { %7319 = vmatprep.mubr.msk.f32.mxu0 %vm8597_vm0, %v8598_v6  ;;  %8127 = vmatpush3.bf16.msra.mxu0 %v8126_v53 }
 0x544   : > { %8128 = vmatprep.subr.bf16.mxu0 %v8596_v3 }
 0x546   : > { %7320 = vmatmul.mubr.msk.f32.gmra.mrb[26].mxu0 %vm816_vm2, %v8890_v19 }
 0x547   : > { %7322 = vmatprep.mubr.msk.f32.mxu0 %vm8597_vm0, %v8598_v6  ;;  %8130 = vmatpush3.bf16.msra.mxu0 %v8129_v56 }
 0x548   : > { %8135 = vmatprep.subr.bf16.mxu0 %v8596_v3 }
 0x54a   : > { %7323 = vmatmul.mubr.msk.f32.gmra.mrb[28].mxu0 %vm816_vm2, %v8901_v24 }
 0x54b   : > { %7350 = vmatprep.mubr.msk.f32.mxu0 %vm8597_vm0, %v8598_v6 }
 0x54e   : > { %7351 = vmatmul.mubr.msk.f32.vlgmr.msra.gmra.mrb[30].mxu0 %vm816_vm2, %v8874_v11 }
 0x54f   : > { %7353 = vmatprep.mubr.msk.f32.mxu0 %vm8597_vm0, %v8598_v6 }
 0x552   : > { %7354 = vmatmul.mubr.msk.f32.gmra.mrb[32].mxu0 %vm816_vm2, %v8890_v19 }
 0x553   : > { %7356 = vmatprep.mubr.msk.f32.mxu0 %vm8597_vm0, %v8598_v6 }
 0x556   : > { %7357 = vmatmul.mubr.msk.f32.gmra.mrb[34].mxu0 %vm816_vm2, %v8901_v24 }
 0x557   : > { %7380 = vmatprep.mubr.msk.f32.mxu0 %vm8597_vm0, %v8598_v6 }
 0x609   : > { %v1366_v63 = vpop.f32.mrb[18].mxu0 }
 0x60a   : > { %v7290_v0 = vpop.f32.mrb[19].mxu0  ;;  %7300 = vmatmul.mubr.msk.f32.vlgmr.msra.gmra.mrb[12].mxu1 %vm1158_vm3, %v1366_v63 }
 0x60b   : > { %7302 = vmatprep.mubr.msk.f32.mxu1 %vm8597_vm0, %v8598_v6  ;;  %8121 = vmatpush3.bf16.msra.mxu1 %v8120_v59 }
 0x60c   : > { %8122 = vmatprep.subr.bf16.mxu1 %v8596_v3 }
 0x60d   : > { %v1371_v2 = vpop.f32.mrb[20].mxu0 }
 0x60e   : > { %v7293_v4 = vpop.f32.mrb[21].mxu0  ;;  %7303 = vmatmul.mubr.msk.f32.gmra.mrb[14].mxu1 %vm1158_vm3, %v1371_v2 }
 0x60f   : > { %7305 = vmatprep.mubr.msk.f32.mxu1 %vm8597_vm0, %v8598_v6  ;;  %8124 = vmatpush3.bf16.msra.mxu1 %v8123_v1 }
 0x610   : > { %8131 = vmatprep.subr.bf16.mxu1 %v8596_v3 }
 0x611   : > { %v1376_v5 = vpop.f32.mrb[22].mxu0 }
 0x612   : > { %v7296_v7 = vpop.f32.mrb[23].mxu0  ;;  %7306 = vmatmul.mubr.msk.f32.gmra.mrb[16].mxu1 %vm1158_vm3, %v1376_v5 }
 0x613   : > { %7333 = vmatprep.mubr.msk.f32.mxu1 %vm8597_vm0, %v8598_v6 }
 0x615   : > { %v1558_v8 = vpop.f32.mrb[24].mxu0 }
 0x616   : > { %v7318_v9 = vpop.f32.mrb[25].mxu0  ;;  %7334 = vmatmul.mubr.msk.f32.vlgmr.msra.gmra.mrb[18].mxu1 %vm816_vm2, %v8874_v11  ;;  %v1559_v50 = vadd.f32 %v6510_v48, %v1558_v8 }
 0x617   : > { %7336 = vmatprep.mubr.msk.f32.mxu1 %vm8597_vm0, %v8598_v6 }
 0x619   : > { %v1563_v10 = vpop.f32.mrb[26].mxu0 }
 0x61a   : > { %v7321_v12 = vpop.f32.mrb[27].mxu0  ;;  %7337 = vmatmul.mubr.msk.f32.gmra.mrb[20].mxu1 %vm816_vm2, %v8890_v19  ;;  %v1564_v51 = vadd.f32 %v6510_v48, %v1563_v10 }
 0x61b   : > { %7339 = vmatprep.mubr.msk.f32.mxu1 %vm8597_vm0, %v8598_v6 }
 0x61d   : > { %v1568_v13 = vpop.f32.mrb[28].mxu0 }
 0x61e   : > { %v7324_v14 = vpop.f32.mrb[29].mxu0  ;;  %7340 = vmatmul.mubr.msk.f32.gmra.mrb[22].mxu1 %vm816_vm2, %v8901_v24  ;;  %v1569_v52 = vadd.f32 %v6510_v48, %v1568_v13  ;;  %v6565_v48 = vld [vmem:[%s10329_s9 + $0x50] sm:$0xff] }
 0x61f   : > { %7365 = vmatprep.mubr.msk.f32.mxu1 %vm8597_vm0, %v8598_v6 }
 0x621   : > { %v1744_v15 = vpop.f32.mrb[30].mxu0 }
 0x622   : > { %v7352_v17 = vpop.f32.mrb[31].mxu0  ;;  %v1745_v22 = vadd.f32 %v6528_v18, %v1744_v15 }
 0x625   : > { %v1749_v20 = vpop.f32.mrb[32].mxu0 }
 0x626   : > { %v1750_v23 = vadd.f32 %v6528_v18, %v1749_v20  ;;  %v7355_v25 = vpop.f32.mrb[33].mxu0 }
 0x628   : > { %v8136_v27 = vpack.c.bf16 %v1750_v23, %v1745_v22  ;;  %v6541_v23 = vld [vmem:[%s10331_s11 + $0x8] sm:$0xff] }
 0x629   : > { %v1754_v28 = vpop.f32.mrb[34].mxu0 }
 0x62a   : > { %v7358_v29 = vpop.f32.mrb[35].mxu0  ;;  %8137 = vmatpush3.bf16.msra.mxu0 %v8136_v27  ;;  %v1755_v30 = vadd.f32 %v6528_v18, %v1754_v28 }
 0x62b   : > { %7378 = vmatprep.subr.mxu0 %v8598_v6  ;;  %v6545_v29 = vld [vmem:[%s10384_s6 + $0x40] sm:$0xff] }
 0x62e   : > { %7379 = vmatpush3.msra.mxu0 %v1755_v30  ;;  %v6546_v30 = vld [vmem:[%s10384_s6 + $0x48] sm:$0xff] }
 0x62f   : > { %8138 = vmatprep.subr.bf16.mxu0 %v8596_v3 }
 0x6dd   : > { %v9071_v31 = vpop.f32.mrb[12].mxu1 }
 0x6de   : > { %v7301_v32 = vpop.f32.mrb[13].mxu1 }
 0x6e1   : > { %v9073_v33 = vpop.f32.mrb[14].mxu1 }
 0x6e2   : > { %v7304_v34 = vpop.f32.mrb[15].mxu1 }
 0x6e3   : > { %v8139_v34 = vpack.c.bf16 %v6546_v30, %v6545_v29 }
 0x6e5   : > { %v9075_v35 = vpop.f32.mrb[16].mxu1 }
 0x6e6   : > { %v7307_v36 = vpop.f32.mrb[17].mxu1 }
 0x6e9   : > { %v1651_v38 = vpop.f32.mrb[18].mxu1 }
 0x6ea   : > { %v7335_v39 = vpop.f32.mrb[19].mxu1  ;;  %v1652_v42 = vadd.f32 %v6519_v40, %v1651_v38  ;;  %v6547_v38 = vld [vmem:[%s10384_s6 + $0x50] sm:$0xff] }
 0x6eb   : > { %v6548_v39 = vld [vmem:[%s10384_s6 + $0x58] sm:$0xff] }
 0x6ed   : > { %v1656_v41 = vpop.f32.mrb[20].mxu1 }
 0x6ee   : > { %v1657_v43 = vadd.f32 %v6519_v40, %v1656_v41  ;;  %v7338_v44 = vpop.f32.mrb[21].mxu1  ;;  %v8142_v41 = vpack.c.bf16 %v6548_v39, %v6547_v38 }
 0x6f0   : > { %v8132_v45 = vpack.c.bf16 %v1657_v43, %v1652_v42 }
 0x6f1   : > { %v1661_v46 = vpop.f32.mrb[22].mxu1 }
 0x6f2   : > { %v7341_v47 = vpop.f32.mrb[23].mxu1  ;;  %8134 = vmatpush3.bf16.xpose.msk.msra.mxu1 %vm8929_vm4, %v8132_v45  ;;  %v1662_v49 = vadd.f32 %v6519_v40, %v1661_v46  ;;  %v6563_v45 = vld [vmem:[%s10329_s9 + $0x40] sm:$0xff]  ;;  %v6564_v46 = vld [vmem:[%s10329_s9 + $0x48] sm:$0xff] }
 0x6f3   : > { %7363 = vmatprep.subr.mxu1 %v8598_v6  ;;  %v8151_v47 = vpack.c.bf16 %v6564_v46, %v6563_v45 }
 0x6fa   : > { %7364 = vmatpush3.xpose.msk.msra.mxu1 %vm1158_vm3, %v1662_v49  ;;  %v6566_v49 = vld [vmem:[%s10329_s9 + $0x58] sm:$0xff] }
 0x6fb   : > { %7389 = vmatprep.subr.mxu1 %v8598_v6 }
 0x6fd   : > { %7366 = vmatmul.mubr.msk.f32.vlgmr.msra.gmra.mrb[24].mxu1 %vm1158_vm3, %v1559_v50  ;;  %v8154_v50 = vpack.c.bf16 %v6566_v49, %v6565_v48 }
 0x6fe   : > { %7368 = vmatprep.mubr.msk.f32.mxu1 %vm8597_vm0, %v8598_v6  ;;  %7390 = vmatpush3.msra.mxu1 %v6541_v23  ;;  %v6504_v23 = vld [vmem:[%s10332_s12] ss:$0 sm:$0xff] }
 0x6ff   : > { %8144 = vmatprep.subr.bf16.mxu1 %v8596_v3  ;;  %v1477_v30 = vadd.f32 %v6504_v23, %v9073_v33  ;;  %v1478_v38 = vadd.f32 %v6504_v23, %v9075_v35  ;;  %v6550_v35 = vld [vmem:[%s10392_s28 + $0x2] ss:$0 sm:$0xff] }
 0x701   : > { %7369 = vmatmul.mubr.msk.f32.gmra.mrb[26].mxu1 %vm1158_vm3, %v1564_v51  ;;  %v6554_v51 = vld [vmem:[%s10386_s26 + $0x40] sm:$0xff] }
 0x702   : > { %7371 = vmatprep.mubr.msk.f32.mxu1 %vm8597_vm0, %v8598_v6 }
 0x705   : > { %7372 = vmatmul.mubr.msk.f32.gmra.mrb[28].mxu1 %vm1158_vm3, %v1569_v52  ;;  %v6555_v52 = vld [vmem:[%s10386_s26 + $0x48] sm:$0xff] }
 0x706   : > { %7391 = vmatprep.mubr.msk.f32.mxu1 %vm8597_vm0, %v8598_v6 }
 0x7d0   : > { %v1842_v53 = vpop.f32.mrb[24].mxu1 }
 0x7d1   : > { %v1843_v54 = vadd.f32 %v1842_v53, %v8955_v62  ;;  %v7367_v55 = vpop.f32.mrb[25].mxu1  ;;  %v8145_v53 = vpack.c.bf16 %v6555_v52, %v6554_v51 }
 0x7d2   : > { %v6557_v55 = vld [vmem:[%s10386_s26 + $0x58] sm:$0xff] }
 0x7d3   : > { %v1856_v56 = vsel %vm1257_vm6, %v1843_v54, -inf }
 0x7d4   : > { %1857 = vmax.xlane.f32.xlu0 %v1856_v56  ;;  %v1847_v57 = vpop.f32.mrb[26].mxu1 }
 0x7d5   : > { %v1848_v58 = vadd.f32 %v1847_v57, %v8955_v62  ;;  %v7370_v59 = vpop.f32.mrb[27].mxu1 }
 0x7d7   : > { %v1859_v60 = vsel %vm1257_vm6, %v1848_v58, -inf }
 0x7d8   : > { %1860 = vmax.xlane.f32.xlu1 %v1859_v60  ;;  %v1852_v61 = vpop.f32.mrb[28].mxu1 }
 0x7d9   : > { %v1853_v63 = vadd.f32 %v1852_v61, %v8955_v62  ;;  %v7373_v0 = vpop.f32.mrb[29].mxu1 }
 0x7db   : > { %v1862_v1 = vsel %vm1257_vm6, %v1853_v63, -inf }
 0x7dc   : > { %1863 = vmax.xlane.f32.xlu0 %v1862_v1 }
 0x861   : > { %v1858_v2 = vpop.xlane.xlu0 %1857 }
 0x862   : > { %v1865_v4 = vsub.f32 %v1843_v54, %v1858_v2  ;;  %v6556_v54 = vld [vmem:[%s10386_s26 + $0x50] sm:$0xff] }
 0x864   : > { %v1868_v5 = vmul.f32 1.442695, %v1865_v4 }
 0x865   : > { %v1861_v7 = vpop.xlane.xlu1 %1860 }
 0x866   : > { %8416 = vpow2.f32 %v1868_v5  ;;  %v1866_v8 = vsub.f32 %v1848_v58, %v1861_v7  ;;  %v8148_v58 = vpack.c.bf16 %v6557_v55, %v6556_v54 }
 0x868   : > { %v1870_v9 = vmul.f32 1.442695, %v1866_v8 }
 0x869   : > { %v1864_v10 = vpop.xlane.xlu0 %1863 }
 0x86a   : > { %8418 = vpow2.f32 %v1870_v9  ;;  %v1867_v12 = vsub.f32 %v1853_v63, %v1864_v10  ;;  %v6568_v10 = vld [vmem:[%s10330_s10 + $0x2] ss:$0 sm:$0xff] }
 0x86c   : > { %v1872_v13 = vmul.f32 1.442695, %v1867_v12 }
 0x86e   : > { %8420 = vpow2.f32 %v1872_v13 }
 0x870   : > { %v8417_v14 = vpop.eup %8416 }
 0x871   : > { %v1874_v15 = vsel %vm1257_vm6, %v8417_v14, 0.0 }
 0x872   : > { %1875 = vadd.xlane.f32.xlu1 %v1874_v15 }
 0x874   : > { %v8419_v17 = vpop.eup %8418 }
 0x875   : > { %v1877_v18 = vsel %vm1257_vm6, %v8419_v17, 0.0 }
 0x876   : > { %1878 = vadd.xlane.f32.xlu0 %v1877_v18 }
 0x878   : > { %v8421_v20 = vpop.eup %8420 }
 0x879   : > { %v1880_v22 = vsel %vm1257_vm6, %v8421_v20, 0.0 }
 0x87a   : > { %1881 = vadd.xlane.f32.xlu1 %v1880_v22 }
 0x8ff   : > { %v1876_v25 = vpop.xlane.xlu1 %1875 }
 0x900   : > { %8422 = vrcp.f32 %v1876_v25  ;;  %v1476_v25 = vadd.f32 %v6504_v23, %v9071_v31  ;;  %v6559_v31 = vld [vmem:[%s10389_s8 + $0x2] ss:$0 sm:$0xff] }
 0x903   : > { %v1879_v27 = vpop.xlane.xlu0 %1878 }
 0x904   : > { %8424 = vrcp.f32 %v1879_v27 }
 0x907   : > { %v1882_v28 = vpop.xlane.xlu1 %1881 }
 0x908   : > { %8426 = vrcp.f32 %v1882_v28 }
 0x90a   : > { %v8423_v32 = vpop.eup %8422 }
 0x90b   : > { %v1886_v36 = vmul.f32 %v8423_v32, %v8417_v14 }
 0x90d   : > { %7381 = vmatmul.mubr.msk.f32.vlgmr.msra.gmra.mrb[36].mxu0 %vm1257_vm6, %v1886_v36 }
 0x90e   : > { %v8425_v40 = vpop.eup %8424  ;;  %7383 = vmatprep.mubr.msk.f32.mxu0 %vm8597_vm0, %v8598_v6  ;;  %8140 = vmatpush3.bf16.msra.mxu0 %v8139_v34 }
 0x90f   : > { %v1887_v42 = vmul.f32 %v8425_v40, %v8419_v17  ;;  %8141 = vmatprep.subr.bf16.mxu0 %v8596_v3 }
 0x911   : > { %7384 = vmatmul.mubr.msk.f32.gmra.mrb[38].mxu0 %vm1257_vm6, %v1887_v42 }
 0x912   : > { %v8427_v43 = vpop.eup %8426  ;;  %7386 = vmatprep.mubr.msk.f32.mxu0 %vm8597_vm0, %v8598_v6  ;;  %8143 = vmatpush3.bf16.msra.mxu0 %v8142_v41 }
 0x913   : > { %v1888_v44 = vmul.f32 %v8427_v43, %v8421_v20  ;;  %8150 = vmatprep.subr.bf16.mxu0 %v8596_v3 }
 0x915   : > { %7387 = vmatmul.mubr.msk.f32.gmra.mrb[40].mxu0 %vm1257_vm6, %v1888_v44 }
 0x916   : > { %7408 = vmatprep.mubr.msk.f32.mxu0 %vm8597_vm0, %v8598_v6 }
 0x919   : > { %7409 = vmatmul.mubr.msk.f32.vlgmr.msra.gmra.mrb[42].mxu0 %vm816_vm2, %v8874_v11 }
 0x91a   : > { %7411 = vmatprep.mubr.msk.f32.mxu0 %vm8597_vm0, %v8598_v6  ;;  %8152 = vmatpush3.bf16.msra.mxu0 %v8151_v47 }
 0x91b   : > { %8153 = vmatprep.subr.bf16.mxu0 %v8596_v3 }
 0x91d   : > { %7412 = vmatmul.mubr.msk.f32.gmra.mrb[44].mxu0 %vm816_vm2, %v8890_v19 }
 0x91e   : > { %7414 = vmatprep.mubr.msk.f32.mxu0 %vm8597_vm0, %v8598_v6  ;;  %8155 = vmatpush3.bf16.msra.mxu0 %v8154_v50 }
 0x91f   : > { %8160 = vmatprep.subr.bf16.mxu0 %v8596_v3 }
 0x921   : > { %7415 = vmatmul.mubr.msk.f32.gmra.mrb[46].mxu0 %vm816_vm2, %v8901_v24 }
 0x922   : > { %7442 = vmatprep.mubr.msk.f32.mxu0 %vm8597_vm0, %v8598_v6 }
 0x925   : > { %7443 = vmatmul.mubr.msk.f32.vlgmr.msra.gmra.mrb[48].mxu0 %vm816_vm2, %v8874_v11 }
 0x926   : > { %7445 = vmatprep.mubr.msk.f32.mxu0 %vm8597_vm0, %v8598_v6 }
 0x929   : > { %7446 = vmatmul.mubr.msk.f32.gmra.mrb[50].mxu0 %vm816_vm2, %v8890_v19 }
 0x92a   : > { %7448 = vmatprep.mubr.msk.f32.mxu0 %vm8597_vm0, %v8598_v6 }
 0x92d   : > { %7449 = vmatmul.mubr.msk.f32.gmra.mrb[52].mxu0 %vm816_vm2, %v8901_v24 }
 0x92e   : > { %7472 = vmatprep.mubr.msk.f32.mxu0 %vm8597_vm0, %v8598_v6 }
 0x9e0   : > { %v1964_v56 = vpop.f32.mrb[36].mxu0 }
 0x9e1   : > { %v7382_v57 = vpop.f32.mrb[37].mxu0  ;;  %7392 = vmatmul.mubr.msk.f32.vlgmr.msra.gmra.mrb[30].mxu1 %vm1158_vm3, %v1964_v56 }
 0x9e2   : > { %7394 = vmatprep.mubr.msk.f32.mxu1 %vm8597_vm0, %v8598_v6  ;;  %8146 = vmatpush3.bf16.msra.mxu1 %v8145_v53 }
 0x9e3   : > { %8147 = vmatprep.subr.bf16.mxu1 %v8596_v3 }
 0x9e4   : > { %v1969_v59 = vpop.f32.mrb[38].mxu0 }
 0x9e5   : > { %v7385_v60 = vpop.f32.mrb[39].mxu0  ;;  %7395 = vmatmul.mubr.msk.f32.gmra.mrb[32].mxu1 %vm1158_vm3, %v1969_v59 }
 0x9e6   : > { %7397 = vmatprep.mubr.msk.f32.mxu1 %vm8597_vm0, %v8598_v6  ;;  %8149 = vmatpush3.bf16.msra.mxu1 %v8148_v58 }
 0x9e7   : > { %8156 = vmatprep.subr.bf16.mxu1 %v8596_v3 }
 0x9e8   : > { %v1974_v61 = vpop.f32.mrb[40].mxu0 }
 0x9e9   : > { %v7388_v63 = vpop.f32.mrb[41].mxu0  ;;  %7398 = vmatmul.mubr.msk.f32.gmra.mrb[34].mxu1 %vm1158_vm3, %v1974_v61 }
 0x9ea   : > { %7425 = vmatprep.mubr.msk.f32.mxu1 %vm8597_vm0, %v8598_v6 }
 0x9ec   : > { %v2151_v0 = vpop.f32.mrb[42].mxu0 }
 0x9ed   : > { %v7410_v1 = vpop.f32.mrb[43].mxu0  ;;  %7426 = vmatmul.mubr.msk.f32.vlgmr.msra.gmra.mrb[36].mxu1 %vm816_vm2, %v8874_v11  ;;  %v2152_v51 = vadd.f32 %v6550_v35, %v2151_v0 }
 0x9ee   : > { %7428 = vmatprep.mubr.msk.f32.mxu1 %vm8597_vm0, %v8598_v6 }
 0x9f0   : > { %v2156_v2 = vpop.f32.mrb[44].mxu0 }
 0x9f1   : > { %v7413_v4 = vpop.f32.mrb[45].mxu0  ;;  %7429 = vmatmul.mubr.msk.f32.gmra.mrb[38].mxu1 %vm816_vm2, %v8890_v19  ;;  %v2157_v52 = vadd.f32 %v6550_v35, %v2156_v2 }
 0x9f2   : > { %7431 = vmatprep.mubr.msk.f32.mxu1 %vm8597_vm0, %v8598_v6 }
 0x9f4   : > { %v2161_v5 = vpop.f32.mrb[46].mxu0 }
 0x9f5   : > { %v7416_v7 = vpop.f32.mrb[47].mxu0  ;;  %7432 = vmatmul.mubr.msk.f32.gmra.mrb[40].mxu1 %vm816_vm2, %v8901_v24  ;;  %v2162_v53 = vadd.f32 %v6550_v35, %v2161_v5  ;;  %v6605_v35 = vld [vmem:[%s10329_s9 + $0x70] sm:$0xff] }
 0x9f6   : > { %7457 = vmatprep.mubr.msk.f32.mxu1 %vm8597_vm0, %v8598_v6 }
 0x9f8   : > { %v2337_v8 = vpop.f32.mrb[48].mxu0 }
 0x9f9   : > { %v7444_v9 = vpop.f32.mrb[49].mxu0  ;;  %v2338_v13 = vadd.f32 %v6568_v10, %v2337_v8 }
 0x9fc   : > { %v2342_v12 = vpop.f32.mrb[50].mxu0 }
 0x9fd   : > { %v2343_v14 = vadd.f32 %v6568_v10, %v2342_v12  ;;  %v7447_v15 = vpop.f32.mrb[51].mxu0 }
 0x9ff   : > { %v8161_v17 = vpack.c.bf16 %v2343_v14, %v2338_v13 }
 0xa00   : > { %v2347_v18 = vpop.f32.mrb[52].mxu0 }
 0xa01   : > { %v7450_v20 = vpop.f32.mrb[53].mxu0  ;;  %8162 = vmatpush3.bf16.msra.mxu0 %v8161_v17  ;;  %v2348_v22 = vadd.f32 %v6568_v10, %v2347_v18 }
 0xa02   : > { %7470 = vmatprep.subr.mxu0 %v8598_v6 }
 0xa05   : > { %7471 = vmatpush3.msra.mxu0 %v2348_v22 }
 0xa06   : > { %8163 = vmatprep.subr.bf16.mxu0 %v8596_v3 }
 0xab4   : > { %v2055_v27 = vpop.f32.mrb[30].mxu1 }
 0xab5   : > { %v9215_v28 = vadd.f32 %v2055_v27, %v1476_v25  ;;  %v7393_v29 = vpop.f32.mrb[31].mxu1  ;;  %v6581_v25 = vld [vmem:[%s10331_s11 + $0x10] sm:$0xff] }
 0xab8   : > { %v2060_v32 = vpop.f32.mrb[32].mxu1 }
 0xab9   : > { %v9218_v34 = vadd.f32 %v2060_v32, %v1477_v30  ;;  %v7396_v36 = vpop.f32.mrb[33].mxu1  ;;  %v6585_v32 = vld [vmem:[%s10384_s6 + $0x60] sm:$0xff] }
 0xaba   : > { %v6586_v36 = vld [vmem:[%s10384_s6 + $0x68] sm:$0xff] }
 0xabc   : > { %v2065_v39 = vpop.f32.mrb[34].mxu1 }
 0xabd   : > { %v9221_v40 = vadd.f32 %v2065_v39, %v1478_v38  ;;  %v7399_v41 = vpop.f32.mrb[35].mxu1  ;;  %v8164_v39 = vpack.c.bf16 %v6586_v36, %v6585_v32 }
 0xac0   : > { %v2244_v42 = vpop.f32.mrb[36].mxu1 }
 0xac1   : > { %v7427_v43 = vpop.f32.mrb[37].mxu1  ;;  %v2245_v45 = vadd.f32 %v6559_v31, %v2244_v42  ;;  %v6587_v42 = vld [vmem:[%s10384_s6 + $0x70] sm:$0xff] }
 0xac2   : > { %v6588_v43 = vld [vmem:[%s10384_s6 + $0x78] sm:$0xff] }
 0xac4   : > { %v2249_v44 = vpop.f32.mrb[38].mxu1 }
 0xac5   : > { %v2250_v46 = vadd.f32 %v6559_v31, %v2249_v44  ;;  %v7430_v33 = vpop.f32.mrb[39].mxu1  ;;  %v8167_v44 = vpack.c.bf16 %v6588_v43, %v6587_v42 }
 0xac7   : > { %v8157_v47 = vpack.c.bf16 %v2250_v46, %v2245_v45 }
 0xac8   : > { %v2254_v48 = vpop.f32.mrb[40].mxu1 }
 0xac9   : > { %v7433_v49 = vpop.f32.mrb[41].mxu1  ;;  %8159 = vmatpush3.bf16.xpose.msk.msra.mxu1 %vm8929_vm4, %v8157_v47  ;;  %v2255_v50 = vadd.f32 %v6559_v31, %v2254_v48  ;;  %v6603_v47 = vld [vmem:[%s10329_s9 + $0x60] sm:$0xff]  ;;  %v6604_v48 = vld [vmem:[%s10329_s9 + $0x68] sm:$0xff] }
 0xaca   : > { %7455 = vmatprep.subr.mxu1 %v8598_v6  ;;  %v8176_v49 = vpack.c.bf16 %v6604_v48, %v6603_v47 }
 0xad1   : > { %7456 = vmatpush3.xpose.msk.msra.mxu1 %vm1158_vm3, %v2255_v50  ;;  %v6606_v50 = vld [vmem:[%s10329_s9 + $0x78] sm:$0xff] }
 0xad2   : > { %7481 = vmatprep.subr.mxu1 %v8598_v6 }
 0xad4   : > { %7458 = vmatmul.mubr.msk.f32.vlgmr.msra.gmra.mrb[42].mxu1 %vm1158_vm3, %v2152_v51  ;;  %v8179_v51 = vpack.c.bf16 %v6606_v50, %v6605_v35 }
 0xad5   : > { %7460 = vmatprep.mubr.msk.f32.mxu1 %vm8597_vm0, %v8598_v6  ;;  %7482 = vmatpush3.msra.mxu1 %v6581_v25 }
 0xad6   : > { %8169 = vmatprep.subr.bf16.mxu1 %v8596_v3 }
 0xad8   : > { %7461 = vmatmul.mubr.msk.f32.gmra.mrb[44].mxu1 %vm1158_vm3, %v2157_v52  ;;  %v6594_v52 = vld [vmem:[%s10386_s26 + $0x60] sm:$0xff] }
 0xad9   : > { %7463 = vmatprep.mubr.msk.f32.mxu1 %vm8597_vm0, %v8598_v6 }
 0xadc   : > { %7464 = vmatmul.mubr.msk.f32.gmra.mrb[46].mxu1 %vm1158_vm3, %v2162_v53  ;;  %v6595_v53 = vld [vmem:[%s10386_s26 + $0x68] sm:$0xff] }
 0xadd   : > { %7483 = vmatprep.mubr.msk.f32.mxu1 %vm8597_vm0, %v8598_v6 }
 0xba7   : > { %v2435_v54 = vpop.f32.mrb[42].mxu1 }
 0xba8   : > { %v2436_v55 = vadd.f32 %v2435_v54, %v8955_v62  ;;  %v7459_v56 = vpop.f32.mrb[43].mxu1  ;;  %v8170_v54 = vpack.c.bf16 %v6595_v53, %v6594_v52 }
 0xba9   : > { %v6597_v56 = vld [vmem:[%s10386_s26 + $0x78] sm:$0xff] }
 0xbaa   : > { %v2449_v57 = vsel %vm1257_vm6, %v2436_v55, -inf }
 0xbab   : > { %2450 = vmax.xlane.f32.xlu0 %v2449_v57  ;;  %v2440_v58 = vpop.f32.mrb[44].mxu1 }
 0xbac   : > { %v2441_v59 = vadd.f32 %v2440_v58, %v8955_v62  ;;  %v7462_v60 = vpop.f32.mrb[45].mxu1 }
 0xbae   : > { %v2452_v61 = vsel %vm1257_vm6, %v2441_v59, -inf }
 0xbaf   : > { %2453 = vmax.xlane.f32.xlu1 %v2452_v61  ;;  %v2445_v63 = vpop.f32.mrb[46].mxu1 }
 0xbb0   : > { %v2446_v0 = vadd.f32 %v2445_v63, %v8955_v62  ;;  %v7465_v1 = vpop.f32.mrb[47].mxu1 }
 0xbb2   : > { %v2455_v2 = vsel %vm1257_vm6, %v2446_v0, -inf }
 0xbb3   : > { %2456 = vmax.xlane.f32.xlu0 %v2455_v2 }
 0xc38   : > { %v2451_v4 = vpop.xlane.xlu0 %2450 }
 0xc39   : > { %v2458_v5 = vsub.f32 %v2436_v55, %v2451_v4  ;;  %v6596_v55 = vld [vmem:[%s10386_s26 + $0x70] sm:$0xff] }
 0xc3b   : > { %v2461_v7 = vmul.f32 1.442695, %v2458_v5 }
 0xc3c   : > { %v2454_v8 = vpop.xlane.xlu1 %2453 }
 0xc3d   : > { %8428 = vpow2.f32 %v2461_v7  ;;  %v2459_v9 = vsub.f32 %v2441_v59, %v2454_v8  ;;  %v8173_v59 = vpack.c.bf16 %v6597_v56, %v6596_v55 }
 0xc3f   : > { %v2463_v10 = vmul.f32 1.442695, %v2459_v9 }
 0xc40   : > { %v2457_v12 = vpop.xlane.xlu0 %2456 }
 0xc41   : > { %8430 = vpow2.f32 %v2463_v10  ;;  %v2460_v13 = vsub.f32 %v2446_v0, %v2457_v12  ;;  %v6608_v10 = vld [vmem:[%s10330_s10 + $0x3] ss:$0 sm:$0xff] }
 0xc43   : > { %v2465_v14 = vmul.f32 1.442695, %v2460_v13 }
 0xc45   : > { %8432 = vpow2.f32 %v2465_v14 }
 0xc47   : > { %v8429_v15 = vpop.eup %8428 }
 0xc48   : > { %v2467_v17 = vsel %vm1257_vm6, %v8429_v15, 0.0 }
 0xc49   : > { %2468 = vadd.xlane.f32.xlu1 %v2467_v17 }
 0xc4b   : > { %v8431_v18 = vpop.eup %8430 }
 0xc4c   : > { %v2470_v20 = vsel %vm1257_vm6, %v8431_v18, 0.0 }
 0xc4d   : > { %2471 = vadd.xlane.f32.xlu0 %v2470_v20 }
 0xc4f   : > { %v8433_v22 = vpop.eup %8432 }
 0xc50   : > { %v2473_v23 = vsel %vm1257_vm6, %v8433_v22, 0.0 }
 0xc51   : > { %2474 = vadd.xlane.f32.xlu1 %v2473_v23 }
 0xcd6   : > { %v2469_v27 = vpop.xlane.xlu1 %2468 }
 0xcd7   : > { %8434 = vrcp.f32 %v2469_v27 }
 0xcda   : > { %v2472_v29 = vpop.xlane.xlu0 %2471 }
 0xcdb   : > { %8436 = vrcp.f32 %v2472_v29 }
 0xcde   : > { %v2475_v30 = vpop.xlane.xlu1 %2474 }
 0xcdf   : > { %8438 = vrcp.f32 %v2475_v30 }
 0xce1   : > { %v8435_v38 = vpop.eup %8434 }
 0xce2   : > { %v2479_v41 = vmul.f32 %v8435_v38, %v8429_v15 }
 0xce4   : > { %7473 = vmatmul.mubr.msk.f32.vlgmr.msra.gmra.mrb[54].mxu0 %vm1257_vm6, %v2479_v41  ;;  %v6599_v41 = vld [vmem:[%s10389_s8 + $0x3] ss:$0 sm:$0xff] }
 0xce5   : > { %v8437_v31 = vpop.eup %8436  ;;  %7475 = vmatprep.mubr.msk.f32.mxu0 %vm8597_vm0, %v8598_v6  ;;  %8165 = vmatpush3.bf16.msra.mxu0 %v8164_v39 }
 0xce6   : > { %v2480_v45 = vmul.f32 %v8437_v31, %v8431_v18  ;;  %8166 = vmatprep.subr.bf16.mxu0 %v8596_v3 }
 0xce8   : > { %7476 = vmatmul.mubr.msk.f32.gmra.mrb[56].mxu0 %vm1257_vm6, %v2480_v45 }
 0xce9   : > { %v8439_v46 = vpop.eup %8438  ;;  %7478 = vmatprep.mubr.msk.f32.mxu0 %vm8597_vm0, %v8598_v6  ;;  %8168 = vmatpush3.bf16.msra.mxu0 %v8167_v44 }
 0xcea   : > { %v2481_v33 = vmul.f32 %v8439_v46, %v8433_v22  ;;  %8175 = vmatprep.subr.bf16.mxu0 %v8596_v3 }
 0xcec   : > { %7479 = vmatmul.mubr.msk.f32.gmra.mrb[58].mxu0 %vm1257_vm6, %v2481_v33 }
 0xced   : > { %7500 = vmatprep.mubr.msk.f32.mxu0 %vm8597_vm0, %v8598_v6 }
 0xcf0   : > { %7501 = vmatmul.mubr.msk.f32.vlgmr.msra.gmra.mrb[60].mxu0 %vm816_vm2, %v8874_v11 }
 0xcf1   : > { %7503 = vmatprep.mubr.msk.f32.mxu0 %vm8597_vm0, %v8598_v6  ;;  %8177 = vmatpush3.bf16.msra.mxu0 %v8176_v49 }
 0xcf2   : > { %8178 = vmatprep.subr.bf16.mxu0 %v8596_v3 }
 0xcf4   : > { %7504 = vmatmul.mubr.msk.f32.gmra.mrb[62].mxu0 %vm816_vm2, %v8890_v19 }
 0xcf5   : > { %7506 = vmatprep.mubr.msk.f32.mxu0 %vm8597_vm0, %v8598_v6  ;;  %8180 = vmatpush3.bf16.msra.mxu0 %v8179_v51 }
 0xcf6   : > { %8185 = vmatprep.subr.bf16.mxu0 %v8596_v3 }
 0xcf8   : > { %7507 = vmatmul.mubr.msk.f32.gmra.mrb[64].mxu0 %vm816_vm2, %v8901_v24 }
 0xcf9   : > { %7534 = vmatprep.mubr.msk.f32.mxu0 %vm8597_vm0, %v8598_v6 }
 0xcfc   : > { %7535 = vmatmul.mubr.msk.f32.vlgmr.msra.gmra.mrb[66].mxu0 %vm816_vm2, %v8874_v11 }
 0xcfd   : > { %7537 = vmatprep.mubr.msk.f32.mxu0 %vm8597_vm0, %v8598_v6 }
 0xd00   : > { %7538 = vmatmul.mubr.msk.f32.gmra.mrb[68].mxu0 %vm816_vm2, %v8890_v19 }
 0xd01   : > { %7540 = vmatprep.mubr.msk.f32.mxu0 %vm8597_vm0, %v8598_v6 }
 0xd04   : > { %7541 = vmatmul.mubr.msk.f32.gmra.mrb[70].mxu0 %vm816_vm2, %v8901_v24 }
 0xd05   : > { %7564 = vmatprep.mubr.msk.f32.mxu0 %vm8597_vm0, %v8598_v6 }
 0xdb7   : > { %v2557_v57 = vpop.f32.mrb[54].mxu0 }
 0xdb8   : > { %v7474_v58 = vpop.f32.mrb[55].mxu0  ;;  %7484 = vmatmul.mubr.msk.f32.vlgmr.msra.gmra.mrb[48].mxu1 %vm1158_vm3, %v2557_v57 }
 0xdb9   : > { %7486 = vmatprep.mubr.msk.f32.mxu1 %vm8597_vm0, %v8598_v6  ;;  %8171 = vmatpush3.bf16.msra.mxu1 %v8170_v54 }
 0xdba   : > { %8172 = vmatprep.subr.bf16.mxu1 %v8596_v3 }
 0xdbb   : > { %v2562_v60 = vpop.f32.mrb[56].mxu0 }
 0xdbc   : > { %v7477_v61 = vpop.f32.mrb[57].mxu0  ;;  %7487 = vmatmul.mubr.msk.f32.gmra.mrb[50].mxu1 %vm1158_vm3, %v2562_v60 }
 0xdbd   : > { %7489 = vmatprep.mubr.msk.f32.mxu1 %vm8597_vm0, %v8598_v6  ;;  %8174 = vmatpush3.bf16.msra.mxu1 %v8173_v59 }
 0xdbe   : > { %8181 = vmatprep.subr.bf16.mxu1 %v8596_v3 }
 0xdbf   : > { %v2567_v63 = vpop.f32.mrb[58].mxu0 }
 0xdc0   : > { %v7480_v0 = vpop.f32.mrb[59].mxu0  ;;  %7490 = vmatmul.mubr.msk.f32.gmra.mrb[52].mxu1 %vm1158_vm3, %v2567_v63 }
 0xdc1   : > { %7517 = vmatprep.mubr.msk.f32.mxu1 %vm8597_vm0, %v8598_v6 }
 0xdc3   : > { %v2744_v1 = vpop.f32.mrb[60].mxu0 }
 0xdc4   : > { %v7502_v2 = vpop.f32.mrb[61].mxu0  ;;  %7518 = vmatmul.mubr.msk.f32.vlgmr.msra.gmra.mrb[54].mxu1 %vm816_vm2, %v8874_v11 }
 0xdc5   : > { %7520 = vmatprep.mubr.msk.f32.mxu1 %vm8597_vm0, %v8598_v6 }
 0xdc7   : > { %v2749_v4 = vpop.f32.mrb[62].mxu0 }
 0xdc8   : > { %v7505_v5 = vpop.f32.mrb[63].mxu0  ;;  %7521 = vmatmul.mubr.msk.f32.gmra.mrb[56].mxu1 %vm816_vm2, %v8890_v19 }
 0xdc9   : > { %7523 = vmatprep.mubr.msk.f32.mxu1 %vm8597_vm0, %v8598_v6 }
 0xdcb   : > { %v2754_v7 = vpop.f32.mrb[64].mxu0 }
 0xdcc   : > { %v7508_v8 = vpop.f32.mrb[65].mxu0  ;;  %7524 = vmatmul.mubr.msk.f32.gmra.mrb[58].mxu1 %vm816_vm2, %v8901_v24 }
 0xdcd   : > { %7549 = vmatprep.mubr.msk.f32.mxu1 %vm8597_vm0, %v8598_v6 }
 0xdcf   : > { %v2930_v11 = vpop.f32.mrb[66].mxu0 }
 0xdd0   : > { %v7536_v9 = vpop.f32.mrb[67].mxu0  ;;  %v2931_v13 = vadd.f32 %v6608_v10, %v2930_v11 }
 0xdd3   : > { %v2935_v12 = vpop.f32.mrb[68].mxu0 }
 0xdd4   : > { %v2936_v19 = vadd.f32 %v6608_v10, %v2935_v12  ;;  %v7539_v14 = vpop.f32.mrb[69].mxu0 }
 0xdd6   : > { %v8186_v15 = vpack.c.bf16 %v2936_v19, %v2931_v13  ;;  %v6621_v19 = vld [vmem:[%s10331_s11 + $0x18] sm:$0xff] }
 0xdd7   : > { %v2940_v17 = vpop.f32.mrb[70].mxu0 }
 0xdd8   : > { %v7542_v18 = vpop.f32.mrb[71].mxu0  ;;  %8187 = vmatpush3.bf16.msra.mxu0 %v8186_v15  ;;  %v2941_v24 = vadd.f32 %v6608_v10, %v2940_v17 }
 0xdd9   : > { %7562 = vmatprep.subr.mxu0 %v8598_v6 }
 0xddc   : > { %7563 = vmatpush3.msra.mxu0 %v2941_v24 }
 0xddd   : > { %8188 = vmatprep.subr.bf16.mxu0 %v8596_v3 }
 0xe8b   : > { %v2648_v20 = vpop.f32.mrb[48].mxu1 }
 0xe8c   : > { %v9358_v22 = vadd.f32 %v2648_v20, %v9215_v28  ;;  %v7485_v23 = vpop.f32.mrb[49].mxu1 }
 0xe8f   : > { %v2653_v25 = vpop.f32.mrb[50].mxu1 }
 0xe90   : > { %v9361_v27 = vadd.f32 %v2653_v25, %v9218_v34  ;;  %v7488_v29 = vpop.f32.mrb[51].mxu1 }
 0xe93   : > { %v2658_v30 = vpop.f32.mrb[52].mxu1 }
 0xe94   : > { %v9364_v32 = vadd.f32 %v2658_v30, %v9221_v40  ;;  %v7491_v36 = vpop.f32.mrb[53].mxu1  ;;  %v6590_v40 = vld [vmem:[%s10392_s28 + $0x3] ss:$0 sm:$0xff] }
 0xe95   : > { %v2745_v33 = vadd.f32 %v6590_v40, %v2744_v1  ;;  %v2750_v47 = vadd.f32 %v6590_v40, %v2749_v4  ;;  %v2755_v48 = vadd.f32 %v6590_v40, %v2754_v7 }
 0xe97   : > { %v2837_v38 = vpop.f32.mrb[54].mxu1 }
 0xe98   : > { %v7519_v39 = vpop.f32.mrb[55].mxu1  ;;  %v2838_v28 = vadd.f32 %v6599_v41, %v2837_v38 }
 0xe9b   : > { %v2842_v42 = vpop.f32.mrb[56].mxu1 }
 0xe9c   : > { %v2843_v43 = vadd.f32 %v6599_v41, %v2842_v42  ;;  %v7522_v31 = vpop.f32.mrb[57].mxu1 }
 0xe9e   : > { %v8182_v44 = vpack.c.bf16 %v2843_v43, %v2838_v28 }
 0xe9f   : > { %v2847_v45 = vpop.f32.mrb[58].mxu1 }
 0xea0   : > { %v7525_v34 = vpop.f32.mrb[59].mxu1  ;;  %8184 = vmatpush3.bf16.xpose.msk.msra.mxu1 %vm8929_vm4, %v8182_v44  ;;  %v2848_v46 = vadd.f32 %v6599_v41, %v2847_v45 }
 0xea1   : > { %7547 = vmatprep.subr.mxu1 %v8598_v6 }
 0xea8   : > { %7548 = vmatpush3.xpose.msk.msra.mxu1 %vm1158_vm3, %v2848_v46 }
 0xea9   : > { %7573 = vmatprep.subr.mxu1 %v8598_v6 }
 0xeab   : > { %7550 = vmatmul.mubr.msk.f32.vlgmr.msra.gmra.mrb[60].mxu1 %vm1158_vm3, %v2745_v33 }
 0xeac   : > { %7552 = vmatprep.mubr.msk.f32.mxu1 %vm8597_vm0, %v8598_v6  ;;  %7574 = vmatpush3.msra.mxu1 %v6621_v19 }
 0xead   : > { %8194 = vmatprep.subr.bf16.mxu1 %v8596_v3 }
 0xeaf   : > { %7553 = vmatmul.mubr.msk.f32.gmra.mrb[62].mxu1 %vm1158_vm3, %v2750_v47 }
 0xeb0   : > { %7555 = vmatprep.mubr.msk.f32.mxu1 %vm8597_vm0, %v8598_v6 }
 0xeb3   : > { %7556 = vmatmul.mubr.msk.f32.gmra.mrb[64].mxu1 %vm1158_vm3, %v2755_v48 }
 0xeb4   : > { %7575 = vmatprep.mubr.msk.f32.mxu1 %vm8597_vm0, %v8598_v6 }
 0xf7e   : > { %v3028_v49 = vpop.f32.mrb[60].mxu1 }
 0xf7f   : > { %v3029_v35 = vadd.f32 %v3028_v49, %v8955_v62  ;;  %v7551_v50 = vpop.f32.mrb[61].mxu1 }
 0xf81   : > { %v3042_v51 = vsel %vm1257_vm6, %v3029_v35, -inf }
 0xf82   : > { %3043 = vmax.xlane.f32.xlu0 %v3042_v51  ;;  %v3033_v52 = vpop.f32.mrb[62].mxu1 }
 0xf83   : > { %v3034_v53 = vadd.f32 %v3033_v52, %v8955_v62  ;;  %v7554_v54 = vpop.f32.mrb[63].mxu1 }
 0xf85   : > { %v3045_v55 = vsel %vm1257_vm6, %v3034_v53, -inf }
 0xf86   : > { %3046 = vmax.xlane.f32.xlu1 %v3045_v55  ;;  %v3038_v56 = vpop.f32.mrb[64].mxu1 }
 0xf87   : > { %v3039_v57 = vadd.f32 %v3038_v56, %v8955_v62  ;;  %v7557_v58 = vpop.f32.mrb[65].mxu1 }
 0xf89   : > { %v3048_v59 = vsel %vm1257_vm6, %v3039_v57, -inf }
 0xf8a   : > { %3049 = vmax.xlane.f32.xlu0 %v3048_v59 }
0x100f   : > { %v3044_v60 = vpop.xlane.xlu0 %3043 }
0x1010   : > { %v3051_v61 = vsub.f32 %v3029_v35, %v3044_v60 }
0x1012   : > { %v3054_v63 = vmul.f32 1.442695, %v3051_v61  ;;  %v3320_v61 = vld [vmem:[%s10335_s15] sm:$0xff] }
0x1013   : > { %v3047_v0 = vpop.xlane.xlu1 %3046 }
0x1014   : > { %8440 = vpow2.f32 %v3054_v63  ;;  %v3052_v1 = vsub.f32 %v3034_v53, %v3047_v0  ;;  %v3321_v63 = vld [vmem:[%s10335_s15 + $0x8] sm:$0xff] }
0x1015   : > { %v8189_v0 = vpack.c.bf16 %v3321_v63, %v3320_v61 }
0x1016   : > { %v3056_v2 = vmul.f32 1.442695, %v3052_v1  ;;  %v3322_v1 = vld [vmem:[%s10335_s15 + $0x10] sm:$0xff] }
0x1017   : > { %v3050_v4 = vpop.xlane.xlu0 %3049 }
0x1018   : > { %8442 = vpow2.f32 %v3056_v2  ;;  %v3053_v5 = vsub.f32 %v3039_v57, %v3050_v4  ;;  %v3323_v2 = vld [vmem:[%s10335_s15 + $0x18] sm:$0xff] }
0x1019   : > { %v8192_v4 = vpack.c.bf16 %v3323_v2, %v3322_v1 }
0x101a   : > { %v3058_v7 = vmul.f32 1.442695, %v3053_v5  ;;  %v3447_v5 = vld [vmem:[%s10337_s17] sm:$0xff] }
0x101c   : > { %8444 = vpow2.f32 %v3058_v7  ;;  %v3448_v7 = vld [vmem:[%s10337_s17 + $0x8] sm:$0xff] }
0x101e   : > { %v8441_v8 = vpop.eup %8440 }
0x101f   : > { %v3060_v11 = vsel %vm1257_vm6, %v8441_v8, 0.0 }
0x1020   : > { %3061 = vadd.xlane.f32.xlu1 %v3060_v11 }
0x1022   : > { %v8443_v9 = vpop.eup %8442 }
0x1023   : > { %v3063_v10 = vsel %vm1257_vm6, %v8443_v9, 0.0 }
0x1024   : > { %3064 = vadd.xlane.f32.xlu0 %v3063_v10 }
0x1026   : > { %v8445_v12 = vpop.eup %8444 }
0x1027   : > { %v3066_v13 = vsel %vm1257_vm6, %v8445_v12, 0.0 }
0x1028   : > { %3067 = vadd.xlane.f32.xlu1 %v3066_v13 }
0x10ad   : > { %v3062_v14 = vpop.xlane.xlu1 %3061 }
0x10ae   : > { %8446 = vrcp.f32 %v3062_v14 }
0x10b1   : > { %v3065_v15 = vpop.xlane.xlu0 %3064 }
0x10b2   : > { %8448 = vrcp.f32 %v3065_v15 }
0x10b5   : > { %v3068_v17 = vpop.xlane.xlu1 %3067 }
0x10b6   : > { %8450 = vrcp.f32 %v3068_v17 }
0x10b8   : > { %v8447_v18 = vpop.eup %8446 }
0x10b9   : > { %v3072_v24 = vmul.f32 %v8447_v18, %v8441_v8  ;;  %v8195_v8 = vpack.c.bf16 %v3448_v7, %v3447_v5 }
0x10bb   : > { %7565 = vmatmul.mubr.msk.f32.vlgmr.msra.gmra.mrb[72].mxu0 %vm1257_vm6, %v3072_v24  ;;  %v6625_v24 = vld [vmem:[%s10333_s13] ss:$0 sm:$0xff] }
0x10bc   : > { %v8449_v20 = vpop.eup %8448  ;;  %7567 = vmatprep.mubr.msk.f32.mxu0 %vm8597_vm0, %v8598_v6  ;;  %8190 = vmatpush3.bf16.msra.mxu0 %v8189_v0 }
0x10bd   : > { %v3073_v23 = vmul.f32 %v8449_v20, %v8443_v9  ;;  %8191 = vmatprep.subr.bf16.mxu0 %v8596_v3 }
0x10bf   : > { %7568 = vmatmul.mubr.msk.f32.gmra.mrb[74].mxu0 %vm1257_vm6, %v3073_v23  ;;  %v6626_v23 = vld [vmem:[%s10334_s14] ss:$0 sm:$0xff] }
0x10c0   : > { %v8451_v25 = vpop.eup %8450  ;;  %7570 = vmatprep.mubr.msk.f32.mxu0 %vm8597_vm0, %v8598_v6  ;;  %8193 = vmatpush3.bf16.msra.mxu0 %v8192_v4 }
0x10c1   : > { %v3074_v29 = vmul.f32 %v8451_v25, %v8445_v12  ;;  %8218 = vmatprep.subr.bf16.mxu0 %v8596_v3 }
0x10c3   : > { %7571 = vmatmul.mubr.msk.f32.gmra.mrb[76].mxu0 %vm1257_vm6, %v3074_v29 }
0x10c4   : > { %7592 = vmatprep.mubr.msk.f32.mxu0 %vm8597_vm0, %v8598_v6 }
0x118e   : > { %v3150_v30 = vpop.f32.mrb[72].mxu0 }
0x118f   : > { %v7566_v36 = vpop.f32.mrb[73].mxu0  ;;  %7576 = vmatmul.mubr.msk.f32.vlgmr.msra.gmra.mrb[66].mxu1 %vm1158_vm3, %v3150_v30 }
0x1190   : > { %7578 = vmatprep.mubr.msk.f32.mxu1 %vm8597_vm0, %v8598_v6  ;;  %8196 = vmatpush3.bf16.msra.mxu1 %v8195_v8 }
0x1191   : > { %8197 = vmatprep.subr.bf16.mxu1 %v8596_v3 }
0x1192   : > { %v3155_v38 = vpop.f32.mrb[74].mxu0 }
0x1193   : > { %v7569_v39 = vpop.f32.mrb[75].mxu0  ;;  %7579 = vmatmul.mubr.msk.f32.gmra.mrb[68].mxu1 %vm1158_vm3, %v3155_v38 }
0x1194   : > { %7581 = vmatprep.mubr.msk.f32.mxu1 %vm8597_vm0, %v8598_v6 }
0x1196   : > { %v3160_v41 = vpop.f32.mrb[76].mxu0 }
0x1197   : > { %v7572_v42 = vpop.f32.mrb[77].mxu0  ;;  %7582 = vmatmul.mubr.msk.f32.gmra.mrb[70].mxu1 %vm1158_vm3, %v3160_v41 }
0x1198   : > { %7633 = vmatprep.mubr.msk.f32.mxu1 %vm8597_vm0, %v8598_v6 }
0x1262   : > { %v3241_v28 = vpop.f32.mrb[66].mxu1 }
0x1263   : > { %v3255_v43 = vadd.f32 %v3241_v28, %v9358_v22  ;;  %v7577_v31 = vpop.f32.mrb[67].mxu1 }
0x1264   : > { %v3449_v31 = vld [vmem:[%s10337_s17 + $0x10] sm:$0xff] }
0x1265   : > { %v9419_v44 = vadd.f32 %v3255_v43, %v8810_v16 }
0x1266   : > { %v3246_v45 = vpop.f32.mrb[68].mxu1 }
0x1267   : > { %v3256_v34 = vadd.f32 %v3246_v45, %v9361_v27  ;;  %v7580_v40 = vpop.f32.mrb[69].mxu1  ;;  %v3263_v46 = vsel %vm816_vm2, %v9419_v44, 0.0  ;;  %v3450_v45 = vld [vmem:[%s10337_s17 + $0x18] sm:$0xff] }
0x1268   : > { %3264 = vadd.xlane.f32.xlu0 %v3263_v46  ;;  %v3451_v40 = vld [vmem:[%s10337_s17 + $0x20] sm:$0xff]  ;;  %v3452_v46 = vld [vmem:[%s10337_s17 + $0x28] sm:$0xff] }
0x1269   : > { %v9425_v33 = vadd.f32 %v3256_v34, %v8817_v21  ;;  %v8198_v34 = vpack.c.bf16 %v3450_v45, %v3449_v31 }
0x126a   : > { %v3251_v47 = vpop.f32.mrb[70].mxu1 }
0x126b   : > { %v3257_v48 = vadd.f32 %v3251_v47, %v9364_v32  ;;  %v7583_v49 = vpop.f32.mrb[71].mxu1  ;;  %v3266_v22 = vsel %vm816_vm2, %v9425_v33, 0.0  ;;  %8199 = vmatpush3.bf16.msra.mxu1 %v8198_v34  ;;  %v8201_v47 = vpack.c.bf16 %v3452_v46, %v3451_v40  ;;  %v6631_v34 = vld [vmem:[%s10338_s18] ss:$0 sm:$0xff] }
0x126c   : > { %3267 = vadd.xlane.f32.xlu1 %v3266_v22  ;;  %8200 = vmatprep.subr.bf16.mxu1 %v8596_v3  ;;  %v3454_v49 = vld [vmem:[%s10337_s17 + $0x38] sm:$0xff] }
0x126d   : > { %v9431_v16 = vadd.f32 %v3257_v48, %v8824_v26  ;;  %v3453_v48 = vld [vmem:[%s10337_s17 + $0x30] sm:$0xff] }
0x126e   : > { %v8204_v22 = vpack.c.bf16 %v3454_v49, %v3453_v48 }
0x126f   : > { %v3269_v27 = vsel %vm816_vm2, %v9431_v16, 0.0  ;;  %8202 = vmatpush3.bf16.msra.mxu1 %v8201_v47 }
0x1270   : > { %3270 = vadd.xlane.f32.xlu0 %v3269_v27  ;;  %8203 = vmatprep.subr.bf16.mxu1 %v8596_v3  ;;  %v3455_v27 = vld [vmem:[%s10337_s17 + $0x40] sm:$0xff] }
0x1273   : > { %8205 = vmatpush3.bf16.msra.mxu1 %v8204_v22 }
0x1274   : > { %8206 = vmatprep.subr.bf16.mxu1 %v8596_v3 }
0x12f5   : > { %v3265_v35 = vpop.xlane.xlu0 %3264 }
0x12f6   : > { %v3272_v50 = vmul.f32 0.03125, %v3265_v35  ;;  %v3456_v35 = vld [vmem:[%s10337_s17 + $0x48] sm:$0xff] }
0x12f8   : > { %v3275_v21 = vsub.f32 %v9419_v44, %v3272_v50  ;;  %v8207_v50 = vpack.c.bf16 %v3456_v35, %v3455_v27 }
0x12f9   : > { %v3268_v51 = vpop.xlane.xlu1 %3267 }
0x12fa   : > { %v3273_v52 = vmul.f32 0.03125, %v3268_v51  ;;  %v3278_v53 = vmul.f32 %v3275_v21, %v3275_v21  ;;  %8208 = vmatpush3.bf16.msra.mxu1 %v8207_v50  ;;  %v3458_v51 = vld [vmem:[%s10337_s17 + $0x58] sm:$0xff] }
0x12fb   : > { %8209 = vmatprep.subr.bf16.mxu1 %v8596_v3 }
0x12fc   : > { %v3276_v32 = vsub.f32 %v9425_v33, %v3273_v52  ;;  %v3281_v54 = vsel %vm816_vm2, %v3278_v53, 0.0  ;;  %v3459_v53 = vld [vmem:[%s10337_s17 + $0x60] sm:$0xff] }
0x12fd   : > { %3282 = vadd.xlane.f32.xlu1 %v3281_v54  ;;  %v3271_v55 = vpop.xlane.xlu0 %3270 }
0x12fe   : > { %v3274_v56 = vmul.f32 0.03125, %v3271_v55  ;;  %v3279_v26 = vmul.f32 %v3276_v32, %v3276_v32  ;;  %v3461_v55 = vld [vmem:[%s10337_s17 + $0x70] sm:$0xff] }
0x1300   : > { %v3277_v57 = vsub.f32 %v9431_v16, %v3274_v56  ;;  %v3284_v58 = vsel %vm816_vm2, %v3279_v26, 0.0  ;;  %v3462_v56 = vld [vmem:[%s10337_s17 + $0x78] sm:$0xff] }
0x1301   : > { %3285 = vadd.xlane.f32.xlu0 %v3284_v58  ;;  %v8216_v26 = vpack.c.bf16 %v3462_v56, %v3461_v55 }
0x1302   : > { %v3280_v59 = vmul.f32 %v3277_v57, %v3277_v57 }
0x1304   : > { %v3287_v60 = vsel %vm816_vm2, %v3280_v59, 0.0 }
0x1305   : > { %3288 = vadd.xlane.f32.xlu1 %v3287_v60 }
0x138a   : > { %v3283_v11 = vpop.xlane.xlu1 %3282 }
0x138b   : > { %v3290_v9 = vmul.f32 0.03125, %v3283_v11 }
0x138d   : > { %v3293_v10 = vadd.f32 1e-06, %v3290_v9 }
0x138e   : > { %v3286_v12 = vpop.xlane.xlu0 %3285 }
0x138f   : > { %8452 = vrsqrt.f32 %v3293_v10  ;;  %v3291_v13 = vmul.f32 0.03125, %v3286_v12 }
0x1391   : > { %v3294_v19 = vadd.f32 1e-06, %v3291_v13 }
0x1392   : > { %v3289_v14 = vpop.xlane.xlu1 %3288 }
0x1393   : > { %8454 = vrsqrt.f32 %v3294_v19  ;;  %v3292_v15 = vmul.f32 0.03125, %v3289_v14 }
0x1395   : > { %v3295_v17 = vadd.f32 1e-06, %v3292_v15 }
0x1397   : > { %8456 = vrsqrt.f32 %v3295_v17 }
0x1399   : > { %v8453_v18 = vpop.eup %8452 }
0x139a   : > { %v3299_v20 = vmul.f32 %v8453_v18, %v3275_v21  ;;  %v3457_v21 = vld [vmem:[%s10337_s17 + $0x50] sm:$0xff] }
0x139b   : > { %v8210_v52 = vpack.c.bf16 %v3458_v51, %v3457_v21 }
0x139c   : > { %v3308_v25 = vmul.f32 %v6625_v24, %v3299_v20 }
0x139d   : > { %v8455_v29 = vpop.eup %8454  ;;  %8211 = vmatpush3.bf16.msra.mxu1 %v8210_v52 }
0x139e   : > { %v3317_v30 = vadd.f32 %v6626_v23, %v3308_v25  ;;  %v3300_v36 = vmul.f32 %v8455_v29, %v3276_v32  ;;  %8212 = vmatprep.subr.bf16.mxu1 %v8596_v3  ;;  %v3460_v32 = vld [vmem:[%s10337_s17 + $0x68] sm:$0xff] }
0x139f   : > { %v8213_v54 = vpack.c.bf16 %v3460_v32, %v3459_v53 }
0x13a0   : > { %7593 = vmatmul.mubr.msk.f32.vlgmr.msra.gmra.mrb[78].mxu0 %vm816_vm2, %v3317_v30  ;;  %v3309_v38 = vmul.f32 %v6625_v24, %v3300_v36 }
0x13a1   : > { %v8457_v39 = vpop.eup %8456  ;;  %7595 = vmatprep.mubr.msk.f32.mxu0 %vm8597_vm0, %v8598_v6  ;;  %8214 = vmatpush3.bf16.msra.mxu1 %v8213_v54 }
0x13a2   : > { %v3318_v41 = vadd.f32 %v6626_v23, %v3309_v38  ;;  %v3301_v42 = vmul.f32 %v8457_v39, %v3277_v57  ;;  %8215 = vmatprep.subr.bf16.mxu1 %v8596_v3  ;;  %v6627_v57 = vld [vmem:[%s10336_s16] ss:$0 sm:$0xff] }
0x13a4   : > { %7596 = vmatmul.mubr.msk.f32.gmra.mrb[80].mxu0 %vm816_vm2, %v3318_v41  ;;  %v3310_v28 = vmul.f32 %v6625_v24, %v3301_v42 }
0x13a5   : > { %7598 = vmatprep.mubr.msk.f32.mxu0 %vm8597_vm0, %v8598_v6  ;;  %8217 = vmatpush3.bf16.msra.mxu1 %v8216_v26 }
0x13a6   : > { %v3319_v43 = vadd.f32 %v6626_v23, %v3310_v28  ;;  %8236 = vmatprep.subr.bf16.mxu1 %v8596_v3 }
0x13a8   : > { %7599 = vmatmul.mubr.msk.f32.gmra.mrb[82].mxu0 %vm816_vm2, %v3319_v43 }
0x13a9   : > { %7650 = vmatprep.mubr.msk.f32.mxu0 %vm8597_vm0, %v8598_v6 }
0x1473   : > { %v3406_v58 = vpop.f32.mrb[78].mxu0 }
0x1474   : > { %v3407_v59 = vadd.f32 %v6627_v57, %v3406_v58  ;;  %v7594_v60 = vpop.f32.mrb[79].mxu0 }
0x1476   : > { %v3423_v61 = vmul.f32 %v3407_v59, %v3407_v59  ;;  %v3420_v25 = vmul.f32 0.5, %v3407_v59 }
0x1477   : > { %v3411_v63 = vpop.f32.mrb[80].mxu0 }
0x1478   : > { %v3426_v0 = vmul.f32 %v3423_v61, %v3407_v59  ;;  %v3412_v1 = vadd.f32 %v6627_v57, %v3411_v63  ;;  %v7597_v2 = vpop.f32.mrb[81].mxu0 }
0x1479   : > { %v6637_v2 = vld [vmem:[%s10384_s6 + $0x80] sm:$0xff] }
0x147a   : > { %v3429_v4 = vmul.f32 0.044715, %v3426_v0  ;;  %v3424_v5 = vmul.f32 %v3412_v1, %v3412_v1  ;;  %v3421_v38 = vmul.f32 0.5, %v3412_v1 }
0x147b   : > { %v3416_v7 = vpop.f32.mrb[82].mxu0 }
0x147c   : > { %v3432_v8 = vadd.f32 %v3429_v4, %v3407_v59  ;;  %v3427_v11 = vmul.f32 %v3424_v5, %v3412_v1  ;;  %v3417_v9 = vadd.f32 %v6627_v57, %v3416_v7  ;;  %v7600_v10 = vpop.f32.mrb[83].mxu0  ;;  %v6638_v4 = vld [vmem:[%s10384_s6 + $0x88] sm:$0xff]  ;;  %v6639_v7 = vld [vmem:[%s10384_s6 + $0x90] sm:$0xff] }
0x147d   : > { %v8219_v5 = vpack.c.bf16 %v6638_v4, %v6637_v2 }
0x147e   : > { %v3435_v12 = vmul.f32 0.7978846, %v3432_v8  ;;  %v3430_v13 = vmul.f32 0.044715, %v3427_v11  ;;  %v3425_v19 = vmul.f32 %v3417_v9, %v3417_v9  ;;  %v3422_v28 = vmul.f32 0.5, %v3417_v9  ;;  %v6640_v8 = vld [vmem:[%s10384_s6 + $0x98] sm:$0xff] }
0x147f   : > { %8220 = vmatpush3.bf16.msra.mxu0 %v8219_v5  ;;  %v8222_v11 = vpack.c.bf16 %v6640_v8, %v6639_v7  ;;  %v6660_v5 = vld [vmem:[%s10330_s10 + $0x4] ss:$0 sm:$0xff] }
0x1480   : > { %8458 = vtanh.f32 %v3435_v12  ;;  %v3433_v14 = vadd.f32 %v3430_v13, %v3412_v1  ;;  %v3428_v15 = vmul.f32 %v3425_v19, %v3417_v9  ;;  %8221 = vmatprep.subr.bf16.mxu0 %v8596_v3  ;;  %v6642_v7 = vld [vmem:[%s10392_s28 + $0x4] ss:$0 sm:$0xff] }
0x1482   : > { %v3436_v17 = vmul.f32 0.7978846, %v3433_v14  ;;  %v3431_v18 = vmul.f32 0.044715, %v3428_v15 }
0x1483   : > { %8223 = vmatpush3.bf16.msra.mxu0 %v8222_v11 }
0x1484   : > { %v3434_v24 = vadd.f32 %v3431_v18, %v3417_v9  ;;  %8460 = vtanh.f32 %v3436_v17  ;;  %8224 = vmatprep.subr.bf16.mxu0 %v8596_v3 }
0x1486   : > { %v3437_v20 = vmul.f32 0.7978846, %v3434_v24 }
0x1488   : > { %8462 = vtanh.f32 %v3437_v20  ;;  %v6634_v20 = vld [vmem:[%s10387_s2 + $0x1] ss:$0 sm:$0xff]  ;;  %s702_s2 = scalar_lea.vmem [#allocation2], %s701_s4 }
0x148a   : > { %v8459_v23 = vpop.eup %8458 }
0x148b   : > { %v3441_v29 = vadd.f32 1.0, %v8459_v23 }
0x148d   : > { %v3444_v30 = vmul.f32 %v3441_v29, %v3420_v25  ;;  %v6646_v25 = vld [vmem:[%s10386_s26 + $0x80] sm:$0xff]  ;;  %v6647_v29 = vld [vmem:[%s10386_s26 + $0x88] sm:$0xff] }
0x148e   : > { %v8461_v36 = vpop.eup %8460 }
0x148f   : > { %7634 = vmatmul.mubr.f32.vlgmr.msra.gmra.mrb[72].mxu1 %v3444_v30  ;;  %v3442_v39 = vadd.f32 1.0, %v8461_v36  ;;  %v6635_v30 = vld [vmem:[%s10388_s3 + $0x1] ss:$0 sm:$0xff]  ;;  %s6415_s3 = sshll.u32 %s702_s2, 4  ;;  %s10280_s3 = int_to_ptr.vmem [resolvable:$true] %s6415_s3 }
0x1490   : > { %7636 = vmatprep.mubr.msk.f32.mxu1 %vm8597_vm0, %v8598_v6  ;;  %s8532_s27 = scalar_lea.vmem %s10280_s3, 16 }
0x1491   : > { %v3445_v41 = vmul.f32 %v3442_v39, %v3421_v38  ;;  %v8225_v39 = vpack.c.bf16 %v6647_v29, %v6646_v25  ;;  %p8533_p11 = scmp.ne.s32.totalorder %s10280_s3, %s8532_s27 }
0x1492   : > { %v8463_v42 = vpop.eup %8462 }
0x1493   : > { %7637 = vmatmul.mubr.f32.gmra.mrb[74].mxu1 %v3445_v41  ;;  %v3443_v43 = vadd.f32 1.0, %v8463_v42  ;;  %p8534_p12 = pnand %p8533_p11, %p8759_p5 }
0x1494   : > { %7639 = vmatprep.mubr.msk.f32.mxu1 %vm8597_vm0, %v8598_v6 }
0x1495   : > { %v3446_v31 = vmul.f32 %v3443_v43, %v3422_v28  ;;  %v6648_v28 = vld [vmem:[%s10386_s26 + $0x90] sm:$0xff]  ;;  %v6649_v43 = vld [vmem:[%s10386_s26 + $0x98] sm:$0xff]  ;;  %p8535_p13 = pneg %p8534_p12 }
0x1497   : > { %7640 = vmatmul.mubr.f32.gmra.mrb[76].mxu1 %v3446_v31 }
0x1498   : > { %7699 = vmatprep.mubr.msk.f32.mxu1 %vm8597_vm0, %v8598_v6 }
0x1562   : > { %v3529_v45 = vpop.f32.mrb[72].mxu1 }
0x1563   : > { %v3543_v40 = vadd.f32 %v3529_v45, %v9419_v44  ;;  %v7635_v46 = vpop.f32.mrb[73].mxu1 }
0x1565   : > { %v9539_v47 = vadd.f32 %v6631_v34, %v3543_v40 }
0x1566   : > { %v3534_v48 = vpop.f32.mrb[74].mxu1 }
0x1567   : > { %v3544_v49 = vadd.f32 %v3534_v48, %v9425_v33  ;;  %v7638_v22 = vpop.f32.mrb[75].mxu1  ;;  %v3560_v27 = vsel %vm816_vm2, %v9539_v47, 0.0 }
0x1568   : > { %3561 = vadd.xlane.f32.xlu0 %v3560_v27  ;;  %v6655_v22 = vld [vmem:[%s10329_s9 + $0x80] sm:$0xff]  ;;  %v6656_v27 = vld [vmem:[%s10329_s9 + $0x88] sm:$0xff] }
0x1569   : > { %v9544_v35 = vadd.f32 %v6631_v34, %v3544_v49 }
0x156a   : > { %v3539_v50 = vpop.f32.mrb[76].mxu1 }
0x156b   : > { %v3545_v21 = vadd.f32 %v3539_v50, %v9431_v16  ;;  %v7641_v51 = vpop.f32.mrb[77].mxu1  ;;  %v3563_v44 = vsel %vm816_vm2, %v9544_v35, 0.0  ;;  %v8231_v50 = vpack.c.bf16 %v6656_v27, %v6655_v22 }
0x156c   : > { %3564 = vadd.xlane.f32.xlu1 %v3563_v44  ;;  %v6658_v51 = vld [vmem:[%s10329_s9 + $0x98] sm:$0xff] }
0x156d   : > { %v9549_v52 = vadd.f32 %v6631_v34, %v3545_v21  ;;  %v8228_v34 = vpack.c.bf16 %v6649_v43, %v6648_v28  ;;  %v6657_v21 = vld [vmem:[%s10329_s9 + $0x90] sm:$0xff] }
0x156e   : > { %v8234_v44 = vpack.c.bf16 %v6658_v51, %v6657_v21 }
0x156f   : > { %v3566_v33 = vsel %vm816_vm2, %v9549_v52, 0.0 }
0x1570   : > { %3567 = vadd.xlane.f32.xlu0 %v3566_v33 }
0x15f5   : > { %v3562_v53 = vpop.xlane.xlu0 %3561 }
0x15f6   : > { %v3569_v32 = vmul.f32 0.03125, %v3562_v53 }
0x15f8   : > { %v3572_v54 = vsub.f32 %v9539_v47, %v3569_v32 }
0x15f9   : > { %v3565_v55 = vpop.xlane.xlu1 %3564 }
0x15fa   : > { %v3570_v56 = vmul.f32 0.03125, %v3565_v55  ;;  %v3575_v26 = vmul.f32 %v3572_v54, %v3572_v54 }
0x15fc   : > { %v3573_v16 = vsub.f32 %v9544_v35, %v3570_v56  ;;  %v3578_v57 = vsel %vm816_vm2, %v3575_v26, 0.0 }
0x15fd   : > { %3579 = vadd.xlane.f32.xlu1 %v3578_v57  ;;  %v3568_v58 = vpop.xlane.xlu0 %3567  ;;  %v6651_v57 = vld [vmem:[%s10389_s8 + $0x4] ss:$0 sm:$0xff] }
0x15fe   : > { %v3571_v59 = vmul.f32 0.03125, %v3568_v58  ;;  %v3576_v60 = vmul.f32 %v3573_v16, %v3573_v16 }
0x1600   : > { %v3574_v61 = vsub.f32 %v9549_v52, %v3571_v59  ;;  %v3581_v63 = vsel %vm816_vm2, %v3576_v60, 0.0 }
0x1601   : > { %3582 = vadd.xlane.f32.xlu0 %v3581_v63 }
0x1602   : > { %v3577_v0 = vmul.f32 %v3574_v61, %v3574_v61 }
0x1604   : > { %v3584_v1 = vsel %vm816_vm2, %v3577_v0, 0.0 }
0x1605   : > { %3585 = vadd.xlane.f32.xlu1 %v3584_v1 }
0x168a   : > { %v3580_v9 = vpop.xlane.xlu1 %3579 }
0x168b   : > { %v3587_v10 = vmul.f32 0.03125, %v3580_v9 }
0x168d   : > { %v3590_v12 = vadd.f32 1e-06, %v3587_v10 }
0x168e   : > { %v3583_v13 = vpop.xlane.xlu0 %3582 }
0x168f   : > { %8464 = vrsqrt.f32 %v3590_v12  ;;  %v3588_v19 = vmul.f32 0.03125, %v3583_v13 }
0x1691   : > { %v3591_v14 = vadd.f32 1e-06, %v3588_v19 }
0x1692   : > { %v3586_v15 = vpop.xlane.xlu1 %3585 }
0x1693   : > { %8466 = vrsqrt.f32 %v3591_v14  ;;  %v3589_v17 = vmul.f32 0.03125, %v3586_v15 }
0x1695   : > { %v3592_v18 = vadd.f32 1e-06, %v3589_v17 }
0x1697   : > { %8468 = vrsqrt.f32 %v3592_v18 }
0x1699   : > { %v8465_v24 = vpop.eup %8464 }
0x169a   : > { %v3596_v23 = vmul.f32 %v8465_v24, %v3572_v54 }
0x169c   : > { %v3605_v36 = vmul.f32 %v6634_v20, %v3596_v23 }
0x169d   : > { %v8467_v38 = vpop.eup %8466 }
0x169e   : > { %v9585_v41 = vadd.f32 %v6635_v30, %v3605_v36  ;;  %v3597_v42 = vmul.f32 %v8467_v38, %v3573_v16 }
0x16a0   : > { %v3606_v31 = vmul.f32 %v6634_v20, %v3597_v42  ;;  %7651 = vmatmul.mubr.msk.f32.vlgmr.msra.gmra.mrb[84].mxu0 %vm816_vm2, %v9585_v41 }
0x16a1   : > { %v8469_v45 = vpop.eup %8468  ;;  %7653 = vmatprep.mubr.msk.f32.mxu0 %vm8597_vm0, %v8598_v6  ;;  %8226 = vmatpush3.bf16.msra.mxu0 %v8225_v39 }
0x16a2   : > { %v9597_v40 = vadd.f32 %v6635_v30, %v3606_v31  ;;  %v3598_v46 = vmul.f32 %v8469_v45, %v3574_v61  ;;  %8227 = vmatprep.subr.bf16.mxu0 %v8596_v3 }
0x16a4   : > { %v3607_v48 = vmul.f32 %v6634_v20, %v3598_v46  ;;  %7654 = vmatmul.mubr.msk.f32.gmra.mrb[86].mxu0 %vm816_vm2, %v9597_v40 }
0x16a5   : > { %7656 = vmatprep.mubr.msk.f32.mxu0 %vm8597_vm0, %v8598_v6  ;;  %8229 = vmatpush3.bf16.msra.mxu0 %v8228_v34 }
0x16a6   : > { %v9604_v49 = vadd.f32 %v6635_v30, %v3607_v48  ;;  %8230 = vmatprep.subr.bf16.mxu0 %v8596_v3 }
0x16a8   : > { %7657 = vmatmul.mubr.msk.f32.gmra.mrb[88].mxu0 %vm816_vm2, %v9604_v49 }
0x16a9   : > { %7667 = vmatprep.mubr.msk.f32.mxu0 %vm8597_vm0, %v8598_v6 }
0x16ac   : > { %7668 = vmatmul.mubr.msk.f32.vlgmr.msra.gmra.mrb[90].mxu0 %vm816_vm2, %v9585_v41 }
0x16ad   : > { %7670 = vmatprep.mubr.msk.f32.mxu0 %vm8597_vm0, %v8598_v6  ;;  %8232 = vmatpush3.bf16.msra.mxu0 %v8231_v50 }
0x16ae   : > { %8233 = vmatprep.subr.bf16.mxu0 %v8596_v3 }
0x16b0   : > { %7671 = vmatmul.mubr.msk.f32.gmra.mrb[92].mxu0 %vm816_vm2, %v9597_v40 }
0x16b1   : > { %7673 = vmatprep.mubr.msk.f32.mxu0 %vm8597_vm0, %v8598_v6  ;;  %8235 = vmatpush3.bf16.msra.mxu0 %v8234_v44 }
0x16b2   : > { %8240 = vmatprep.subr.bf16.mxu0 %v8596_v3 }
0x16b4   : > { %7674 = vmatmul.mubr.msk.f32.gmra.mrb[94].mxu0 %vm816_vm2, %v9604_v49 }
0x16b5   : > { %7684 = vmatprep.mubr.msk.f32.mxu0 %vm8597_vm0, %v8598_v6 }
0x16b8   : > { %7685 = vmatmul.mubr.msk.f32.vlgmr.msra.gmra.mrb[96].mxu0 %vm816_vm2, %v9585_v41 }
0x16b9   : > { %7687 = vmatprep.mubr.msk.f32.mxu0 %vm8597_vm0, %v8598_v6 }
0x16bc   : > { %7688 = vmatmul.mubr.msk.f32.gmra.mrb[98].mxu0 %vm816_vm2, %v9597_v40 }
0x16bd   : > { %7690 = vmatprep.mubr.msk.f32.mxu0 %vm8597_vm0, %v8598_v6 }
0x16c0   : > { %7691 = vmatmul.mubr.msk.f32.gmra.mrb[100].mxu0 %vm816_vm2, %v9604_v49 }
0x16c1   : > { %7714 = vmatprep.mubr.msk.f32.mxu0 %vm8597_vm0, %v8598_v6 }
0x1773   : > { %v3707_v33 = vpop.f32.mrb[84].mxu0 }
0x1774   : > { %v7652_v53 = vpop.f32.mrb[85].mxu0  ;;  %v3708_v13 = vadd.f32 %v6642_v7, %v3707_v33 }
0x1777   : > { %v3712_v32 = vpop.f32.mrb[86].mxu0 }
0x1778   : > { %v7655_v54 = vpop.f32.mrb[87].mxu0  ;;  %v3713_v17 = vadd.f32 %v6642_v7, %v3712_v32 }
0x177b   : > { %v3717_v55 = vpop.f32.mrb[88].mxu0 }
0x177c   : > { %v7658_v56 = vpop.f32.mrb[89].mxu0  ;;  %v3718_v24 = vadd.f32 %v6642_v7, %v3717_v55 }
0x177d   : > { %v6673_v56 = vld [vmem:[%s10331_s11 + $0x20] sm:$0xff] }
0x177f   : > { %v3800_v26 = vpop.f32.mrb[90].mxu0 }
0x1780   : > { %v7669_v16 = vpop.f32.mrb[91].mxu0  ;;  %v3801_v59 = vadd.f32 %v6651_v57, %v3800_v26 }
0x1783   : > { %v3805_v58 = vpop.f32.mrb[92].mxu0 }
0x1784   : > { %v3806_v60 = vadd.f32 %v6651_v57, %v3805_v58  ;;  %v7672_v61 = vpop.f32.mrb[93].mxu0  ;;  %v6678_v58 = vld [vmem:[%s10384_s6 + $0xa0] sm:$0xff] }
0x1786   : > { %v8237_v63 = vpack.c.bf16 %v3806_v60, %v3801_v59  ;;  %v6679_v59 = vld [vmem:[%s10384_s6 + $0xa8] sm:$0xff] }
0x1787   : > { %v3810_v0 = vpop.f32.mrb[94].mxu0  ;;  %v8244_v61 = vpack.c.bf16 %v6679_v59, %v6678_v58 }
0x1788   : > { %v7675_v1 = vpop.f32.mrb[95].mxu0  ;;  %8239 = vmatpush3.bf16.xpose.msk.msra.mxu1 %vm8929_vm4, %v8237_v63  ;;  %v3811_v8 = vadd.f32 %v6651_v57, %v3810_v0  ;;  %v6680_v0 = vld [vmem:[%s10384_s6 + $0xb0] sm:$0xff] }
0x1789   : > { %7697 = vmatprep.subr.mxu1 %v8598_v6  ;;  %v6681_v1 = vld [vmem:[%s10384_s6 + $0xb8] sm:$0xff] }
0x178b   : > { %v3893_v2 = vpop.f32.mrb[96].mxu0 }
0x178c   : > { %v7686_v4 = vpop.f32.mrb[97].mxu0  ;;  %v3894_v9 = vadd.f32 %v6660_v5, %v3893_v2 }
0x178d   : > { %v8247_v4 = vpack.c.bf16 %v6681_v1, %v6680_v0 }
0x178f   : > { %v3898_v11 = vpop.f32.mrb[98].mxu0 }
0x1790   : > { %v3899_v10 = vadd.f32 %v6660_v5, %v3898_v11  ;;  %v7689_v12 = vpop.f32.mrb[99].mxu0  ;;  %7698 = vmatpush3.xpose.msk.msra.mxu1 %vm1158_vm3, %v3811_v8  ;;  %v6696_v11 = vld [vmem:[%s10329_s9 + $0xa0] sm:$0xff] }
0x1791   : > { %7723 = vmatprep.subr.mxu1 %v8598_v6  ;;  %v6698_v12 = vld [vmem:[%s10329_s9 + $0xb0] sm:$0xff] }
0x1792   : > { %v8241_v19 = vpack.c.bf16 %v3899_v10, %v3894_v9  ;;  %v6697_v9 = vld [vmem:[%s10329_s9 + $0xa8] sm:$0xff] }
0x1793   : > { %v3903_v14 = vpop.f32.mrb[100].mxu0  ;;  %7700 = vmatmul.mubr.msk.f32.vlgmr.msra.gmra.mrb[78].mxu1 %vm1158_vm3, %v3708_v13  ;;  %v8256_v10 = vpack.c.bf16 %v6697_v9, %v6696_v11  ;;  %v6699_v13 = vld [vmem:[%s10329_s9 + $0xb8] sm:$0xff] }
0x1794   : > { %v7692_v15 = vpop.f32.mrb[101].mxu0  ;;  %8242 = vmatpush3.bf16.msra.mxu0 %v8241_v19  ;;  %7702 = vmatprep.mubr.msk.f32.mxu1 %vm8597_vm0, %v8598_v6  ;;  %v3904_v18 = vadd.f32 %v6660_v5, %v3903_v14  ;;  %v8259_v19 = vpack.c.bf16 %v6699_v13, %v6698_v12  ;;  %v6687_v14 = vld [vmem:[%s10386_s26 + $0xa0] sm:$0xff] }
0x1795   : > { %7712 = vmatprep.subr.mxu0 %v8598_v6  ;;  %7724 = vmatpush3.msra.mxu1 %v6673_v56  ;;  %v6688_v15 = vld [vmem:[%s10386_s26 + $0xa8] sm:$0xff] }
0x1796   : > { %8249 = vmatprep.subr.bf16.mxu1 %v8596_v3 }
0x1797   : > { %7703 = vmatmul.mubr.msk.f32.gmra.mrb[80].mxu1 %vm1158_vm3, %v3713_v17  ;;  %v8250_v17 = vpack.c.bf16 %v6688_v15, %v6687_v14 }
0x1798   : > { %7713 = vmatpush3.msra.mxu0 %v3904_v18  ;;  %7705 = vmatprep.mubr.msk.f32.mxu1 %vm8597_vm0, %v8598_v6  ;;  %v6689_v18 = vld [vmem:[%s10386_s26 + $0xb0] sm:$0xff] }
0x1799   : > { %8243 = vmatprep.subr.bf16.mxu0 %v8596_v3 }
0x179b   : > { %7706 = vmatmul.mubr.msk.f32.gmra.mrb[82].mxu1 %vm1158_vm3, %v3718_v24  ;;  %v6690_v24 = vld [vmem:[%s10386_s26 + $0xb8] sm:$0xff] }
0x179c   : > { %7725 = vmatprep.mubr.msk.f32.mxu1 %vm8597_vm0, %v8598_v6 }
0x1866   : > { %v3991_v20 = vpop.f32.mrb[78].mxu1 }
0x1867   : > { %v3992_v23 = vadd.f32 %v3991_v20, %v8955_v62  ;;  %v7701_v25 = vpop.f32.mrb[79].mxu1 }
0x1868   : > { %v8253_v25 = vpack.c.bf16 %v6690_v24, %v6689_v18 }
0x1869   : > { %v4005_v29 = vsel %vm1257_vm6, %v3992_v23, -inf }
0x186a   : > { %4006 = vmax.xlane.f32.xlu0 %v4005_v29  ;;  %v3996_v30 = vpop.f32.mrb[80].mxu1 }
0x186b   : > { %v3997_v36 = vadd.f32 %v3996_v30, %v8955_v62  ;;  %v7704_v38 = vpop.f32.mrb[81].mxu1 }
0x186d   : > { %v4008_v39 = vsel %vm1257_vm6, %v3997_v36, -inf }
0x186e   : > { %4009 = vmax.xlane.f32.xlu1 %v4008_v39  ;;  %v4001_v42 = vpop.f32.mrb[82].mxu1 }
0x186f   : > { %v4002_v28 = vadd.f32 %v4001_v42, %v8955_v62  ;;  %v7707_v43 = vpop.f32.mrb[83].mxu1 }
0x1871   : > { %v4011_v31 = vsel %vm1257_vm6, %v4002_v28, -inf }
0x1872   : > { %4012 = vmax.xlane.f32.xlu0 %v4011_v31 }
0x18f7   : > { %v4007_v45 = vpop.xlane.xlu0 %4006 }
0x18f8   : > { %v4014_v34 = vsub.f32 %v3992_v23, %v4007_v45 }
0x18fa   : > { %v4017_v46 = vmul.f32 1.442695, %v4014_v34 }
0x18fb   : > { %v4010_v48 = vpop.xlane.xlu1 %4009 }
0x18fc   : > { %8470 = vpow2.f32 %v4017_v46  ;;  %v4015_v22 = vsub.f32 %v3997_v36, %v4010_v48  ;;  %v6701_v48 = vld [vmem:[%s10330_s10 + $0x5] ss:$0 sm:$0xff] }
0x18fe   : > { %v4019_v27 = vmul.f32 1.442695, %v4015_v22 }
0x18ff   : > { %v4013_v50 = vpop.xlane.xlu0 %4012 }
0x1900   : > { %8472 = vpow2.f32 %v4019_v27  ;;  %v4016_v21 = vsub.f32 %v4002_v28, %v4013_v50 }
0x1902   : > { %v4021_v51 = vmul.f32 1.442695, %v4016_v21 }
0x1904   : > { %8474 = vpow2.f32 %v4021_v51 }
0x1906   : > { %v8471_v44 = vpop.eup %8470 }
0x1907   : > { %v4023_v33 = vsel %vm1257_vm6, %v8471_v44, 0.0 }
0x1908   : > { %4024 = vadd.xlane.f32.xlu1 %v4023_v33 }
0x190a   : > { %v8473_v53 = vpop.eup %8472 }
0x190b   : > { %v4026_v32 = vsel %vm1257_vm6, %v8473_v53, 0.0 }
0x190c   : > { %4027 = vadd.xlane.f32.xlu0 %v4026_v32 }
0x190e   : > { %v8475_v54 = vpop.eup %8474 }
0x190f   : > { %v4029_v55 = vsel %vm1257_vm6, %v8475_v54, 0.0 }
0x1910   : > { %4030 = vadd.xlane.f32.xlu1 %v4029_v55 }
0x1995   : > { %v4025_v26 = vpop.xlane.xlu1 %4024 }
0x1996   : > { %8476 = vrcp.f32 %v4025_v26  ;;  %v9795_v26 = vld [vmem:[%s10332_s12 + $0x1] ss:$0 sm:$0xff] }
0x1999   : > { %v4028_v16 = vpop.xlane.xlu0 %4027 }
0x199a   : > { %8478 = vrcp.f32 %v4028_v16 }
0x199d   : > { %v4031_v57 = vpop.xlane.xlu1 %4030 }
0x199e   : > { %8480 = vrcp.f32 %v4031_v57 }
0x19a0   : > { %v8477_v60 = vpop.eup %8476 }
0x19a1   : > { %v4035_v63 = vmul.f32 %v8477_v60, %v8471_v44 }
0x19a3   : > { %7715 = vmatmul.mubr.msk.f32.vlgmr.msra.gmra.mrb[102].mxu0 %vm1257_vm6, %v4035_v63 }
0x19a4   : > { %v8479_v2 = vpop.eup %8478  ;;  %7717 = vmatprep.mubr.msk.f32.mxu0 %vm8597_vm0, %v8598_v6  ;;  %8245 = vmatpush3.bf16.msra.mxu0 %v8244_v61  ;;  %v6692_v61 = vld [vmem:[%s10389_s8 + $0x5] ss:$0 sm:$0xff] }
0x19a5   : > { %v4036_v5 = vmul.f32 %v8479_v2, %v8473_v53  ;;  %8246 = vmatprep.subr.bf16.mxu0 %v8596_v3 }
0x19a7   : > { %7718 = vmatmul.mubr.msk.f32.gmra.mrb[104].mxu0 %vm1257_vm6, %v4036_v5 }
0x19a8   : > { %v8481_v7 = vpop.eup %8480  ;;  %7720 = vmatprep.mubr.msk.f32.mxu0 %vm8597_vm0, %v8598_v6  ;;  %8248 = vmatpush3.bf16.msra.mxu0 %v8247_v4 }
0x19a9   : > { %v4037_v8 = vmul.f32 %v8481_v7, %v8475_v54  ;;  %8255 = vmatprep.subr.bf16.mxu0 %v8596_v3 }
0x19ab   : > { %7721 = vmatmul.mubr.msk.f32.gmra.mrb[106].mxu0 %vm1257_vm6, %v4037_v8  ;;  %v6683_v8 = vld [vmem:[%s10392_s28 + $0x5] ss:$0 sm:$0xff] }
0x19ac   : > { %7742 = vmatprep.mubr.msk.f32.mxu0 %vm8597_vm0, %v8598_v6 }
0x19af   : > { %7743 = vmatmul.mubr.msk.f32.vlgmr.msra.gmra.mrb[108].mxu0 %vm816_vm2, %v9585_v41 }
0x19b0   : > { %7745 = vmatprep.mubr.msk.f32.mxu0 %vm8597_vm0, %v8598_v6  ;;  %8257 = vmatpush3.bf16.msra.mxu0 %v8256_v10 }
0x19b1   : > { %8258 = vmatprep.subr.bf16.mxu0 %v8596_v3 }
0x19b3   : > { %7746 = vmatmul.mubr.msk.f32.gmra.mrb[110].mxu0 %vm816_vm2, %v9597_v40 }
0x19b4   : > { %7748 = vmatprep.mubr.msk.f32.mxu0 %vm8597_vm0, %v8598_v6  ;;  %8260 = vmatpush3.bf16.msra.mxu0 %v8259_v19 }
0x19b5   : > { %8265 = vmatprep.subr.bf16.mxu0 %v8596_v3 }
0x19b7   : > { %7749 = vmatmul.mubr.msk.f32.gmra.mrb[112].mxu0 %vm816_vm2, %v9604_v49 }
0x19b8   : > { %7776 = vmatprep.mubr.msk.f32.mxu0 %vm8597_vm0, %v8598_v6 }
0x19bb   : > { %7777 = vmatmul.mubr.msk.f32.vlgmr.msra.gmra.mrb[114].mxu0 %vm816_vm2, %v9585_v41 }
0x19bc   : > { %7779 = vmatprep.mubr.msk.f32.mxu0 %vm8597_vm0, %v8598_v6 }
0x19bf   : > { %7780 = vmatmul.mubr.msk.f32.gmra.mrb[116].mxu0 %vm816_vm2, %v9597_v40 }
0x19c0   : > { %7782 = vmatprep.mubr.msk.f32.mxu0 %vm8597_vm0, %v8598_v6 }
0x19c3   : > { %7783 = vmatmul.mubr.msk.f32.gmra.mrb[118].mxu0 %vm816_vm2, %v9604_v49 }
0x19c4   : > { %7806 = vmatprep.mubr.msk.f32.mxu0 %vm8597_vm0, %v8598_v6 }
0x1a76   : > { %v4113_v20 = vpop.f32.mrb[102].mxu0 }
0x1a77   : > { %v7716_v23 = vpop.f32.mrb[103].mxu0  ;;  %7726 = vmatmul.mubr.msk.f32.vlgmr.msra.gmra.mrb[84].mxu1 %vm1158_vm3, %v4113_v20 }
0x1a78   : > { %7728 = vmatprep.mubr.msk.f32.mxu1 %vm8597_vm0, %v8598_v6  ;;  %8251 = vmatpush3.bf16.msra.mxu1 %v8250_v17 }
0x1a79   : > { %8252 = vmatprep.subr.bf16.mxu1 %v8596_v3 }
0x1a7a   : > { %v4118_v29 = vpop.f32.mrb[104].mxu0 }
0x1a7b   : > { %v7719_v30 = vpop.f32.mrb[105].mxu0  ;;  %7729 = vmatmul.mubr.msk.f32.gmra.mrb[86].mxu1 %vm1158_vm3, %v4118_v29 }
0x1a7c   : > { %7731 = vmatprep.mubr.msk.f32.mxu1 %vm8597_vm0, %v8598_v6  ;;  %8254 = vmatpush3.bf16.msra.mxu1 %v8253_v25 }
0x1a7d   : > { %8261 = vmatprep.subr.bf16.mxu1 %v8596_v3 }
0x1a7e   : > { %v4123_v36 = vpop.f32.mrb[106].mxu0 }
0x1a7f   : > { %v7722_v38 = vpop.f32.mrb[107].mxu0  ;;  %7732 = vmatmul.mubr.msk.f32.gmra.mrb[88].mxu1 %vm1158_vm3, %v4123_v36 }
0x1a80   : > { %7759 = vmatprep.mubr.msk.f32.mxu1 %vm8597_vm0, %v8598_v6 }
0x1a82   : > { %v4306_v39 = vpop.f32.mrb[108].mxu0 }
0x1a83   : > { %v7744_v42 = vpop.f32.mrb[109].mxu0  ;;  %7760 = vmatmul.mubr.msk.f32.vlgmr.msra.gmra.mrb[90].mxu1 %vm816_vm2, %v9585_v41  ;;  %v4307_v9 = vadd.f32 %v6683_v8, %v4306_v39 }
0x1a84   : > { %7762 = vmatprep.mubr.msk.f32.mxu1 %vm8597_vm0, %v8598_v6 }
0x1a86   : > { %v4311_v28 = vpop.f32.mrb[110].mxu0 }
0x1a87   : > { %v7747_v43 = vpop.f32.mrb[111].mxu0  ;;  %7763 = vmatmul.mubr.msk.f32.gmra.mrb[92].mxu1 %vm816_vm2, %v9597_v40  ;;  %v4312_v10 = vadd.f32 %v6683_v8, %v4311_v28 }
0x1a88   : > { %7765 = vmatprep.mubr.msk.f32.mxu1 %vm8597_vm0, %v8598_v6 }
0x1a8a   : > { %v4316_v31 = vpop.f32.mrb[112].mxu0 }
0x1a8b   : > { %v7750_v45 = vpop.f32.mrb[113].mxu0  ;;  %7766 = vmatmul.mubr.msk.f32.gmra.mrb[94].mxu1 %vm816_vm2, %v9604_v49  ;;  %v4317_v12 = vadd.f32 %v6683_v8, %v4316_v31 }
0x1a8c   : > { %7791 = vmatprep.mubr.msk.f32.mxu1 %vm8597_vm0, %v8598_v6 }
0x1a8e   : > { %v4492_v34 = vpop.f32.mrb[114].mxu0 }
0x1a8f   : > { %v7778_v46 = vpop.f32.mrb[115].mxu0  ;;  %v4493_v27 = vadd.f32 %v6701_v48, %v4492_v34 }
0x1a92   : > { %v4497_v22 = vpop.f32.mrb[116].mxu0 }
0x1a93   : > { %v4498_v50 = vadd.f32 %v6701_v48, %v4497_v22  ;;  %v7781_v21 = vpop.f32.mrb[117].mxu0 }
0x1a95   : > { %v8266_v51 = vpack.c.bf16 %v4498_v50, %v4493_v27 }
0x1a96   : > { %v4502_v44 = vpop.f32.mrb[118].mxu0 }
0x1a97   : > { %v7784_v33 = vpop.f32.mrb[119].mxu0  ;;  %8267 = vmatpush3.bf16.msra.mxu0 %v8266_v51  ;;  %v4503_v53 = vadd.f32 %v6701_v48, %v4502_v44  ;;  %v6714_v51 = vld [vmem:[%s10331_s11 + $0x28] sm:$0xff] }
0x1a98   : > { %7804 = vmatprep.subr.mxu0 %v8598_v6 }
0x1a9b   : > { %7805 = vmatpush3.msra.mxu0 %v4503_v53 }
0x1a9c   : > { %8268 = vmatprep.subr.bf16.mxu0 %v8596_v3 }
0x1b4a   : > { %v9788_v32 = vpop.f32.mrb[84].mxu1 }
0x1b4b   : > { %v7727_v54 = vpop.f32.mrb[85].mxu1 }
0x1b4c   : > { %v6718_v54 = vld [vmem:[%s10384_s6 + $0xc0] sm:$0xff] }
0x1b4e   : > { %v9790_v55 = vpop.f32.mrb[86].mxu1 }
0x1b4f   : > { %v7730_v56 = vpop.f32.mrb[87].mxu1 }
0x1b50   : > { %v6719_v56 = vld [vmem:[%s10384_s6 + $0xc8] sm:$0xff] }
0x1b52   : > { %v4214_v16 = vpop.f32.mrb[88].mxu1 }
0x1b53   : > { %v9798_v57 = vadd.f32 %v9795_v26, %v4214_v16  ;;  %v7733_v58 = vpop.f32.mrb[89].mxu1 }
0x1b54   : > { %v8269_v58 = vpack.c.bf16 %v6719_v56, %v6718_v54  ;;  %v4225_v56 = vadd.f32 %v9795_v26, %v9790_v55 }
0x1b56   : > { %v4399_v59 = vpop.f32.mrb[90].mxu1 }
0x1b57   : > { %v7761_v60 = vpop.f32.mrb[91].mxu1  ;;  %v4400_v0 = vadd.f32 %v6692_v61, %v4399_v59 }
0x1b58   : > { %v6720_v60 = vld [vmem:[%s10384_s6 + $0xd0] sm:$0xff] }
0x1b5a   : > { %v4404_v63 = vpop.f32.mrb[92].mxu1 }
0x1b5b   : > { %v4405_v1 = vadd.f32 %v6692_v61, %v4404_v63  ;;  %v7764_v2 = vpop.f32.mrb[93].mxu1 }
0x1b5d   : > { %v8262_v4 = vpack.c.bf16 %v4405_v1, %v4400_v0 }
0x1b5e   : > { %v4409_v5 = vpop.f32.mrb[94].mxu1 }
0x1b5f   : > { %v7767_v7 = vpop.f32.mrb[95].mxu1  ;;  %8264 = vmatpush3.bf16.xpose.msk.msra.mxu1 %vm8929_vm4, %v8262_v4  ;;  %v4410_v11 = vadd.f32 %v6692_v61, %v4409_v5  ;;  %v6721_v61 = vld [vmem:[%s10384_s6 + $0xd8] sm:$0xff]  ;;  %v6736_v5 = vld [vmem:[%s10329_s9 + $0xc0] sm:$0xff] }
0x1b60   : > { %7789 = vmatprep.subr.mxu1 %v8598_v6  ;;  %v8272_v0 = vpack.c.bf16 %v6721_v61, %v6720_v60  ;;  %v6737_v7 = vld [vmem:[%s10329_s9 + $0xc8] sm:$0xff] }
0x1b61   : > { %v8281_v8 = vpack.c.bf16 %v6737_v7, %v6736_v5 }
0x1b67   : > { %7790 = vmatpush3.xpose.msk.msra.mxu1 %vm1158_vm3, %v4410_v11  ;;  %v6738_v11 = vld [vmem:[%s10329_s9 + $0xd0] sm:$0xff] }
0x1b68   : > { %7815 = vmatprep.subr.mxu1 %v8598_v6 }
0x1b6a   : > { %7792 = vmatmul.mubr.msk.f32.vlgmr.msra.gmra.mrb[96].mxu1 %vm1158_vm3, %v4307_v9  ;;  %v6739_v9 = vld [vmem:[%s10329_s9 + $0xd8] sm:$0xff] }
0x1b6b   : > { %7794 = vmatprep.mubr.msk.f32.mxu1 %vm8597_vm0, %v8598_v6  ;;  %7816 = vmatpush3.msra.mxu1 %v6714_v51 }
0x1b6c   : > { %8274 = vmatprep.subr.bf16.mxu1 %v8596_v3 }
0x1b6e   : > { %7795 = vmatmul.mubr.msk.f32.gmra.mrb[98].mxu1 %vm1158_vm3, %v4312_v10  ;;  %v8284_v10 = vpack.c.bf16 %v6739_v9, %v6738_v11 }
0x1b6f   : > { %7797 = vmatprep.mubr.msk.f32.mxu1 %vm8597_vm0, %v8598_v6 }
0x1b72   : > { %7798 = vmatmul.mubr.msk.f32.gmra.mrb[100].mxu1 %vm1158_vm3, %v4317_v12  ;;  %v6727_v12 = vld [vmem:[%s10386_s26 + $0xc0] sm:$0xff] }
0x1b73   : > { %7817 = vmatprep.mubr.msk.f32.mxu1 %vm8597_vm0, %v8598_v6 }
0x1c3d   : > { %v4590_v13 = vpop.f32.mrb[96].mxu1 }
0x1c3e   : > { %v4591_v19 = vadd.f32 %v4590_v13, %v8955_v62  ;;  %v7793_v14 = vpop.f32.mrb[97].mxu1  ;;  %v6728_v13 = vld [vmem:[%s10386_s26 + $0xc8] sm:$0xff] }
0x1c3f   : > { %v6729_v14 = vld [vmem:[%s10386_s26 + $0xd0] sm:$0xff] }
0x1c40   : > { %v4604_v15 = vsel %vm1257_vm6, %v4591_v19, -inf }
0x1c41   : > { %4605 = vmax.xlane.f32.xlu0 %v4604_v15  ;;  %v4595_v17 = vpop.f32.mrb[98].mxu1  ;;  %v6730_v15 = vld [vmem:[%s10386_s26 + $0xd8] sm:$0xff] }
0x1c42   : > { %v4596_v18 = vadd.f32 %v4595_v17, %v8955_v62  ;;  %v7796_v24 = vpop.f32.mrb[99].mxu1 }
0x1c43   : > { %v8278_v24 = vpack.c.bf16 %v6730_v15, %v6729_v14 }
0x1c44   : > { %v4607_v20 = vsel %vm1257_vm6, %v4596_v18, -inf }
0x1c45   : > { %4608 = vmax.xlane.f32.xlu1 %v4607_v20  ;;  %v4600_v23 = vpop.f32.mrb[100].mxu1 }
0x1c46   : > { %v4601_v25 = vadd.f32 %v4600_v23, %v8955_v62  ;;  %v7799_v29 = vpop.f32.mrb[101].mxu1 }
0x1c48   : > { %v4610_v30 = vsel %vm1257_vm6, %v4601_v25, -inf }
0x1c49   : > { %4611 = vmax.xlane.f32.xlu0 %v4610_v30 }
0x1cce   : > { %v4606_v36 = vpop.xlane.xlu0 %4605 }
0x1ccf   : > { %v4613_v38 = vsub.f32 %v4591_v19, %v4606_v36  ;;  %v8275_v19 = vpack.c.bf16 %v6728_v13, %v6727_v12 }
0x1cd1   : > { %v4616_v39 = vmul.f32 1.442695, %v4613_v38 }
0x1cd2   : > { %v4609_v42 = vpop.xlane.xlu1 %4608 }
0x1cd3   : > { %8482 = vpow2.f32 %v4616_v39  ;;  %v4614_v28 = vsub.f32 %v4596_v18, %v4609_v42 }
0x1cd5   : > { %v4618_v43 = vmul.f32 1.442695, %v4614_v28 }
0x1cd6   : > { %v4612_v31 = vpop.xlane.xlu0 %4611 }
0x1cd7   : > { %8484 = vpow2.f32 %v4618_v43  ;;  %v4615_v45 = vsub.f32 %v4601_v25, %v4612_v31 }
0x1cd9   : > { %v4620_v34 = vmul.f32 1.442695, %v4615_v45  ;;  %v6741_v45 = vld [vmem:[%s10330_s10 + $0x6] ss:$0 sm:$0xff] }
0x1cdb   : > { %8486 = vpow2.f32 %v4620_v34 }
0x1cdd   : > { %v8483_v46 = vpop.eup %8482 }
0x1cde   : > { %v4622_v48 = vsel %vm1257_vm6, %v8483_v46, 0.0 }
0x1cdf   : > { %4623 = vadd.xlane.f32.xlu1 %v4622_v48 }
0x1ce1   : > { %v8485_v22 = vpop.eup %8484 }
0x1ce2   : > { %v4625_v27 = vsel %vm1257_vm6, %v8485_v22, 0.0 }
0x1ce3   : > { %4626 = vadd.xlane.f32.xlu0 %v4625_v27 }
0x1ce5   : > { %v8487_v50 = vpop.eup %8486 }
0x1ce6   : > { %v4628_v21 = vsel %vm1257_vm6, %v8487_v50, 0.0 }
0x1ce7   : > { %4629 = vadd.xlane.f32.xlu1 %v4628_v21 }
0x1d6c   : > { %v4624_v44 = vpop.xlane.xlu1 %4623 }
0x1d6d   : > { %8488 = vrcp.f32 %v4624_v44  ;;  %v4224_v44 = vadd.f32 %v9795_v26, %v9788_v32  ;;  %v6732_v32 = vld [vmem:[%s10389_s8 + $0x6] ss:$0 sm:$0xff] }
0x1d70   : > { %v4627_v33 = vpop.xlane.xlu0 %4626 }
0x1d71   : > { %8490 = vrcp.f32 %v4627_v33 }
0x1d74   : > { %v4630_v53 = vpop.xlane.xlu1 %4629 }
0x1d75   : > { %8492 = vrcp.f32 %v4630_v53 }
0x1d77   : > { %v8489_v16 = vpop.eup %8488 }
0x1d78   : > { %v4634_v59 = vmul.f32 %v8489_v16, %v8483_v46 }
0x1d7a   : > { %7807 = vmatmul.mubr.msk.f32.vlgmr.msra.gmra.mrb[120].mxu0 %vm1257_vm6, %v4634_v59 }
0x1d7b   : > { %v8491_v63 = vpop.eup %8490  ;;  %7809 = vmatprep.mubr.msk.f32.mxu0 %vm8597_vm0, %v8598_v6  ;;  %8270 = vmatpush3.bf16.msra.mxu0 %v8269_v58 }
0x1d7c   : > { %v4635_v1 = vmul.f32 %v8491_v63, %v8485_v22  ;;  %8271 = vmatprep.subr.bf16.mxu0 %v8596_v3 }
0x1d7e   : > { %7810 = vmatmul.mubr.msk.f32.gmra.mrb[122].mxu0 %vm1257_vm6, %v4635_v1 }
0x1d7f   : > { %v8493_v2 = vpop.eup %8492  ;;  %7812 = vmatprep.mubr.msk.f32.mxu0 %vm8597_vm0, %v8598_v6  ;;  %8273 = vmatpush3.bf16.msra.mxu0 %v8272_v0 }
0x1d80   : > { %v4636_v4 = vmul.f32 %v8493_v2, %v8487_v50  ;;  %8280 = vmatprep.subr.bf16.mxu0 %v8596_v3 }
0x1d82   : > { %7813 = vmatmul.mubr.msk.f32.gmra.mrb[124].mxu0 %vm1257_vm6, %v4636_v4 }
0x1d83   : > { %7834 = vmatprep.mubr.msk.f32.mxu0 %vm8597_vm0, %v8598_v6 }
0x1d86   : > { %7835 = vmatmul.mubr.msk.f32.vlgmr.msra.gmra.mrb[126].mxu0 %vm816_vm2, %v9585_v41 }
0x1d87   : > { %7837 = vmatprep.mubr.msk.f32.mxu0 %vm8597_vm0, %v8598_v6  ;;  %8282 = vmatpush3.bf16.msra.mxu0 %v8281_v8 }
0x1d88   : > { %8283 = vmatprep.subr.bf16.mxu0 %v8596_v3 }
0x1d8a   : > { %7838 = vmatmul.mubr.msk.f32.gmra.mrb[128].mxu0 %vm816_vm2, %v9597_v40 }
0x1d8b   : > { %7840 = vmatprep.mubr.msk.f32.mxu0 %vm8597_vm0, %v8598_v6  ;;  %8285 = vmatpush3.bf16.msra.mxu0 %v8284_v10 }
0x1d8c   : > { %8290 = vmatprep.subr.bf16.mxu0 %v8596_v3 }
0x1d8e   : > { %7841 = vmatmul.mubr.msk.f32.gmra.mrb[130].mxu0 %vm816_vm2, %v9604_v49 }
0x1d8f   : > { %7868 = vmatprep.mubr.msk.f32.mxu0 %vm8597_vm0, %v8598_v6 }
0x1d92   : > { %7869 = vmatmul.mubr.msk.f32.vlgmr.msra.gmra.mrb[132].mxu0 %vm816_vm2, %v9585_v41 }
0x1d93   : > { %7871 = vmatprep.mubr.msk.f32.mxu0 %vm8597_vm0, %v8598_v6 }
0x1d96   : > { %7872 = vmatmul.mubr.msk.f32.gmra.mrb[134].mxu0 %vm816_vm2, %v9597_v40 }
0x1d97   : > { %7874 = vmatprep.mubr.msk.f32.mxu0 %vm8597_vm0, %v8598_v6 }
0x1d9a   : > { %7875 = vmatmul.mubr.msk.f32.gmra.mrb[136].mxu0 %vm816_vm2, %v9604_v49 }
0x1d9b   : > { %7898 = vmatprep.mubr.msk.f32.mxu0 %vm8597_vm0, %v8598_v6 }
0x1e4d   : > { %v4712_v17 = vpop.f32.mrb[120].mxu0 }
0x1e4e   : > { %v7808_v18 = vpop.f32.mrb[121].mxu0  ;;  %7818 = vmatmul.mubr.msk.f32.vlgmr.msra.gmra.mrb[102].mxu1 %vm1158_vm3, %v4712_v17 }
0x1e4f   : > { %7820 = vmatprep.mubr.msk.f32.mxu1 %vm8597_vm0, %v8598_v6  ;;  %8276 = vmatpush3.bf16.msra.mxu1 %v8275_v19 }
0x1e50   : > { %8277 = vmatprep.subr.bf16.mxu1 %v8596_v3 }
0x1e51   : > { %v4717_v20 = vpop.f32.mrb[122].mxu0 }
0x1e52   : > { %v7811_v23 = vpop.f32.mrb[123].mxu0  ;;  %7821 = vmatmul.mubr.msk.f32.gmra.mrb[104].mxu1 %vm1158_vm3, %v4717_v20 }
0x1e53   : > { %7823 = vmatprep.mubr.msk.f32.mxu1 %vm8597_vm0, %v8598_v6  ;;  %8279 = vmatpush3.bf16.msra.mxu1 %v8278_v24 }
0x1e54   : > { %8286 = vmatprep.subr.bf16.mxu1 %v8596_v3 }
0x1e55   : > { %v4722_v25 = vpop.f32.mrb[124].mxu0 }
0x1e56   : > { %v7814_v29 = vpop.f32.mrb[125].mxu0  ;;  %7824 = vmatmul.mubr.msk.f32.gmra.mrb[106].mxu1 %vm1158_vm3, %v4722_v25 }
0x1e57   : > { %7851 = vmatprep.mubr.msk.f32.mxu1 %vm8597_vm0, %v8598_v6 }
0x1e59   : > { %v4899_v30 = vpop.f32.mrb[126].mxu0 }
0x1e5a   : > { %v7836_v36 = vpop.f32.mrb[127].mxu0  ;;  %7852 = vmatmul.mubr.msk.f32.vlgmr.msra.gmra.mrb[108].mxu1 %vm816_vm2, %v9585_v41 }
0x1e5b   : > { %7854 = vmatprep.mubr.msk.f32.mxu1 %vm8597_vm0, %v8598_v6 }
0x1e5d   : > { %v4904_v38 = vpop.f32.mrb[128].mxu0 }
0x1e5e   : > { %v7839_v39 = vpop.f32.mrb[129].mxu0  ;;  %7855 = vmatmul.mubr.msk.f32.gmra.mrb[110].mxu1 %vm816_vm2, %v9597_v40 }
0x1e5f   : > { %7857 = vmatprep.mubr.msk.f32.mxu1 %vm8597_vm0, %v8598_v6 }
0x1e61   : > { %v4909_v42 = vpop.f32.mrb[130].mxu0 }
0x1e62   : > { %v7842_v28 = vpop.f32.mrb[131].mxu0  ;;  %7858 = vmatmul.mubr.msk.f32.gmra.mrb[112].mxu1 %vm816_vm2, %v9604_v49 }
0x1e63   : > { %7883 = vmatprep.mubr.msk.f32.mxu1 %vm8597_vm0, %v8598_v6 }
0x1e65   : > { %v5085_v43 = vpop.f32.mrb[132].mxu0 }
0x1e66   : > { %v7870_v31 = vpop.f32.mrb[133].mxu0  ;;  %v5086_v46 = vadd.f32 %v6741_v45, %v5085_v43 }
0x1e69   : > { %v5090_v34 = vpop.f32.mrb[134].mxu0 }
0x1e6a   : > { %v5091_v48 = vadd.f32 %v6741_v45, %v5090_v34  ;;  %v7873_v22 = vpop.f32.mrb[135].mxu0 }
0x1e6c   : > { %v8291_v27 = vpack.c.bf16 %v5091_v48, %v5086_v46 }
0x1e6d   : > { %v5095_v50 = vpop.f32.mrb[136].mxu0 }
0x1e6e   : > { %v7876_v21 = vpop.f32.mrb[137].mxu0  ;;  %8292 = vmatpush3.bf16.msra.mxu0 %v8291_v27  ;;  %v5096_v51 = vadd.f32 %v6741_v45, %v5095_v50 }
0x1e6f   : > { %7896 = vmatprep.subr.mxu0 %v8598_v6 }
0x1e72   : > { %7897 = vmatpush3.msra.mxu0 %v5096_v51  ;;  %v6754_v51 = vld [vmem:[%s10331_s11 + $0x30] sm:$0xff] }
0x1e73   : > { %8293 = vmatprep.subr.bf16.mxu0 %v8596_v3 }
0x1f21   : > { %v4803_v33 = vpop.f32.mrb[102].mxu1 }
0x1f22   : > { %v9936_v53 = vadd.f32 %v4803_v33, %v4224_v44  ;;  %v7819_v54 = vpop.f32.mrb[103].mxu1 }
0x1f25   : > { %v4808_v16 = vpop.f32.mrb[104].mxu1 }
0x1f26   : > { %v9940_v58 = vadd.f32 %v4808_v16, %v4225_v56  ;;  %v7822_v59 = vpop.f32.mrb[105].mxu1  ;;  %v6758_v56 = vld [vmem:[%s10384_s6 + $0xe0] sm:$0xff]  ;;  %v6759_v16 = vld [vmem:[%s10384_s6 + $0xe8] sm:$0xff] }
0x1f29   : > { %v4813_v60 = vpop.f32.mrb[106].mxu1 }
0x1f2a   : > { %v9943_v61 = vadd.f32 %v4813_v60, %v9798_v57  ;;  %v7825_v63 = vpop.f32.mrb[107].mxu1  ;;  %v6723_v57 = vld [vmem:[%s10392_s28 + $0x6] ss:$0 sm:$0xff]  ;;  %v8294_v60 = vpack.c.bf16 %v6759_v16, %v6758_v56 }
0x1f2b   : > { %v4900_v9 = vadd.f32 %v6723_v57, %v4899_v30  ;;  %v4905_v10 = vadd.f32 %v6723_v57, %v4904_v38  ;;  %v4910_v12 = vadd.f32 %v6723_v57, %v4909_v42  ;;  %v6778_v57 = vld [vmem:[%s10329_s9 + $0xf0] sm:$0xff] }
0x1f2d   : > { %v4992_v0 = vpop.f32.mrb[108].mxu1 }
0x1f2e   : > { %v7853_v1 = vpop.f32.mrb[109].mxu1  ;;  %v4993_v4 = vadd.f32 %v6732_v32, %v4992_v0  ;;  %v6760_v0 = vld [vmem:[%s10384_s6 + $0xf0] sm:$0xff] }
0x1f2f   : > { %v6761_v1 = vld [vmem:[%s10384_s6 + $0xf8] sm:$0xff]  ;;  %s8536_s6 = sshll.u32 %s8600_s5, 4  ;;  %s8537_s6 = int_to_ptr.vmem [resolvable:$false] %s8536_s6 }
0x1f30   : > { %p8539_p0 = scmp.lt.s32.totalorder %s10280_s3, %s8537_s6 }
0x1f31   : > { %v4997_v2 = vpop.f32.mrb[110].mxu1 }
0x1f32   : > { %v4998_v5 = vadd.f32 %v6732_v32, %v4997_v2  ;;  %v7856_v7 = vpop.f32.mrb[111].mxu1  ;;  %v8297_v2 = vpack.c.bf16 %v6761_v1, %v6760_v0 }
0x1f34   : > { %v8287_v55 = vpack.c.bf16 %v4998_v5, %v4993_v4 }
0x1f35   : > { %v5002_v26 = vpop.f32.mrb[112].mxu1 }
0x1f36   : > { %v7859_v8 = vpop.f32.mrb[113].mxu1  ;;  %8289 = vmatpush3.bf16.xpose.msk.msra.mxu1 %vm8929_vm4, %v8287_v55  ;;  %v5003_v11 = vadd.f32 %v6732_v32, %v5002_v26  ;;  %v6776_v55 = vld [vmem:[%s10329_s9 + $0xe0] sm:$0xff]  ;;  %v6777_v26 = vld [vmem:[%s10329_s9 + $0xe8] sm:$0xff] }
0x1f37   : > { %7881 = vmatprep.subr.mxu1 %v8598_v6  ;;  %v8306_v8 = vpack.c.bf16 %v6777_v26, %v6776_v55 }
0x1f3e   : > { %7882 = vmatpush3.xpose.msk.msra.mxu1 %vm1158_vm3, %v5003_v11  ;;  %v6779_v11 = vld [vmem:[%s10329_s9 + $0xf8] sm:$0xff] }
0x1f3f   : > { %7907 = vmatprep.subr.mxu1 %v8598_v6 }
0x1f41   : > { %7884 = vmatmul.mubr.msk.f32.vlgmr.msra.gmra.mrb[114].mxu1 %vm1158_vm3, %v4900_v9  ;;  %v8309_v9 = vpack.c.bf16 %v6779_v11, %v6778_v57 }
0x1f42   : > { %7886 = vmatprep.mubr.msk.f32.mxu1 %vm8597_vm0, %v8598_v6  ;;  %7908 = vmatpush3.msra.mxu1 %v6754_v51 }
0x1f43   : > { %8299 = vmatprep.subr.bf16.mxu1 %v8596_v3 }
0x1f45   : > { %7887 = vmatmul.mubr.msk.f32.gmra.mrb[116].mxu1 %vm1158_vm3, %v4905_v10  ;;  %v6767_v10 = vld [vmem:[%s10386_s26 + $0xe0] sm:$0xff] }
0x1f46   : > { %7889 = vmatprep.mubr.msk.f32.mxu1 %vm8597_vm0, %v8598_v6 }
0x1f49   : > { %7890 = vmatmul.mubr.msk.f32.gmra.mrb[118].mxu1 %vm1158_vm3, %v4910_v12  ;;  %v6768_v12 = vld [vmem:[%s10386_s26 + $0xe8] sm:$0xff] }
0x1f4a   : > { %7909 = vmatprep.mubr.msk.f32.mxu1 %vm8597_vm0, %v8598_v6 }
0x2014   : > { %v5183_v13 = vpop.f32.mrb[114].mxu1 }
0x2015   : > { %v5184_v19 = vadd.f32 %v5183_v13, %v8955_v62  ;;  %v7885_v14 = vpop.f32.mrb[115].mxu1  ;;  %v8300_v13 = vpack.c.bf16 %v6768_v12, %v6767_v10 }
0x2016   : > { %v6770_v14 = vld [vmem:[%s10386_s26 + $0xf8] sm:$0xff] }
0x2017   : > { %v5197_v15 = vsel %vm1257_vm6, %v5184_v19, -inf }
0x2018   : > { %5198 = vmax.xlane.f32.xlu0 %v5197_v15  ;;  %v5188_v17 = vpop.f32.mrb[116].mxu1 }
0x2019   : > { %v5189_v18 = vadd.f32 %v5188_v17, %v8955_v62  ;;  %v7888_v24 = vpop.f32.mrb[117].mxu1 }
0x201b   : > { %v5200_v20 = vsel %vm1257_vm6, %v5189_v18, -inf }
0x201c   : > { %5201 = vmax.xlane.f32.xlu1 %v5200_v20  ;;  %v5193_v23 = vpop.f32.mrb[118].mxu1 }
0x201d   : > { %v5194_v25 = vadd.f32 %v5193_v23, %v8955_v62  ;;  %v7891_v29 = vpop.f32.mrb[119].mxu1 }
0x201f   : > { %v5203_v30 = vsel %vm1257_vm6, %v5194_v25, -inf }
0x2020   : > { %5204 = vmax.xlane.f32.xlu0 %v5203_v30 }
0x20a5   : > { %v5199_v36 = vpop.xlane.xlu0 %5198 }
0x20a6   : > { %v5206_v38 = vsub.f32 %v5184_v19, %v5199_v36  ;;  %v6769_v19 = vld [vmem:[%s10386_s26 + $0xf0] sm:$0xff] }
0x20a8   : > { %v5209_v39 = vmul.f32 1.442695, %v5206_v38 }
0x20a9   : > { %v5202_v42 = vpop.xlane.xlu1 %5201 }
0x20aa   : > { %8494 = vpow2.f32 %v5209_v39  ;;  %v5207_v28 = vsub.f32 %v5189_v18, %v5202_v42  ;;  %v8303_v18 = vpack.c.bf16 %v6770_v14, %v6769_v19 }
0x20ac   : > { %v5211_v43 = vmul.f32 1.442695, %v5207_v28 }
0x20ad   : > { %v5205_v31 = vpop.xlane.xlu0 %5204 }
0x20ae   : > { %8496 = vpow2.f32 %v5211_v43  ;;  %v5208_v45 = vsub.f32 %v5194_v25, %v5205_v31  ;;  %v6781_v43 = vld [vmem:[%s10330_s10 + $0x7] ss:$0 sm:$0xff] }
0x20b0   : > { %v5213_v34 = vmul.f32 1.442695, %v5208_v45 }
0x20b2   : > { %8498 = vpow2.f32 %v5213_v34 }
0x20b4   : > { %v8495_v46 = vpop.eup %8494 }
0x20b5   : > { %v5215_v48 = vsel %vm1257_vm6, %v8495_v46, 0.0 }
0x20b6   : > { %5216 = vadd.xlane.f32.xlu1 %v5215_v48 }
0x20b8   : > { %v8497_v22 = vpop.eup %8496 }
0x20b9   : > { %v5218_v27 = vsel %vm1257_vm6, %v8497_v22, 0.0 }
0x20ba   : > { %5219 = vadd.xlane.f32.xlu0 %v5218_v27 }
0x20bc   : > { %v8499_v50 = vpop.eup %8498 }
0x20bd   : > { %v5221_v21 = vsel %vm1257_vm6, %v8499_v50, 0.0 }
0x20be   : > { %5222 = vadd.xlane.f32.xlu1 %v5221_v21 }
0x2143   : > { %v5217_v44 = vpop.xlane.xlu1 %5216 }
0x2144   : > { %8500 = vrcp.f32 %v5217_v44 }
0x2147   : > { %v5220_v33 = vpop.xlane.xlu0 %5219 }
0x2148   : > { %8502 = vrcp.f32 %v5220_v33 }
0x214b   : > { %v5223_v54 = vpop.xlane.xlu1 %5222 }
0x214c   : > { %8504 = vrcp.f32 %v5223_v54 }
0x214e   : > { %v8501_v59 = vpop.eup %8500 }
0x214f   : > { %v5227_v63 = vmul.f32 %v8501_v59, %v8495_v46 }
0x2151   : > { %7899 = vmatmul.mubr.msk.f32.vlgmr.msra.gmra.mrb[138].mxu0 %vm1257_vm6, %v5227_v63  ;;  %v6772_v63 = vld [vmem:[%s10389_s8 + $0x7] ss:$0 sm:$0xff]  ;;  %s8538_s8 = scalar_lea.vmem %s8537_s6, 32 }
0x2152   : > { %v8503_v32 = vpop.eup %8502  ;;  %7901 = vmatprep.mubr.msk.f32.mxu0 %vm8597_vm0, %v8598_v6  ;;  %8295 = vmatpush3.bf16.msra.mxu0 %v8294_v60  ;;  %p8540_p1 = scmp.lt.s32.totalorder %s8538_s8, %s8532_s27 }
0x2153   : > { %v5228_v4 = vmul.f32 %v8503_v32, %v8497_v22  ;;  %8296 = vmatprep.subr.bf16.mxu0 %v8596_v3 }
0x2154   : > { %p8541_p2 = por %p8540_p1, %p8539_p0 }
0x2155   : > { %7902 = vmatmul.mubr.msk.f32.gmra.mrb[140].mxu0 %vm1257_vm6, %v5228_v4 }
0x2156   : > { %v8505_v5 = vpop.eup %8504  ;;  %7904 = vmatprep.mubr.msk.f32.mxu0 %vm8597_vm0, %v8598_v6  ;;  %8298 = vmatpush3.bf16.msra.mxu0 %v8297_v2  ;;  %p8542_p3 = pnand %p8541_p2, %p8535_p13 }
0x2157   : > { %v5229_v7 = vmul.f32 %v8505_v5, %v8499_v50  ;;  %8305 = vmatprep.subr.bf16.mxu0 %v8596_v3 }
0x2159   : > { %7905 = vmatmul.mubr.msk.f32.gmra.mrb[142].mxu0 %vm1257_vm6, %v5229_v7 }
0x215a   : > { %7926 = vmatprep.mubr.msk.f32.mxu0 %vm8597_vm0, %v8598_v6 }
0x215d   : > { %7927 = vmatmul.mubr.msk.f32.vlgmr.msra.gmra.mrb[144].mxu0 %vm816_vm2, %v9585_v41 }
0x215e   : > { %7929 = vmatprep.mubr.msk.f32.mxu0 %vm8597_vm0, %v8598_v6  ;;  %8307 = vmatpush3.bf16.msra.mxu0 %v8306_v8 }
0x215f   : > { %8308 = vmatprep.subr.bf16.mxu0 %v8596_v3 }
0x2161   : > { %7930 = vmatmul.mubr.msk.f32.gmra.mrb[146].mxu0 %vm816_vm2, %v9597_v40 }
0x2162   : > { %7932 = vmatprep.mubr.msk.f32.mxu0 %vm8597_vm0, %v8598_v6  ;;  %8310 = vmatpush3.bf16.msra.mxu0 %v8309_v9 }
0x2163   : > { %8315 = vmatprep.subr.bf16.mxu0 %v8596_v3 }
0x2165   : > { %7933 = vmatmul.mubr.msk.f32.gmra.mrb[148].mxu0 %vm816_vm2, %v9604_v49 }
0x2166   : > { %7960 = vmatprep.mubr.msk.f32.mxu0 %vm8597_vm0, %v8598_v6 }
0x2169   : > { %7961 = vmatmul.mubr.msk.f32.vlgmr.msra.gmra.mrb[150].mxu0 %vm816_vm2, %v9585_v41 }
0x216a   : > { %7963 = vmatprep.mubr.msk.f32.mxu0 %vm8597_vm0, %v8598_v6 }
0x216d   : > { %7964 = vmatmul.mubr.msk.f32.gmra.mrb[152].mxu0 %vm816_vm2, %v9597_v40 }
0x216e   : > { %7966 = vmatprep.mubr.msk.f32.mxu0 %vm8597_vm0, %v8598_v6 }
0x2171   : > { %7967 = vmatmul.mubr.msk.f32.gmra.mrb[154].mxu0 %vm816_vm2, %v9604_v49 }
0x2172   : > { %7990 = vmatprep.mubr.msk.f32.mxu0 %vm8597_vm0, %v8598_v6 }
0x2224   : > { %v5305_v15 = vpop.f32.mrb[138].mxu0 }
0x2225   : > { %v7900_v17 = vpop.f32.mrb[139].mxu0  ;;  %7910 = vmatmul.mubr.msk.f32.vlgmr.msra.gmra.mrb[120].mxu1 %vm1158_vm3, %v5305_v15 }
0x2226   : > { %7912 = vmatprep.mubr.msk.f32.mxu1 %vm8597_vm0, %v8598_v6  ;;  %8301 = vmatpush3.bf16.msra.mxu1 %v8300_v13 }
0x2227   : > { %8302 = vmatprep.subr.bf16.mxu1 %v8596_v3 }
0x2228   : > { %v5310_v24 = vpop.f32.mrb[140].mxu0 }
0x2229   : > { %v7903_v20 = vpop.f32.mrb[141].mxu0  ;;  %7913 = vmatmul.mubr.msk.f32.gmra.mrb[122].mxu1 %vm1158_vm3, %v5310_v24 }
0x222a   : > { %7915 = vmatprep.mubr.msk.f32.mxu1 %vm8597_vm0, %v8598_v6  ;;  %8304 = vmatpush3.bf16.msra.mxu1 %v8303_v18 }
0x222b   : > { %8311 = vmatprep.subr.bf16.mxu1 %v8596_v3 }
0x222c   : > { %v5315_v23 = vpop.f32.mrb[142].mxu0 }
0x222d   : > { %v7906_v25 = vpop.f32.mrb[143].mxu0  ;;  %7916 = vmatmul.mubr.msk.f32.gmra.mrb[124].mxu1 %vm1158_vm3, %v5315_v23 }
0x222e   : > { %7943 = vmatprep.mubr.msk.f32.mxu1 %vm8597_vm0, %v8598_v6 }
0x2230   : > { %v5492_v29 = vpop.f32.mrb[144].mxu0 }
0x2231   : > { %v7928_v30 = vpop.f32.mrb[145].mxu0  ;;  %7944 = vmatmul.mubr.msk.f32.vlgmr.msra.gmra.mrb[126].mxu1 %vm816_vm2, %v9585_v41 }
0x2232   : > { %7946 = vmatprep.mubr.msk.f32.mxu1 %vm8597_vm0, %v8598_v6 }
0x2234   : > { %v5497_v36 = vpop.f32.mrb[146].mxu0 }
0x2235   : > { %v7931_v38 = vpop.f32.mrb[147].mxu0  ;;  %7947 = vmatmul.mubr.msk.f32.gmra.mrb[128].mxu1 %vm816_vm2, %v9597_v40 }
0x2236   : > { %7949 = vmatprep.mubr.msk.f32.mxu1 %vm8597_vm0, %v8598_v6 }
0x2238   : > { %v5502_v39 = vpop.f32.mrb[148].mxu0 }
0x2239   : > { %v7934_v42 = vpop.f32.mrb[149].mxu0  ;;  %7950 = vmatmul.mubr.msk.f32.gmra.mrb[130].mxu1 %vm816_vm2, %v9604_v49 }
0x223a   : > { %7975 = vmatprep.mubr.msk.f32.mxu1 %vm8597_vm0, %v8598_v6 }
0x223c   : > { %v5678_v41 = vpop.f32.mrb[150].mxu0 }
0x223d   : > { %v7962_v28 = vpop.f32.mrb[151].mxu0  ;;  %v5679_v45 = vadd.f32 %v6781_v43, %v5678_v41 }
0x2240   : > { %v5683_v31 = vpop.f32.mrb[152].mxu0 }
0x2241   : > { %v5684_v40 = vadd.f32 %v6781_v43, %v5683_v31  ;;  %v7965_v34 = vpop.f32.mrb[153].mxu0 }
0x2243   : > { %v8316_v46 = vpack.c.bf16 %v5684_v40, %v5679_v45 }
0x2244   : > { %v5688_v48 = vpop.f32.mrb[154].mxu0 }
0x2245   : > { %v7968_v22 = vpop.f32.mrb[155].mxu0  ;;  %8317 = vmatpush3.bf16.msra.mxu0 %v8316_v46  ;;  %v5689_v49 = vadd.f32 %v6781_v43, %v5688_v48 }
0x2246   : > { %7988 = vmatprep.subr.mxu0 %v8598_v6  ;;  %v6794_v22 = vld [vmem:[%s10331_s11 + $0x38] sm:$0xff] }
0x2249   : > { %7989 = vmatpush3.msra.mxu0 %v5689_v49 }
0x224a   : > { %8318 = vmatprep.subr.bf16.mxu0 %v8596_v3 }
0x22f8   : > { %v5396_v27 = vpop.f32.mrb[120].mxu1 }
0x22f9   : > { %v10080_v50 = vadd.f32 %v5396_v27, %v9936_v53  ;;  %v7911_v21 = vpop.f32.mrb[121].mxu1 }
0x22fc   : > { %v5401_v51 = vpop.f32.mrb[122].mxu1 }
0x22fd   : > { %v10083_v44 = vadd.f32 %v5401_v51, %v9940_v58  ;;  %v7914_v33 = vpop.f32.mrb[123].mxu1 }
0x2300   : > { %v5406_v54 = vpop.f32.mrb[124].mxu1 }
0x2301   : > { %v10086_v56 = vadd.f32 %v5406_v54, %v9943_v61  ;;  %v7917_v16 = vpop.f32.mrb[125].mxu1  ;;  %v6763_v61 = vld [vmem:[%s10392_s28 + $0x7] ss:$0 sm:$0xff] }
0x2302   : > { %v5493_v7 = vadd.f32 %v6763_v61, %v5492_v29  ;;  %v5498_v55 = vadd.f32 %v6763_v61, %v5497_v36  ;;  %v5503_v37 = vadd.f32 %v6763_v61, %v5502_v39 }
0x2304   : > { %v5585_v59 = vpop.f32.mrb[126].mxu1 }
0x2305   : > { %v7945_v60 = vpop.f32.mrb[127].mxu1  ;;  %v5586_v53 = vadd.f32 %v6772_v63, %v5585_v59 }
0x2308   : > { %v5590_v0 = vpop.f32.mrb[128].mxu1 }
0x2309   : > { %v5591_v1 = vadd.f32 %v6772_v63, %v5590_v0  ;;  %v7948_v32 = vpop.f32.mrb[129].mxu1 }
0x230b   : > { %v8312_v2 = vpack.c.bf16 %v5591_v1, %v5586_v53 }
0x230c   : > { %v5595_v4 = vpop.f32.mrb[130].mxu1 }
0x230d   : > { %v7951_v58 = vpop.f32.mrb[131].mxu1  ;;  %8314 = vmatpush3.bf16.xpose.msk.msra.mxu1 %vm8929_vm4, %v8312_v2  ;;  %v5596_v5 = vadd.f32 %v6772_v63, %v5595_v4 }
0x230e   : > { %7973 = vmatprep.subr.mxu1 %v8598_v6 }
0x2315   : > { %7974 = vmatpush3.xpose.msk.msra.mxu1 %vm1158_vm3, %v5596_v5 }
0x2316   : > { %7999 = vmatprep.subr.mxu1 %v8598_v6 }
0x2318   : > { %7976 = vmatmul.mubr.msk.f32.vlgmr.msra.gmra.mrb[132].mxu1 %vm1158_vm3, %v5493_v7 }
0x2319   : > { %7978 = vmatprep.mubr.msk.f32.mxu1 %vm8597_vm0, %v8598_v6  ;;  %8000 = vmatpush3.msra.mxu1 %v6794_v22  ;;  %v6811_v22 = vld [vmem:[%s10337_s17 + $0x80] sm:$0xff] }
0x231a   : > { %8324 = vmatprep.subr.bf16.mxu1 %v8596_v3 }
0x231c   : > { %7979 = vmatmul.mubr.msk.f32.gmra.mrb[134].mxu1 %vm1158_vm3, %v5498_v55 }
0x231d   : > { %7981 = vmatprep.mubr.msk.f32.mxu1 %vm8597_vm0, %v8598_v6 }
0x2320   : > { %7982 = vmatmul.mubr.msk.f32.gmra.mrb[136].mxu1 %vm1158_vm3, %v5503_v37 }
0x2321   : > { %8001 = vmatprep.mubr.msk.f32.mxu1 %vm8597_vm0, %v8598_v6 }
0x23eb   : > { %v5776_v26 = vpop.f32.mrb[132].mxu1 }
0x23ec   : > { %v5777_v8 = vadd.f32 %v5776_v26, %v8955_v62  ;;  %v7977_v57 = vpop.f32.mrb[133].mxu1 }
0x23ee   : > { %v5790_v11 = vsel %vm1257_vm6, %v5777_v8, -inf }
0x23ef   : > { %5791 = vmax.xlane.f32.xlu0 %v5790_v11  ;;  %v5781_v9 = vpop.f32.mrb[134].mxu1 }
0x23f0   : > { %v5782_v10 = vadd.f32 %v5781_v9, %v8955_v62  ;;  %v7980_v12 = vpop.f32.mrb[135].mxu1 }
0x23f2   : > { %v5793_v13 = vsel %vm1257_vm6, %v5782_v10, -inf }
0x23f3   : > { %5794 = vmax.xlane.f32.xlu0 %v5793_v13  ;;  %v5786_v19 = vpop.f32.mrb[136].mxu1 }
0x23f4   : > { %v7983_v14 = vpop.f32.mrb[137].mxu1  ;;  %v5787_v29 = vadd.f32 %v5786_v19, %v8955_v62  ;;  %v6802_v19 = vld [vmem:[%s10335_s15 + $0x20] sm:$0xff] }
0x23f5   : > { %v6803_v14 = vld [vmem:[%s10335_s15 + $0x28] sm:$0xff] }
0x23f6   : > { %v5796_v39 = vsel %vm1257_vm6, %v5787_v29, -inf }
0x247c   : > { %v5792_v15 = vpop.xlane.xlu0 %5791 }
0x247d   : > { %v5799_v17 = vsub.f32 %v5777_v8, %v5792_v15  ;;  %v8319_v15 = vpack.c.bf16 %v6803_v14, %v6802_v19 }
0x247f   : > { %v5802_v18 = vmul.f32 1.442695, %v5799_v17 }
0x2480   : > { %v5795_v24 = vpop.xlane.xlu0 %5794 }
0x2481   : > { %8506 = vpow2.f32 %v5802_v18  ;;  %v5800_v20 = vsub.f32 %v5782_v10, %v5795_v24 }
0x2483   : > { %v5804_v23 = vmul.f32 1.442695, %v5800_v20 }
0x2485   : > { %8508 = vpow2.f32 %v5804_v23 }
0x248b   : > { %v8507_v25 = vpop.eup %8506 }
0x248c   : > { %v5808_v30 = vsel %vm1257_vm6, %v8507_v25, 0.0 }
0x248d   : > { %5809 = vadd.xlane.f32.xlu1 %v5808_v30 }
0x248f   : > { %v8509_v36 = vpop.eup %8508 }
0x2490   : > { %v5811_v38 = vsel %vm1257_vm6, %v8509_v36, 0.0 }
0x2491   : > { %5812 = vadd.xlane.f32.xlu0 %v5811_v38  ;;  %5797 = vmax.xlane.f32.xlu1 %v5796_v39  ;;  %v6800_v39 = vld [vmem:[%s10333_s13 + $0x1] ss:$0 sm:$0xff] }
0x251a   : > { %v5810_v42 = vpop.xlane.xlu1 %5809 }
0x251b   : > { %8510 = vrcp.f32 %v5810_v42 }
0x251e   : > { %v5813_v41 = vpop.xlane.xlu0 %5812  ;;  %v5798_v28 = vpop.xlane.xlu1 %5797 }
0x251f   : > { %8512 = vrcp.f32 %v5813_v41  ;;  %v5801_v43 = vsub.f32 %v5787_v29, %v5798_v28  ;;  %v6801_v28 = vld [vmem:[%s10334_s14 + $0x1] ss:$0 sm:$0xff] }
0x2521   : > { %v5806_v31 = vmul.f32 1.442695, %v5801_v43 }
0x2523   : > { %8514 = vpow2.f32 %v5806_v31 }
0x2525   : > { %v8511_v45 = vpop.eup %8510 }
0x2526   : > { %v5820_v62 = vmul.f32 %v8511_v45, %v8507_v25 }
0x2528   : > { %7991 = vmatmul.mubr.msk.f32.vlgmr.msra.gmra.mrb[156].mxu0 %vm1257_vm6, %v5820_v62 }
0x2529   : > { %v8513_v40 = vpop.eup %8512  ;;  %7993 = vmatprep.mubr.msk.f32.mxu0 %vm8597_vm0, %v8598_v6  ;;  %8320 = vmatpush3.bf16.msra.mxu0 %v8319_v15 }
0x252a   : > { %v5821_v34 = vmul.f32 %v8513_v40, %v8509_v36  ;;  %8321 = vmatprep.subr.bf16.mxu0 %v8596_v3 }
0x252c   : > { %7994 = vmatmul.mubr.msk.f32.gmra.mrb[158].mxu0 %vm1257_vm6, %v5821_v34 }
0x252d   : > { %v8515_v46 = vpop.eup %8514  ;;  %7996 = vmatprep.mubr.msk.f32.mxu0 %vm8597_vm0, %v8598_v6 }
0x252e   : > { %v5814_v48 = vsel %vm1257_vm6, %v8515_v46, 0.0 }
0x252f   : > { %5815 = vadd.xlane.f32.xlu1 %v5814_v48 }
0x25bc   : > { %v5816_v49 = vpop.xlane.xlu1 %5815 }
0x25bd   : > { %8516 = vrcp.f32 %v5816_v49  ;;  %v6812_v49 = vld [vmem:[%s10337_s17 + $0x88] sm:$0xff] }
0x25c7   : > { %v8517_v27 = vpop.eup %8516 }
0x25c8   : > { %v5822_v21 = vmul.f32 %v8517_v27, %v8515_v46  ;;  %v8325_v27 = vpack.c.bf16 %v6812_v49, %v6811_v22 }
0x25ca   : > { %7997 = vmatmul.mubr.msk.f32.gmra.mrb[160].mxu0 %vm1257_vm6, %v5822_v21  ;;  %v6813_v21 = vld [vmem:[%s10337_s17 + $0x90] sm:$0xff] }
0x25cb   : > { %8018 = vmatprep.mubr.msk.f32.mxu0 %vm8597_vm0, %v8598_v6 }
0x25fb   : > { %v5898_v51 = vpop.f32.mrb[156].mxu0 }
0x25fc   : > { %v7992_v33 = vpop.f32.mrb[157].mxu0  ;;  %8002 = vmatmul.mubr.msk.f32.vlgmr.msra.gmra.mrb[138].mxu1 %vm1158_vm3, %v5898_v51  ;;  %v6814_v51 = vld [vmem:[%s10337_s17 + $0x98] sm:$0xff] }
0x25fd   : > { %8004 = vmatprep.mubr.msk.f32.mxu1 %vm8597_vm0, %v8598_v6  ;;  %8326 = vmatpush3.bf16.msra.mxu1 %v8325_v27  ;;  %v8328_v33 = vpack.c.bf16 %v6814_v51, %v6813_v21 }
0x25fe   : > { %8327 = vmatprep.subr.bf16.mxu1 %v8596_v3 }
0x25ff   : > { %v5903_v54 = vpop.f32.mrb[158].mxu0 }
0x2600   : > { %v7995_v16 = vpop.f32.mrb[159].mxu0  ;;  %8005 = vmatmul.mubr.msk.f32.gmra.mrb[140].mxu1 %vm1158_vm3, %v5903_v54  ;;  %v6815_v54 = vld [vmem:[%s10337_s17 + $0xa0] sm:$0xff] }
0x2601   : > { %8007 = vmatprep.mubr.msk.f32.mxu1 %vm8597_vm0, %v8598_v6  ;;  %8329 = vmatpush3.bf16.msra.mxu1 %v8328_v33  ;;  %v6816_v16 = vld [vmem:[%s10337_s17 + $0xa8] sm:$0xff] }
0x2602   : > { %8330 = vmatprep.subr.bf16.mxu1 %v8596_v3 }
0x269d   : > { %v5908_v59 = vpop.f32.mrb[160].mxu0 }
0x269e   : > { %v7998_v60 = vpop.f32.mrb[161].mxu0  ;;  %8008 = vmatmul.mubr.msk.f32.gmra.mrb[142].mxu1 %vm1158_vm3, %v5908_v59  ;;  %v8331_v59 = vpack.c.bf16 %v6816_v16, %v6815_v54 }
0x269f   : > { %8059 = vmatprep.mubr.msk.f32.mxu1 %vm8597_vm0, %v8598_v6  ;;  %v6817_v60 = vld [vmem:[%s10337_s17 + $0xb0] sm:$0xff] }
0x26a0   : > { %8332 = vmatpush3.bf16.msra.mxu1 %v8331_v59  ;;  %v6828_v59 = vld [vmem:[%s10338_s18 + $0x1] ss:$0 sm:$0xff] }
0x26a1   : > { %8333 = vmatprep.subr.bf16.mxu1 %v8596_v3 }
0x26cf   : > { %v5989_v63 = vpop.f32.mrb[138].mxu1 }
0x26d0   : > { %v6003_v0 = vadd.f32 %v5989_v63, %v10080_v50  ;;  %v8003_v53 = vpop.f32.mrb[139].mxu1  ;;  %v6818_v63 = vld [vmem:[%s10337_s17 + $0xb8] sm:$0xff] }
0x26d1   : > { %v6819_v53 = vld [vmem:[%s10337_s17 + $0xc0] sm:$0xff] }
0x26d2   : > { %v10141_v1 = vadd.f32 %v6003_v0, %v9539_v47  ;;  %v8334_v0 = vpack.c.bf16 %v6818_v63, %v6817_v60 }
0x26d3   : > { %v5994_v32 = vpop.f32.mrb[140].mxu1 }
0x26d4   : > { %v6004_v2 = vadd.f32 %v5994_v32, %v10083_v44  ;;  %v8006_v4 = vpop.f32.mrb[141].mxu1  ;;  %v6013_v58 = vsel %vm816_vm2, %v10141_v1, 0.0  ;;  %8335 = vmatpush3.bf16.msra.mxu1 %v8334_v0  ;;  %v6820_v32 = vld [vmem:[%s10337_s17 + $0xc8] sm:$0xff] }
0x26d5   : > { %6014 = vadd.xlane.f32.xlu0 %v6013_v58  ;;  %8336 = vmatprep.subr.bf16.mxu1 %v8596_v3  ;;  %v6821_v4 = vld [vmem:[%s10337_s17 + $0xd0] sm:$0xff]  ;;  %v6822_v58 = vld [vmem:[%s10337_s17 + $0xd8] sm:$0xff] }
0x26d6   : > { %v6007_v61 = vadd.f32 %v6004_v2, %v9544_v35  ;;  %v8337_v2 = vpack.c.bf16 %v6820_v32, %v6819_v53 }
0x26d8   : > { %v6016_v5 = vsel %vm816_vm2, %v6007_v61, 0.0  ;;  %8338 = vmatpush3.bf16.msra.mxu1 %v8337_v2 }
0x26d9   : > { %6017 = vadd.xlane.f32.xlu0 %v6016_v5  ;;  %8339 = vmatprep.subr.bf16.mxu1 %v8596_v3  ;;  %v6823_v5 = vld [vmem:[%s10337_s17 + $0xe0] sm:$0xff] }
0x2762   : > { %v6015_v7 = vpop.xlane.xlu0 %6014 }
0x2763   : > { %v6022_v55 = vmul.f32 0.03125, %v6015_v7  ;;  %v6824_v7 = vld [vmem:[%s10337_s17 + $0xe8] sm:$0xff] }
0x2765   : > { %v6025_v50 = vsub.f32 %v10141_v1, %v6022_v55  ;;  %v8343_v55 = vpack.c.bf16 %v6824_v7, %v6823_v5 }
0x2766   : > { %v6018_v37 = vpop.xlane.xlu0 %6017 }
0x2767   : > { %v6023_v47 = vmul.f32 0.03125, %v6018_v37  ;;  %v6028_v26 = vmul.f32 %v6025_v50, %v6025_v50  ;;  %v6826_v37 = vld [vmem:[%s10337_s17 + $0xf8] sm:$0xff] }
0x2769   : > { %v6026_v8 = vsub.f32 %v6007_v61, %v6023_v47  ;;  %v6031_v44 = vsel %vm816_vm2, %v6028_v26, 0.0  ;;  %v8340_v61 = vpack.c.bf16 %v6822_v58, %v6821_v4 }
0x276a   : > { %6032 = vadd.xlane.f32.xlu1 %v6031_v44 }
0x276b   : > { %v6029_v57 = vmul.f32 %v6026_v8, %v6026_v8  ;;  %8341 = vmatpush3.bf16.msra.mxu1 %v8340_v61 }
0x276c   : > { %8342 = vmatprep.subr.bf16.mxu1 %v8596_v3 }
0x276d   : > { %v6034_v11 = vsel %vm816_vm2, %v6029_v57, 0.0 }
0x276e   : > { %6035 = vadd.xlane.f32.xlu0 %v6034_v11 }
0x276f   : > { %8344 = vmatpush3.bf16.msra.mxu1 %v8343_v55 }
0x2770   : > { %8345 = vmatprep.subr.bf16.mxu1 %v8596_v3 }
0x2771   : > { %v5999_v9 = vpop.f32.mrb[142].mxu1 }
0x2772   : > { %v6005_v35 = vadd.f32 %v5999_v9, %v10086_v56  ;;  %v8009_v10 = vpop.f32.mrb[143].mxu1  ;;  %v6804_v56 = vld [vmem:[%s10335_s15 + $0x30] sm:$0xff] }
0x2773   : > { %v6807_v10 = vld [vmem:[%s10336_s16 + $0x1] ss:$0 sm:$0xff] }
0x2774   : > { %v6008_v12 = vadd.f32 %v6005_v35, %v9549_v52  ;;  %v6805_v52 = vld [vmem:[%s10335_s15 + $0x38] sm:$0xff] }
0x2775   : > { %v8322_v17 = vpack.c.bf16 %v6805_v52, %v6804_v56 }
0x2776   : > { %v6019_v13 = vsel %vm816_vm2, %v6008_v12, 0.0 }
0x2777   : > { %6020 = vadd.xlane.f32.xlu1 %v6019_v13  ;;  %8323 = vmatpush3.bf16.msra.mxu0 %v8322_v17 }
0x2778   : > { %8348 = vmatprep.subr.bf16.mxu0 %v8596_v3 }
0x27f7   : > { %v6033_v18 = vpop.xlane.xlu1 %6032 }
0x27f8   : > { %v6040_v24 = vmul.f32 0.03125, %v6033_v18 }
0x27fa   : > { %v6043_v20 = vadd.f32 1e-06, %v6040_v24 }
0x27fb   : > { %v6036_v23 = vpop.xlane.xlu0 %6035 }
0x27fc   : > { %8518 = vrsqrt.f32 %v6043_v20  ;;  %v6041_v25 = vmul.f32 0.03125, %v6036_v23 }
0x27fe   : > { %v6044_v29 = vadd.f32 1e-06, %v6041_v25 }
0x2800   : > { %8520 = vrsqrt.f32 %v6044_v29 }
0x2804   : > { %v6021_v30 = vpop.xlane.xlu1 %6020 }
0x2805   : > { %v6024_v36 = vmul.f32 0.03125, %v6021_v30 }
0x2806   : > { %v8519_v38 = vpop.eup %8518 }
0x2807   : > { %v6049_v42 = vmul.f32 %v8519_v38, %v6025_v50  ;;  %v6027_v41 = vsub.f32 %v6008_v12, %v6024_v36  ;;  %v6825_v50 = vld [vmem:[%s10337_s17 + $0xf0] sm:$0xff] }
0x2808   : > { %v8346_v47 = vpack.c.bf16 %v6826_v37, %v6825_v50  ;;  %v6322_v50 = vld [vmem:[%s10341_s21] sm:$0xff] }
0x2809   : > { %v6058_v43 = vmul.f32 %v6800_v39, %v6049_v42  ;;  %v6030_v31 = vmul.f32 %v6027_v41, %v6027_v41 }
0x280a   : > { %v8521_v45 = vpop.eup %8520  ;;  %8347 = vmatpush3.bf16.msra.mxu1 %v8346_v47  ;;  %v6324_v47 = vld [vmem:[%s10341_s21 + $0x10] sm:$0xff] }
0x280b   : > { %v6067_v62 = vadd.f32 %v6801_v28, %v6058_v43  ;;  %v6037_v40 = vsel %vm816_vm2, %v6030_v31, 0.0  ;;  %v6050_v34 = vmul.f32 %v8521_v45, %v6026_v8 }
0x280c   : > { %6038 = vadd.xlane.f32.xlu1 %v6037_v40 }
0x280d   : > { %8019 = vmatmul.mubr.msk.f32.vlgmr.msra.gmra.mrb[162].mxu0 %vm816_vm2, %v6067_v62  ;;  %v6059_v46 = vmul.f32 %v6800_v39, %v6050_v34 }
0x280e   : > { %8021 = vmatprep.mubr.msk.f32.mxu0 %vm8597_vm0, %v8598_v6 }
0x280f   : > { %v6068_v48 = vadd.f32 %v6801_v28, %v6059_v46 }
0x2811   : > { %8022 = vmatmul.mubr.msk.f32.gmra.mrb[164].mxu0 %vm816_vm2, %v6068_v48 }
0x2812   : > { %8024 = vmatprep.mubr.msk.f32.mxu0 %vm8597_vm0, %v8598_v6 }
0x2899   : > { %v6039_v26 = vpop.xlane.xlu1 %6038 }
0x289a   : > { %v6042_v8 = vmul.f32 0.03125, %v6039_v26  ;;  %v6325_v26 = vld [vmem:[%s10341_s21 + $0x18] sm:$0xff] }
0x289c   : > { %v6045_v44 = vadd.f32 1e-06, %v6042_v8  ;;  %v8352_v8 = vpack.c.bf16 %v6325_v26, %v6324_v47 }
0x289e   : > { %8522 = vrsqrt.f32 %v6045_v44 }
0x28a8   : > { %v8523_v57 = vpop.eup %8522 }
0x28a9   : > { %v6051_v11 = vmul.f32 %v8523_v57, %v6027_v41 }
0x28ab   : > { %v6060_v9 = vmul.f32 %v6800_v39, %v6051_v11 }
0x28ad   : > { %v6069_v35 = vadd.f32 %v6801_v28, %v6060_v9 }
0x28af   : > { %8025 = vmatmul.mubr.msk.f32.gmra.mrb[166].mxu0 %vm816_vm2, %v6069_v35 }
0x28b0   : > { %8076 = vmatprep.mubr.msk.f32.mxu0 %vm8597_vm0, %v8598_v6 }
0x28e0   : > { %v6158_v12 = vpop.f32.mrb[162].mxu0 }
0x28e1   : > { %v6159_v13 = vadd.f32 %v6807_v10, %v6158_v12  ;;  %v8020_v19 = vpop.f32.mrb[163].mxu0 }
0x28e2   : > { %v6326_v19 = vld [vmem:[%s10342_s22] sm:$0x1] }
0x28e3   : > { %v6175_v14 = vmul.f32 %v6159_v13, %v6159_v13  ;;  %v6172_v39 = vmul.f32 0.5, %v6159_v13 }
0x28e4   : > { %v6163_v15 = vpop.f32.mrb[164].mxu0 }
0x28e5   : > { %v6178_v56 = vmul.f32 %v6175_v14, %v6159_v13  ;;  %v6164_v52 = vadd.f32 %v6807_v10, %v6163_v15  ;;  %v8023_v17 = vpop.f32.mrb[165].mxu0 }
0x28e7   : > { %v6181_v18 = vmul.f32 0.044715, %v6178_v56  ;;  %v6176_v24 = vmul.f32 %v6164_v52, %v6164_v52  ;;  %v6173_v43 = vmul.f32 0.5, %v6164_v52 }
0x28e9   : > { %v6184_v20 = vadd.f32 %v6181_v18, %v6159_v13  ;;  %v6179_v23 = vmul.f32 %v6176_v24, %v6164_v52 }
0x28eb   : > { %v6187_v25 = vmul.f32 0.7978846, %v6184_v20  ;;  %v6182_v29 = vmul.f32 0.044715, %v6179_v23 }
0x28ed   : > { %8524 = vtanh.f32 %v6187_v25  ;;  %v6185_v30 = vadd.f32 %v6182_v29, %v6164_v52 }
0x28ef   : > { %v6188_v36 = vmul.f32 0.7978846, %v6185_v30 }
0x28f1   : > { %8526 = vtanh.f32 %v6188_v36 }
0x28f7   : > { %v8525_v38 = vpop.eup %8524 }
0x28f8   : > { %v6193_v42 = vadd.f32 1.0, %v8525_v38 }
0x28fa   : > { %v6196_v41 = vmul.f32 %v6193_v42, %v6172_v39 }
0x28fb   : > { %v8527_v28 = vpop.eup %8526 }
0x28fc   : > { %8060 = vmatmul.mubr.f32.vlgmr.msra.gmra.mrb[144].mxu1 %v6196_v41  ;;  %v6194_v31 = vadd.f32 1.0, %v8527_v28 }
0x28fd   : > { %8062 = vmatprep.mubr.msk.f32.mxu1 %vm8597_vm0, %v8598_v6 }
0x28fe   : > { %v6197_v45 = vmul.f32 %v6194_v31, %v6173_v43 }
0x2900   : > { %8063 = vmatmul.mubr.f32.gmra.mrb[146].mxu1 %v6197_v45 }
0x2901   : > { %8065 = vmatprep.mubr.msk.f32.mxu1 %vm8597_vm0, %v8598_v6 }
0x2982   : > { %v6168_v62 = vpop.f32.mrb[166].mxu0 }
0x2983   : > { %v6169_v40 = vadd.f32 %v6807_v10, %v6168_v62  ;;  %v8026_v34 = vpop.f32.mrb[167].mxu0  ;;  %v6305_v10 = vld [vmem:[%s10340_s20] sm:$0x1] }
0x2985   : > { %v6177_v46 = vmul.f32 %v6169_v40, %v6169_v40  ;;  %v6174_v51 = vmul.f32 0.5, %v6169_v40 }
0x2987   : > { %v6180_v48 = vmul.f32 %v6177_v46, %v6169_v40 }
0x2989   : > { %v6183_v22 = vmul.f32 0.044715, %v6180_v48 }
0x298b   : > { %v6186_v49 = vadd.f32 %v6183_v22, %v6169_v40 }
0x298d   : > { %v6189_v27 = vmul.f32 0.7978846, %v6186_v49 }
0x298f   : > { %8528 = vtanh.f32 %v6189_v27 }
0x2999   : > { %v8529_v21 = vpop.eup %8528 }
0x299a   : > { %v6195_v33 = vadd.f32 1.0, %v8529_v21 }
0x299c   : > { %v6198_v54 = vmul.f32 %v6195_v33, %v6174_v51 }
0x299e   : > { %8066 = vmatmul.mubr.f32.gmra.mrb[148].mxu1 %v6198_v54 }
0x29cf   : > { %v6282_v16 = vpop.f32.mrb[144].mxu1 }
0x29d0   : > { %v6294_v6 = vadd.f32 %v6282_v16, %v10141_v1  ;;  %v8061_v60 = vpop.f32.mrb[145].mxu1  ;;  %v6323_v1 = vld [vmem:[%s10341_s21 + $0x8] sm:$0xff] }
0x29d1   : > { %v8349_v37 = vpack.c.bf16 %v6323_v1, %v6322_v50 }
0x29d2   : > { %v6303_v63 = vadd.f32 %v6828_v59, %v6294_v6 }
0x29d3   : > { %v6287_v0 = vpop.f32.mrb[146].mxu1  ;;  %8350 = vmatpush3.bf16.msra.mxu0 %v8349_v37 }
0x29d4   : > { %v8064_v53 = vpop.f32.mrb[147].mxu1  ;;  %v6307_v32 = vsel %vm6306_vm7, %v6303_v63, 0.0  ;;  %8351 = vmatprep.subr.bf16.mxu0 %v8596_v3  ;;  %v6304_v3 = vld [vmem:[%s10339_s19] sm:$0x1] }
0x29d5   : > { %6308 = vadd.xlane.f32.xlu0 %v6307_v32 }
0x29d7   : > { %8353 = vmatpush3.bf16.msra.mxu0 %v8352_v8 }
0x2a62   : > { %v6309_v2 = vpop.xlane.xlu0 %6308 }
0x2a63   : > { %v6310_v4 = vmul.f32 0.03125, %v6309_v2 }
0x2a65   : > { %v6311_v58 = vsub.f32 %v6303_v63, %v6310_v4 }
0x2a67   : > { %v6312_v61 = vmul.f32 %v6311_v58, %v6311_v58 }
0x2a69   : > { %v6313_v5 = vsel %vm6306_vm7, %v6312_v61, 0.0 }
0x2a6a   : > { %6314 = vadd.xlane.f32.xlu1 %v6313_v5 }
0x2a71   : > { %v6291_v7 = vpop.f32.mrb[148].mxu1 }
0x2a72   : > { %v8067_v55 = vpop.f32.mrb[149].mxu1 }
0x2af7   : > { %v6315_v44 = vpop.xlane.xlu1 %6314 }
0x2af8   : > { %v6316_v57 = vmul.f32 0.03125, %v6315_v44 }
0x2afa   : > { %v6317_v11 = vadd.f32 1e-06, %v6316_v57 }
0x2afc   : > { %8530 = vrsqrt.f32 %v6317_v11 }
0x2b06   : > { %v8531_v9 = vpop.eup %8530 }
0x2b07   : > { %v6319_v35 = vmul.f32 %v8531_v9, %v6311_v58 }
0x2b09   : > { %v6320_v12 = vmul.f32 %v6319_v35, %v6304_v3 }
0x2b0b   : > { %v6321_v13 = vadd.f32 %v6320_v12, %v6305_v10 }
0x2b0d   : > { %8077 = vmatmul.mubr.msk.f32.vlgmr.msra.gmra.mrb[168].mxu0 %vm816_vm2, %v6321_v13 }
0x2be0   : > { %v6396_v14 = vpop.f32.mrb[168].mxu0 }
0x2be1   : > { %v6397_v15 = vadd.f32 %v6396_v14, %v6326_v19  ;;  %v8078_v56 = vpop.f32.mrb[169].mxu0 }
0x2be3   : > { %6401 = vst.msk [vmem:[%s702_s2] sm:$0x1] %vm6400_vm8, %v6397_v15 }
0x2be4   : > { %8545 = shalt.err (!%p8542_p3)
}
0x2be5   : > { %s8546_s2 = scalar_lea.hbm %s10278_s29, 16  ;;  %s8550_s23 = scalar_lea.hbm %s10393_s0, 32 }
0x2be6   : > { %p8547_p4 = scmp.ne.s32.totalorder %s10278_s29, %s8546_s2  ;;  %p8551_p9 = scmp.lt.u32.totalorder %s10278_s29, %s10393_s0 }
0x2be7   : > { %p8552_p10 = scmp.lt.u32.totalorder %s8550_s23, %s8546_s2  ;;  %p8554_p12 = scmp.lt.u32.totalorder %s8546_s2, %s10278_s29 }
0x2be8   : > { %p8548_p7 = pnand %p8547_p4, %p8759_p5 }
0x2be9   : > { %p8553_p11 = por %p8552_p10, %p8551_p9 }
0x2bea   : > { %p8549_p8 = pneg %p8548_p7 }
0x2beb   : > { %p8555_p13 = por %p8554_p12, %p8553_p11 }
0x2bed   : > { %p8556_p0 = pnand %p8555_p13, %p8549_p8 }
0x2bef   : > { %8559 = shalt.err (!%p8556_p0)
}
0x2bf0   : > { %8355 = dma.vmem_to_hbm [thread:$0]  (%p8759_p5), %s10280_s3, 16, %s10278_s29, %s6403_s1  }
0x2bf1 PF: > { %s10394_s8 = sld [smem:[#allocation7_spill]]  ;;  %s10395_s27 = sld [smem:[#allocation5_spill]] }
0x2bf7   : > { %p8361_p1 = scmp.ge.s32.totalorder %s10394_s8, 2  ;;  %s6427_s4 = sand.u32 1, %s10395_s27  }
0x2bf8   : > { %s6428_s25 = scalar_lea.sflag [#allocation3], %s6427_s4 }
0x2bf9   : > { %p8358_p2 = pnand %p8361_p1, %p8763_p6 }
0x2bfb   : > { %8577 = dma.done.wait (!%p8358_p2), %s6428_s25, 16  }
0x2bfc   : > { %8579 = vsyncadd (!%p8358_p2), %s6428_s25, 4294967280  ;;  %s10397_s25 = sld [smem:[#allocation8_spill]]  ;;  %s10398_s2 = sld [smem:[#allocation6_spill]] }
0x2bfd   : > { %s10399_s24 = sld [smem:[#allocation9_spill]]  ;;  %s10400_s4 = smov %s8586_s30 }
0x2c02   : > { %p33_p3 = scmp.ge.s32.totalorder %s10397_s25, 4   ;;  %s10401_s30 = smov %s10398_s2 }
0x2c04   :  { %35 = sbr.rel (!%p33_p3) target bundleno = 14 (0xe), region = 205 }
0x2c0b   :  { %6432 = vsyncpa [#allocation3], 1 }
0x2c0c   :  { %6434 = vsyncpa [#allocation3 + $0x1], 1 }

</bundles_post_ra>
